<compile_context>
chip_gen: v6e
topology: v6e:2x2x1
jax: 0.10.0
libtpu: 0.0.40
codegen_flags: <defaults>
</compile_context>

<pallas_src>
import functools

import jax
import jax.numpy as jnp
from jax import lax
from jax.experimental import pallas as pl
from jax.experimental.pallas import tpu as pltpu

_LANE = 128
_SUBLANE = 8


def _rup(x, m):
    return -(-int(x) // m) * m


def _topk_routing_kernel(q_ref, k_ref, w_ref, idx_ref, *, scale, topk):
    # q_ref/k_ref: (Bblk, P2, C) VMEM tiles.
    # w_ref/idx_ref: (Bblk, topk, P2) VMEM tiles (lane-dense: P2 on lanes).
    q = q_ref[...]
    k = k_ref[...]

    # Batched attn_logit = q @ k^T contracting the channel axis directly
    # (no explicit k.T relayout); f32 MXU accumulation.
    logits = lax.dot_general(
        q, k,
        dimension_numbers=(((2,), (2,)), ((0,), (0,))),
        preferred_element_type=jnp.float32)          # (Bblk, P2, P2)

    if scale <= 0.0:
        # A non-positive temperature would change the top-k ordering, so fall
        # back to scaling the logits before selection (matches the reference).
        logits = logits * scale
        eff_scale = 1.0
    else:
        # Positive scale preserves top-k order; apply it only to the selected
        # top-k logits inside the softmax below.
        eff_scale = float(scale)

    p2 = logits.shape[1]
    p2k = logits.shape[2]
    # 2-D iota; broadcasts against the (Bblk, P2, P2) logits where needed.
    col_ids = lax.broadcasted_iota(jnp.int32, (p2, p2k), 1)

    # Iterative top-k (topk is tiny and static): each round is one lane-max,
    # one first-argmax (min index among ties, matching lax.top_k / torch.topk
    # tie-breaking), and one mask.  Per-round index rows are stored directly
    # as full-lane rows of the (Bblk, topk, P2) output tile.
    vals = []
    for t in range(topk):
        m = jnp.max(logits, axis=-1, keepdims=True)                  # (B, P2, 1)
        is_max = logits == m
        idx = jnp.min(jnp.where(is_max, col_ids, p2k),
                      axis=-1, keepdims=True)                        # first max idx
        vals.append(m)
        idx_ref[:, t, :] = idx[:, :, 0].astype(idx_ref.dtype)
        if t + 1 < topk:                   # last round needs no masking
            logits = jnp.where(col_ids == idx, -jnp.inf, logits)

    # Softmax over the selected logits.  vals[0] is the row max, so
    # softmax(eff_scale * vals)_t = exp(eff_scale*(vals_t - vals_0)) / denom.
    v0 = vals[0]
    exps = [jnp.ones_like(v0)]
    denom = exps[0]
    for t in range(1, topk):
        e = jnp.exp(eff_scale * (vals[t] - v0))
        exps.append(e)
        denom = denom + e
    rdenom = 1.0 / denom                   # exact normalization (weights sum to 1)
    for t in range(topk):
        w_ref[:, t, :] = (exps[t] * rdenom)[:, :, 0].astype(w_ref.dtype)


def _per_batch_vmem_bytes(p2, c, topk):
    """Per-batch VMEM footprint with (8,128) tile padding, f32/int32 (4 B)."""
    qk_tile = _rup(p2, _SUBLANE) * _rup(c, _LANE) * 4        # one (p2, c) q/k tile
    out_tile = _rup(topk, _SUBLANE) * _rup(p2, _LANE) * 4    # one (topk, p2) w/idx tile
    logits_tile = _rup(p2, _SUBLANE) * _rup(p2, _LANE) * 4   # (p2, p2) logits
    # 2 inputs x 2 pipeline buffers, 2 outputs x 2 buffers, plus logits and a
    # handful of same-sized temporaries from the unrolled top-k rounds.
    return 2 * 2 * qk_tile + 2 * 2 * out_tile + (2 + topk) * logits_tile


def _fixed_vmem_bytes(p2):
    # col_ids iota + misc small vectors (not per-batch).
    return 2 * _rup(p2, _SUBLANE) * _rup(p2, _LANE) * 4


def _vmem_budgets():
    """(block-selection budget, vmem_limit cap) based on physical VMEM size."""
    phys = 64 * 1024 * 1024            # conservative default (v7x) if query fails
    try:
        phys = int(pltpu.get_tpu_info().vmem_capacity_bytes)
    except Exception:
        pass
    if phys >= 128 * 1024 * 1024:      # v5e / v6e: 128 MiB physical VMEM
        return 24 * 1024 * 1024, 48 * 1024 * 1024
    return 20 * 1024 * 1024, 40 * 1024 * 1024   # v7x: 64 MiB physical VMEM


def _choose_block_n(n, p2, c, topk, vmem_budget_bytes):
    """Largest batch block that divides n and fits the padded VMEM budget."""
    per_batch = _per_batch_vmem_bytes(p2, c, topk)
    avail = max(vmem_budget_bytes - _fixed_vmem_bytes(p2), per_batch)
    cap = max(1, avail // per_batch)
    block_n = 1
    for d in range(1, min(n, int(cap)) + 1):
        if n % d == 0:
            block_n = d
    return block_n


def topk_routing(query, key, *, topk=4, qk_scale=None, block_n=None):
    """Pallas TopkRouting forward. query/key: (N, P2, C) float32.

    Returns (r_weight, topk_index), both (N, P2, topk)."""
    n, p2, c = query.shape
    scale = float(qk_scale) if qk_scale is not None else float(c) ** (-0.5)

    budget, vmem_cap = _vmem_budgets()
    if block_n is None:
        block_n = _choose_block_n(n, p2, c, topk, budget)
    assert n % block_n == 0
    grid = n // block_n

    kernel = functools.partial(_topk_routing_kernel, scale=scale, topk=topk)

    grid_spec = pltpu.PrefetchScalarGridSpec(
        num_scalar_prefetch=0,
        grid=(grid,),
        in_specs=[
            pl.BlockSpec((block_n, p2, c), lambda b: (b, 0, 0)),
            pl.BlockSpec((block_n, p2, c), lambda b: (b, 0, 0)),
        ],
        out_specs=[
            pl.BlockSpec((block_n, topk, p2), lambda b: (b, 0, 0)),
            pl.BlockSpec((block_n, topk, p2), lambda b: (b, 0, 0)),
        ],
    )

    est = block_n * _per_batch_vmem_bytes(p2, c, topk) + _fixed_vmem_bytes(p2)
    vmem_limit = int(min(vmem_cap, max(4 * 1024 * 1024, 2 * est)))

    w_t, idx_t = pl.pallas_call(
        kernel,
        out_shape=(
            jax.ShapeDtypeStruct((n, topk, p2), jnp.float32),
            jax.ShapeDtypeStruct((n, topk, p2), jnp.int32),
        ),
        grid_spec=grid_spec,
        compiler_params=pltpu.CompilerParams(
            dimension_semantics=("parallel",),
            vmem_limit_bytes=vmem_limit),
    )(query, key)

    # Back to the module's (N, P2, topk) layout; cheap XLA transpose on a tiny
    # array, kept outside the kernel so the kernel's stores stay lane-dense.
    return jnp.swapaxes(w_t, 1, 2), jnp.swapaxes(idx_t, 1, 2)


def topk_routing_ref(query, key, *, topk=4, qk_scale=None):
    """Pure-JAX reference (faithful to the PyTorch forward)."""
    n, p2, c = query.shape
    scale = qk_scale if qk_scale is not None else c ** (-0.5)
    logits = jnp.einsum("npc,nqc->npq", query * scale, key)
    vals, idxs = lax.top_k(logits, topk)
    w = jax.nn.softmax(vals, axis=-1)
    return w, idxs


if __name__ == "__main__":
    # Small shapes consistent with the module: n=2 batch, p^2=64 tokens, qk_dim=32.
    N, P2, C, TOPK = 2, 64, 32, 4
    key_rng = jax.random.PRNGKey(0)
    kq, kk = jax.random.split(key_rng)
    query = jax.random.normal(kq, (N, P2, C), dtype=jnp.float32)
    keyt = jax.random.normal(kk, (N, P2, C), dtype=jnp.float32)

    r_weight, topk_index = topk_routing(query, keyt, topk=TOPK)
    jax.block_until_ready((r_weight, topk_index))

    r_ref, i_ref = topk_routing_ref(query, keyt, topk=TOPK)
    assert r_weight.shape == (N, P2, TOPK) and topk_index.shape == (N, P2, TOPK)
    assert jnp.allclose(r_weight, r_ref, atol=1e-5, rtol=1e-5), "routing weights mismatch"
    assert jnp.array_equal(topk_index, i_ref), "topk indices mismatch"

    print("KERNEL_OK")
</pallas_src>

<mosaic_0001>
module attributes {stable_mosaic.version = 11 : i64} {
  func.func @_topk_routing_kernel(%arg0: i32, %arg1: memref<2x64x32xf32, #tpu.memory_space<vmem>>, %arg2: memref<2x64x32xf32, #tpu.memory_space<vmem>>, %arg3: memref<2x4x64xf32, #tpu.memory_space<vmem>>, %arg4: memref<2x4x64xi32, #tpu.memory_space<vmem>>) attributes {dimension_semantics = [#tpu.dimension_semantics<parallel>], iteration_bounds = array<i64: 1>, scalar_prefetch = 0 : i64, scratch_operands = 0 : i64, tpu.core_type = #tpu.core_type<tc>, window_params = [{transform_indices = @transform_0, window_bounds = array<i64: 2, 64, 32>}, {transform_indices = @transform_1, window_bounds = array<i64: 2, 64, 32>}, {transform_indices = @transform_2, window_bounds = array<i64: 2, 4, 64>}, {transform_indices = @transform_3, window_bounds = array<i64: 2, 4, 64>}]} {
    %c0 = arith.constant 0 : index
    %c0_0 = arith.constant 0 : index
    %c0_1 = arith.constant 0 : index
    %0 = vector.load %arg1[%c0, %c0_0, %c0_1] : memref<2x64x32xf32, #tpu.memory_space<vmem>>, vector<2x64x32xf32>
    %c0_2 = arith.constant 0 : index
    %c0_3 = arith.constant 0 : index
    %c0_4 = arith.constant 0 : index
    %1 = vector.load %arg2[%c0_2, %c0_3, %c0_4] : memref<2x64x32xf32, #tpu.memory_space<vmem>>, vector<2x64x32xf32>
    %cst = arith.constant dense<0.000000e+00> : vector<2x64x64xf32>
    %2 = tpu.matmul %0, %1, %cst {dimension_numbers = #tpu.dot_dimension_numbers<[2], [2], [1], [1], [0, 0, 0, 1, 1, 1], [0], [0]>} : vector<2x64x32xf32>, vector<2x64x32xf32>, vector<2x64x64xf32> -> vector<2x64x64xf32>
    %3 = tpu.iota {dimensions = array<i32: 1>} : vector<64x64xi32>
    %cst_5 = arith.constant dense<0xFF800000> : vector<2x64xf32>
    %4 = vector.multi_reduction <maximumf>, %2, %cst_5 [2] : vector<2x64x64xf32> to vector<2x64xf32>
    %5 = vector.shape_cast %4 : vector<2x64xf32> to vector<2x64x1xf32>
    %6 = vector.broadcast %5 : vector<2x64x1xf32> to vector<2x64x64xf32>
    %7 = arith.cmpf oeq, %2, %6 : vector<2x64x64xf32>
    %c64_i32 = arith.constant 64 : i32
    %8 = vector.shape_cast %3 : vector<64x64xi32> to vector<1x64x64xi32>
    %9 = vector.broadcast %8 : vector<1x64x64xi32> to vector<2x64x64xi32>
    %10 = vector.broadcast %c64_i32 : i32 to vector<2x64x64xi32>
    %11 = arith.select %7, %9, %10 : vector<2x64x64xi1>, vector<2x64x64xi32>
    %cst_6 = arith.constant dense<2147483647> : vector<2x64xi32>
    %12 = vector.multi_reduction <minsi>, %11, %cst_6 [2] : vector<2x64x64xi32> to vector<2x64xi32>
    %13 = vector.shape_cast %12 : vector<2x64xi32> to vector<2x64x1xi32>
    %14 = vector.shape_cast %13 : vector<2x64x1xi32> to vector<2x64xi32>
    %c0_7 = arith.constant 0 : index
    %c0_8 = arith.constant 0 : index
    %c0_9 = arith.constant 0 : index
    %15 = vector.load %arg4[%c0_7, %c0_8, %c0_9] : memref<2x4x64xi32, #tpu.memory_space<vmem>>, vector<2x1x64xi32>
    %16 = vector.shape_cast %15 : vector<2x1x64xi32> to vector<2x64xi32>
    %17 = vector.shape_cast %14 : vector<2x64xi32> to vector<2x1x64xi32>
    tpu.vector_store %arg4[%c0_7, %c0_8, %c0_9], %17 {strides = array<i32>} : memref<2x4x64xi32, #tpu.memory_space<vmem>>, vector<2x1x64xi32>,
    %18 = vector.shape_cast %3 : vector<64x64xi32> to vector<1x64x64xi32>
    %19 = vector.broadcast %18 : vector<1x64x64xi32> to vector<2x64x64xi32>
    %20 = vector.broadcast %13 : vector<2x64x1xi32> to vector<2x64x64xi32>
    %21 = arith.cmpi eq, %19, %20 : vector<2x64x64xi32>
    %cst_10 = arith.constant 0xFF800000 : f32
    %22 = vector.broadcast %cst_10 : f32 to vector<2x64x64xf32>
    %23 = arith.select %21, %22, %2 : vector<2x64x64xi1>, vector<2x64x64xf32>
    %cst_11 = arith.constant dense<0xFF800000> : vector<2x64xf32>
    %24 = vector.multi_reduction <maximumf>, %23, %cst_11 [2] : vector<2x64x64xf32> to vector<2x64xf32>
    %25 = vector.shape_cast %24 : vector<2x64xf32> to vector<2x64x1xf32>
    %26 = vector.broadcast %25 : vector<2x64x1xf32> to vector<2x64x64xf32>
    %27 = arith.cmpf oeq, %23, %26 : vector<2x64x64xf32>
    %c64_i32_12 = arith.constant 64 : i32
    %28 = vector.shape_cast %3 : vector<64x64xi32> to vector<1x64x64xi32>
    %29 = vector.broadcast %28 : vector<1x64x64xi32> to vector<2x64x64xi32>
    %30 = vector.broadcast %c64_i32_12 : i32 to vector<2x64x64xi32>
    %31 = arith.select %27, %29, %30 : vector<2x64x64xi1>, vector<2x64x64xi32>
    %cst_13 = arith.constant dense<2147483647> : vector<2x64xi32>
    %32 = vector.multi_reduction <minsi>, %31, %cst_13 [2] : vector<2x64x64xi32> to vector<2x64xi32>
    %33 = vector.shape_cast %32 : vector<2x64xi32> to vector<2x64x1xi32>
    %34 = vector.shape_cast %33 : vector<2x64x1xi32> to vector<2x64xi32>
    %c0_14 = arith.constant 0 : index
    %c1 = arith.constant 1 : index
    %c0_15 = arith.constant 0 : index
    %35 = vector.load %arg4[%c0_14, %c1, %c0_15] : memref<2x4x64xi32, #tpu.memory_space<vmem>>, vector<2x1x64xi32>
    %36 = vector.shape_cast %35 : vector<2x1x64xi32> to vector<2x64xi32>
    %37 = vector.shape_cast %34 : vector<2x64xi32> to vector<2x1x64xi32>
    tpu.vector_store %arg4[%c0_14, %c1, %c0_15], %37 {strides = array<i32>} : memref<2x4x64xi32, #tpu.memory_space<vmem>>, vector<2x1x64xi32>,
    %38 = vector.shape_cast %3 : vector<64x64xi32> to vector<1x64x64xi32>
    %39 = vector.broadcast %38 : vector<1x64x64xi32> to vector<2x64x64xi32>
    %40 = vector.broadcast %33 : vector<2x64x1xi32> to vector<2x64x64xi32>
    %41 = arith.cmpi eq, %39, %40 : vector<2x64x64xi32>
    %cst_16 = arith.constant 0xFF800000 : f32
    %42 = vector.broadcast %cst_16 : f32 to vector<2x64x64xf32>
    %43 = arith.select %41, %42, %23 : vector<2x64x64xi1>, vector<2x64x64xf32>
    %cst_17 = arith.constant dense<0xFF800000> : vector<2x64xf32>
    %44 = vector.multi_reduction <maximumf>, %43, %cst_17 [2] : vector<2x64x64xf32> to vector<2x64xf32>
    %45 = vector.shape_cast %44 : vector<2x64xf32> to vector<2x64x1xf32>
    %46 = vector.broadcast %45 : vector<2x64x1xf32> to vector<2x64x64xf32>
    %47 = arith.cmpf oeq, %43, %46 : vector<2x64x64xf32>
    %c64_i32_18 = arith.constant 64 : i32
    %48 = vector.shape_cast %3 : vector<64x64xi32> to vector<1x64x64xi32>
    %49 = vector.broadcast %48 : vector<1x64x64xi32> to vector<2x64x64xi32>
    %50 = vector.broadcast %c64_i32_18 : i32 to vector<2x64x64xi32>
    %51 = arith.select %47, %49, %50 : vector<2x64x64xi1>, vector<2x64x64xi32>
    %cst_19 = arith.constant dense<2147483647> : vector<2x64xi32>
    %52 = vector.multi_reduction <minsi>, %51, %cst_19 [2] : vector<2x64x64xi32> to vector<2x64xi32>
    %53 = vector.shape_cast %52 : vector<2x64xi32> to vector<2x64x1xi32>
    %54 = vector.shape_cast %53 : vector<2x64x1xi32> to vector<2x64xi32>
    %c0_20 = arith.constant 0 : index
    %c2 = arith.constant 2 : index
    %c0_21 = arith.constant 0 : index
    %55 = vector.load %arg4[%c0_20, %c2, %c0_21] : memref<2x4x64xi32, #tpu.memory_space<vmem>>, vector<2x1x64xi32>
    %56 = vector.shape_cast %55 : vector<2x1x64xi32> to vector<2x64xi32>
    %57 = vector.shape_cast %54 : vector<2x64xi32> to vector<2x1x64xi32>
    tpu.vector_store %arg4[%c0_20, %c2, %c0_21], %57 {strides = array<i32>} : memref<2x4x64xi32, #tpu.memory_space<vmem>>, vector<2x1x64xi32>,
    %58 = vector.shape_cast %3 : vector<64x64xi32> to vector<1x64x64xi32>
    %59 = vector.broadcast %58 : vector<1x64x64xi32> to vector<2x64x64xi32>
    %60 = vector.broadcast %53 : vector<2x64x1xi32> to vector<2x64x64xi32>
    %61 = arith.cmpi eq, %59, %60 : vector<2x64x64xi32>
    %cst_22 = arith.constant 0xFF800000 : f32
    %62 = vector.broadcast %cst_22 : f32 to vector<2x64x64xf32>
    %63 = arith.select %61, %62, %43 : vector<2x64x64xi1>, vector<2x64x64xf32>
    %cst_23 = arith.constant dense<0xFF800000> : vector<2x64xf32>
    %64 = vector.multi_reduction <maximumf>, %63, %cst_23 [2] : vector<2x64x64xf32> to vector<2x64xf32>
    %65 = vector.shape_cast %64 : vector<2x64xf32> to vector<2x64x1xf32>
    %66 = vector.broadcast %65 : vector<2x64x1xf32> to vector<2x64x64xf32>
    %67 = arith.cmpf oeq, %63, %66 : vector<2x64x64xf32>
    %c64_i32_24 = arith.constant 64 : i32
    %68 = vector.shape_cast %3 : vector<64x64xi32> to vector<1x64x64xi32>
    %69 = vector.broadcast %68 : vector<1x64x64xi32> to vector<2x64x64xi32>
    %70 = vector.broadcast %c64_i32_24 : i32 to vector<2x64x64xi32>
    %71 = arith.select %67, %69, %70 : vector<2x64x64xi1>, vector<2x64x64xi32>
    %cst_25 = arith.constant dense<2147483647> : vector<2x64xi32>
    %72 = vector.multi_reduction <minsi>, %71, %cst_25 [2] : vector<2x64x64xi32> to vector<2x64xi32>
    %73 = vector.shape_cast %72 : vector<2x64xi32> to vector<2x64x1xi32>
    %74 = vector.shape_cast %73 : vector<2x64x1xi32> to vector<2x64xi32>
    %c0_26 = arith.constant 0 : index
    %c3 = arith.constant 3 : index
    %c0_27 = arith.constant 0 : index
    %75 = vector.load %arg4[%c0_26, %c3, %c0_27] : memref<2x4x64xi32, #tpu.memory_space<vmem>>, vector<2x1x64xi32>
    %76 = vector.shape_cast %75 : vector<2x1x64xi32> to vector<2x64xi32>
    %77 = vector.shape_cast %74 : vector<2x64xi32> to vector<2x1x64xi32>
    tpu.vector_store %arg4[%c0_26, %c3, %c0_27], %77 {strides = array<i32>} : memref<2x4x64xi32, #tpu.memory_space<vmem>>, vector<2x1x64xi32>,
    %cst_28 = arith.constant 1.000000e+00 : f32
    %78 = vector.broadcast %cst_28 : f32 to vector<2x64x1xf32>
    %79 = arith.subf %25, %5 : vector<2x64x1xf32>
    %cst_29 = arith.constant 0.176776692 : f32
    %80 = vector.broadcast %cst_29 : f32 to vector<2x64x1xf32>
    %81 = arith.mulf %80, %79 : vector<2x64x1xf32>
    %82 = math.exp %81 : vector<2x64x1xf32>
    %83 = arith.addf %78, %82 : vector<2x64x1xf32>
    %84 = arith.subf %45, %5 : vector<2x64x1xf32>
    %cst_30 = arith.constant 0.176776692 : f32
    %85 = vector.broadcast %cst_30 : f32 to vector<2x64x1xf32>
    %86 = arith.mulf %85, %84 : vector<2x64x1xf32>
    %87 = math.exp %86 : vector<2x64x1xf32>
    %88 = arith.addf %83, %87 : vector<2x64x1xf32>
    %89 = arith.subf %65, %5 : vector<2x64x1xf32>
    %cst_31 = arith.constant 0.176776692 : f32
    %90 = vector.broadcast %cst_31 : f32 to vector<2x64x1xf32>
    %91 = arith.mulf %90, %89 : vector<2x64x1xf32>
    %92 = math.exp %91 : vector<2x64x1xf32>
    %93 = arith.addf %88, %92 : vector<2x64x1xf32>
    %cst_32 = arith.constant 1.000000e+00 : f32
    %94 = vector.broadcast %cst_32 : f32 to vector<2x64x1xf32>
    %95 = arith.divf %94, %93 : vector<2x64x1xf32>
    %96 = arith.mulf %78, %95 : vector<2x64x1xf32>
    %97 = vector.shape_cast %96 : vector<2x64x1xf32> to vector<2x64xf32>
    %c0_33 = arith.constant 0 : index
    %c0_34 = arith.constant 0 : index
    %c0_35 = arith.constant 0 : index
    %98 = vector.load %arg3[%c0_33, %c0_34, %c0_35] : memref<2x4x64xf32, #tpu.memory_space<vmem>>, vector<2x1x64xf32>
    %99 = vector.shape_cast %98 : vector<2x1x64xf32> to vector<2x64xf32>
    %100 = vector.shape_cast %97 : vector<2x64xf32> to vector<2x1x64xf32>
    tpu.vector_store %arg3[%c0_33, %c0_34, %c0_35], %100 {strides = array<i32>} : memref<2x4x64xf32, #tpu.memory_space<vmem>>, vector<2x1x64xf32>,
    %101 = arith.mulf %82, %95 : vector<2x64x1xf32>
    %102 = vector.shape_cast %101 : vector<2x64x1xf32> to vector<2x64xf32>
    %c0_36 = arith.constant 0 : index
    %c1_37 = arith.constant 1 : index
    %c0_38 = arith.constant 0 : index
    %103 = vector.load %arg3[%c0_36, %c1_37, %c0_38] : memref<2x4x64xf32, #tpu.memory_space<vmem>>, vector<2x1x64xf32>
    %104 = vector.shape_cast %103 : vector<2x1x64xf32> to vector<2x64xf32>
    %105 = vector.shape_cast %102 : vector<2x64xf32> to vector<2x1x64xf32>
    tpu.vector_store %arg3[%c0_36, %c1_37, %c0_38], %105 {strides = array<i32>} : memref<2x4x64xf32, #tpu.memory_space<vmem>>, vector<2x1x64xf32>,
    %106 = arith.mulf %87, %95 : vector<2x64x1xf32>
    %107 = vector.shape_cast %106 : vector<2x64x1xf32> to vector<2x64xf32>
    %c0_39 = arith.constant 0 : index
    %c2_40 = arith.constant 2 : index
    %c0_41 = arith.constant 0 : index
    %108 = vector.load %arg3[%c0_39, %c2_40, %c0_41] : memref<2x4x64xf32, #tpu.memory_space<vmem>>, vector<2x1x64xf32>
    %109 = vector.shape_cast %108 : vector<2x1x64xf32> to vector<2x64xf32>
    %110 = vector.shape_cast %107 : vector<2x64xf32> to vector<2x1x64xf32>
    tpu.vector_store %arg3[%c0_39, %c2_40, %c0_41], %110 {strides = array<i32>} : memref<2x4x64xf32, #tpu.memory_space<vmem>>, vector<2x1x64xf32>,
    %111 = arith.mulf %92, %95 : vector<2x64x1xf32>
    %112 = vector.shape_cast %111 : vector<2x64x1xf32> to vector<2x64xf32>
    %c0_42 = arith.constant 0 : index
    %c3_43 = arith.constant 3 : index
    %c0_44 = arith.constant 0 : index
    %113 = vector.load %arg3[%c0_42, %c3_43, %c0_44] : memref<2x4x64xf32, #tpu.memory_space<vmem>>, vector<2x1x64xf32>
    %114 = vector.shape_cast %113 : vector<2x1x64xf32> to vector<2x64xf32>
    %115 = vector.shape_cast %112 : vector<2x64xf32> to vector<2x1x64xf32>
    tpu.vector_store %arg3[%c0_42, %c3_43, %c0_44], %115 {strides = array<i32>} : memref<2x4x64xf32, #tpu.memory_space<vmem>>, vector<2x1x64xf32>,
    return
  }
  func.func @transform_0(%arg0: i32) -> (i32, i32, i32) {
    %c0_i32 = arith.constant 0 : i32
    %c0_i32_0 = arith.constant 0 : i32
    %c0_i32_1 = arith.constant 0 : i32
    return %arg0, %c0_i32, %c0_i32_0 : i32, i32, i32
  }
  func.func @transform_1(%arg0: i32) -> (i32, i32, i32) {
    %c0_i32 = arith.constant 0 : i32
    %c0_i32_0 = arith.constant 0 : i32
    %c0_i32_1 = arith.constant 0 : i32
    return %arg0, %c0_i32, %c0_i32_0 : i32, i32, i32
  }
  func.func @transform_2(%arg0: i32) -> (i32, i32, i32) {
    %c0_i32 = arith.constant 0 : i32
    %c0_i32_0 = arith.constant 0 : i32
    %c0_i32_1 = arith.constant 0 : i32
    return %arg0, %c0_i32, %c0_i32_0 : i32, i32, i32
  }
  func.func @transform_3(%arg0: i32) -> (i32, i32, i32) {
    %c0_i32 = arith.constant 0 : i32
    %c0_i32_0 = arith.constant 0 : i32
    %c0_i32_1 = arith.constant 0 : i32
    return %arg0, %c0_i32, %c0_i32_0 : i32, i32, i32
  }
}

</mosaic_0001>

<bundles_post_ra>
// kernel: tpu_custom_call.1
= control target key start
LH: loop header
LB: loop body
LE: loop exit
PB: predicated region body
PF: predicated region fallthrough
CT: control target
= control target key end

     0   :  { %9 = vsyncpa [#allocation3], 0  ;;  %vm47_vm0 = vcmask 261120   ;;  %s5539_s0 = inlined_call_operand.vmem [shape: f32[2,64,32], index: 0, kind: input, shape index: {}]   ;;  %s5540_s1 = inlined_call_operand.vmem [shape: f32[2,64,32], index: 1, kind: input, shape index: {}]   ;;  %s5541_s2 = inlined_call_operand.hbm [shape: f32[2,4,64], index: 2, kind: output, shape index: {0}]   ;;  %s5542_s3 = inlined_call_operand.hbm [shape: s32[2,4,64], index: 3, kind: output, shape index: {1}]  }
   0x1   :  { %v38_v0 = vld [vmem:[%s5540_s1 + $0x38] sm:$0xff]  ;;  %v37_v2 = vld [vmem:[%s5540_s1 + $0x30] sm:$0xff]  ;;  %v36_v4 = vld [vmem:[%s5540_s1 + $0x28] sm:$0xff] }
   0x2   :  { %v46_v1 = vld [vmem:[%s5540_s1 + $0x78] sm:$0xff]  ;;  %2876 = vmatprep.subr.msk.mxu0 %vm47_vm0, %v38_v0  ;;  %v45_v3 = vld [vmem:[%s5540_s1 + $0x70] sm:$0xff]  ;;  %v44_v5 = vld [vmem:[%s5540_s1 + $0x68] sm:$0xff] }
   0x3   :  { %2904 = vmatprep.subr.msk.mxu1 %vm47_vm0, %v46_v1  ;;  %2877 = vmatpush3.xpose.msk.msra.mxu0 %vm47_vm0, %v38_v0  ;;  %v15_v6 = vld [vmem:[%s5539_s0] sm:$0xff] }
   0x4   :  { %2905 = vmatpush3.xpose.msk.msra.mxu1 %vm47_vm0, %v46_v1  ;;  %2878 = vmatprep.subr.msk.mxu0 %vm47_vm0, %v37_v2  ;;  %v23_v7 = vld [vmem:[%s5539_s0 + $0x40] sm:$0xff] }
   0x5   :  { %2906 = vmatprep.subr.msk.mxu1 %vm47_vm0, %v45_v3  ;;  %v35_v8 = vld [vmem:[%s5540_s1 + $0x20] sm:$0xff]  ;;  %2892 = vmatprep.mubr.msk.f32.mxu0 %vm47_vm0, %v15_v6 }
   0x6   :  { %v43_v9 = vld [vmem:[%s5540_s1 + $0x60] sm:$0xff]  ;;  %2920 = vmatprep.mubr.msk.f32.mxu1 %vm47_vm0, %v23_v7 }
   0x7   :  { %2879 = vmatpush3.xpose.msk.msra.mxu0 %vm47_vm0, %v37_v2 }
   0x8   :  { %2907 = vmatpush3.xpose.msk.msra.mxu1 %vm47_vm0, %v45_v3  ;;  %2880 = vmatprep.subr.msk.mxu0 %vm47_vm0, %v36_v4 }
   0x9   :  { %2908 = vmatprep.subr.msk.mxu1 %vm47_vm0, %v44_v5 }
   0xb   :  { %2881 = vmatpush3.xpose.msk.msra.mxu0 %vm47_vm0, %v36_v4 }
   0xc   :  { %2909 = vmatpush3.xpose.msk.msra.mxu1 %vm47_vm0, %v44_v5 }
   0xd   :  { %10 = vsyncpa [#allocation5], 0  ;;  %2882 = vmatprep.subr.msk.mxu0 %vm47_vm0, %v35_v8  ;;  %2910 = vmatprep.subr.msk.mxu1 %vm47_vm0, %v43_v9  ;;  %v34_v10 = vld [vmem:[%s5540_s1 + $0x18] sm:$0xff]  ;;  %v33_v12 = vld [vmem:[%s5540_s1 + $0x10] sm:$0xff]  ;;  %vm356_vm1 = vcmask 523264   ;;  %v5543_v0 = vlaneseq }
   0xe   :  { %v42_v11 = vld [vmem:[%s5540_s1 + $0x58] sm:$0xff]  ;;  %v41_v13 = vld [vmem:[%s5540_s1 + $0x50] sm:$0xff]  ;;  %v32_v14 = vld [vmem:[%s5540_s1 + $0x8] sm:$0xff] }
   0xf   :  { %2883 = vmatpush3.xpose.msk.msra.mxu0 %vm47_vm0, %v35_v8  ;;  %v40_v15 = vld [vmem:[%s5540_s1 + $0x48] sm:$0xff]  ;;  %v31_v16 = vld [vmem:[%s5540_s1] sm:$0xff]  ;;  %v17_v20 = vld [vmem:[%s5539_s0 + $0x10] sm:$0xff]  ;;  %v3341_v1 = vand.u32 127, %v5543_v0 }
  0x10   :  { %2911 = vmatpush3.xpose.msk.msra.mxu1 %vm47_vm0, %v43_v9  ;;  %2884 = vmatprep.subr.msk.mxu0 %vm47_vm0, %v34_v10  ;;  %v39_v17 = vld [vmem:[%s5540_s1 + $0x40] sm:$0xff]  ;;  %v16_v18 = vld [vmem:[%s5539_s0 + $0x8] sm:$0xff]  ;;  %v25_v21 = vld [vmem:[%s5539_s0 + $0x50] sm:$0xff] }
  0x11   :  { %2912 = vmatprep.subr.msk.mxu1 %vm47_vm0, %v42_v11  ;;  %v24_v19 = vld [vmem:[%s5539_s0 + $0x48] sm:$0xff]  ;;  %v18_v22 = vld [vmem:[%s5539_s0 + $0x18] sm:$0xff]  ;;  %v19_v24 = vld [vmem:[%s5539_s0 + $0x20] sm:$0xff] }
  0x12   :  { %v26_v23 = vld [vmem:[%s5539_s0 + $0x58] sm:$0xff]  ;;  %v27_v25 = vld [vmem:[%s5539_s0 + $0x60] sm:$0xff]  ;;  %v20_v26 = vld [vmem:[%s5539_s0 + $0x28] sm:$0xff] }
  0x13   :  { %2885 = vmatpush3.xpose.msk.msra.mxu0 %vm47_vm0, %v34_v10  ;;  %v28_v27 = vld [vmem:[%s5539_s0 + $0x68] sm:$0xff]  ;;  %v21_v28 = vld [vmem:[%s5539_s0 + $0x30] sm:$0xff]  ;;  %v22_v30 = vld [vmem:[%s5539_s0 + $0x38] sm:$0xff] }
  0x14   :  { %2913 = vmatpush3.xpose.msk.msra.mxu1 %vm47_vm0, %v42_v11  ;;  %2886 = vmatprep.subr.msk.mxu0 %vm47_vm0, %v33_v12  ;;  %v29_v29 = vld [vmem:[%s5539_s0 + $0x70] sm:$0xff]  ;;  %v30_v31 = vld [vmem:[%s5539_s0 + $0x78] sm:$0xff]  ;;  %s3108_s0 = smov [#allocation2]  }
  0x15   :  { %2914 = vmatprep.subr.msk.mxu1 %vm47_vm0, %v41_v13  ;;  %s2785_s21 = sshll.u32 %s3108_s0, 4  ;;  %s2786_s21 = int_to_ptr.vmem [resolvable:$true] %s2785_s21 }
  0x16   :  { %s3064_s22 = scalar_lea.vmem %s2786_s21, 128  ;;  %p3069_p1 = scmp.lt.s32.totalorder %s2786_s21, %s2786_s21 }
  0x17   :  { %2887 = vmatpush3.xpose.msk.msra.mxu0 %vm47_vm0, %v33_v12  ;;  %p3065_p0 = scmp.ne.s32.totalorder %s2786_s21, %s3064_s22  ;;  %p3070_p2 = scmp.lt.s32.totalorder %s3064_s22, %s3064_s22 }
  0x18   :  { %2915 = vmatpush3.xpose.msk.msra.mxu1 %vm47_vm0, %v41_v13  ;;  %2888 = vmatprep.subr.msk.mxu0 %vm47_vm0, %v32_v14 }
  0x19   :  { %2916 = vmatprep.subr.msk.mxu1 %vm47_vm0, %v40_v15  ;;  %p3071_p3 = por %p3070_p2, %p3069_p1 }
  0x1b   :  { %2889 = vmatpush3.xpose.msk.msra.mxu0 %vm47_vm0, %v32_v14  ;;  %p3072_p4 = pnand %p3071_p3, %p3065_p0 }
  0x1c   :  { %2917 = vmatpush3.xpose.msk.msra.mxu1 %vm47_vm0, %v40_v15  ;;  %2890 = vmatprep.subr.msk.mxu0 %vm47_vm0, %v31_v16 }
  0x1d   :  { %2918 = vmatprep.subr.msk.mxu1 %vm47_vm0, %v39_v17 }
  0x1f   :  { %2891 = vmatpush3.xpose.msk.msra.mxu0 %vm47_vm0, %v31_v16 }
  0x20   :  { %2919 = vmatpush3.xpose.msk.msra.mxu1 %vm47_vm0, %v39_v17 }
  0x22   :  { %2893 = vmatmul.mubr.msk.f32.vlgmr.msra.gmra.mxu0 %vm47_vm0, %v16_v18 }
  0x23   :  { %2921 = vmatmul.mubr.msk.f32.vlgmr.msra.gmra.mxu1 %vm47_vm0, %v24_v19  ;;  %2895 = vmatprep.mubr.msk.f32.mxu0 %vm47_vm0, %v17_v20 }
  0x24   :  { %2923 = vmatprep.mubr.msk.f32.mxu1 %vm47_vm0, %v25_v21 }
  0x26   :  { %2896 = vmatmul.mubr.msk.f32.gmra.mxu0 %vm47_vm0, %v18_v22 }
  0x27   :  { %2924 = vmatmul.mubr.msk.f32.gmra.mxu1 %vm47_vm0, %v26_v23  ;;  %2898 = vmatprep.mubr.msk.f32.mxu0 %vm47_vm0, %v19_v24 }
  0x28   :  { %2926 = vmatprep.mubr.msk.f32.mxu1 %vm47_vm0, %v27_v25 }
  0x2a   :  { %2899 = vmatmul.mubr.msk.f32.gmra.mxu0 %vm47_vm0, %v20_v26 }
  0x2b   :  { %2927 = vmatmul.mubr.msk.f32.gmra.mxu1 %vm47_vm0, %v28_v27  ;;  %2901 = vmatprep.mubr.msk.f32.mxu0 %vm47_vm0, %v21_v28 }
  0x2c   :  { %2929 = vmatprep.mubr.msk.f32.mxu1 %vm47_vm0, %v29_v29 }
  0x2e   :  { %2902 = vmatmul.mubr.msk.f32.gmra.mxu0 %vm47_vm0, %v22_v30 }
  0x2f   :  { %2930 = vmatmul.mubr.msk.f32.gmra.mxu1 %vm47_vm0, %v30_v31 }
  0xe2   :  { %v3276_v32 = vpop.f32.mrf.mxu0 }
  0xe3   :  { %v3278_v33 = vpop.f32.mrf.mxu1  ;;  %v360_v35 = vsel %vm356_vm1, %v3276_v32, -inf }
  0xe4   :  { %v384_v34 = vsel %vm356_vm1, %v3278_v33, -inf  ;;  %361 = vmax.xlane.f32.xlu0 %v360_v35  ;;  %v3284_v36 = vpop.f32.mrf.mxu0 }
  0xe5   :  { %385 = vmax.xlane.f32.xlu1 %v384_v34  ;;  %v3286_v37 = vpop.f32.mrf.mxu1  ;;  %v357_v41 = vsel %vm356_vm1, %v3284_v36, -inf }
  0xe6   :  { %v381_v38 = vsel %vm356_vm1, %v3286_v37, -inf  ;;  %v3290_v39 = vpop.f32.mrf.mxu0 }
  0xe7   :  { %v3292_v40 = vpop.f32.mrf.mxu1  ;;  %v366_v43 = vsel %vm356_vm1, %v3290_v39, -inf }
  0xe8   :  { %358 = vmax.xlane.f32.xlu0 %v357_v41  ;;  %v390_v42 = vsel %vm356_vm1, %v3292_v40, -inf  ;;  %v3300_v44 = vpop.f32.mrf.mxu0 }
  0xe9   :  { %382 = vmax.xlane.f32.xlu1 %v381_v38  ;;  %v3302_v45 = vpop.f32.mrf.mxu1  ;;  %v363_v49 = vsel %vm356_vm1, %v3300_v44, -inf }
  0xea   :  { %v3304_v46 = vpop.f32.mrf.mxu0  ;;  %v387_v48 = vsel %vm356_vm1, %v3302_v45, -inf }
  0xeb   :  { %v3306_v47 = vpop.f32.mrf.mxu1  ;;  %v372_v53 = vsel %vm356_vm1, %v3304_v46, -inf }
  0xec   :  { %367 = vmax.xlane.f32.xlu0 %v366_v43  ;;  %v3312_v50 = vpop.f32.mrf.mxu0  ;;  %v396_v52 = vsel %vm356_vm1, %v3306_v47, -inf }
  0xed   :  { %391 = vmax.xlane.f32.xlu1 %v390_v42  ;;  %v3314_v51 = vpop.f32.mrf.mxu1  ;;  %v369_v57 = vsel %vm356_vm1, %v3312_v50, -inf }
  0xee   :  { %v3322_v55 = vpop.f32.mrf.mxu0  ;;  %v393_v56 = vsel %vm356_vm1, %v3314_v51, -inf }
  0xef   :  { %v3320_v54 = vpop.f32.mrf.mxu1  ;;  %v378_v63 = vsel %vm356_vm1, %v3322_v55, -inf }
  0xf0   :  { %364 = vmax.xlane.f32.xlu0 %v363_v49  ;;  %v3328_v58 = vpop.f32.mrf.mxu0  ;;  %v402_v62 = vsel %vm356_vm1, %v3320_v54, -inf }
  0xf1   :  { %388 = vmax.xlane.f32.xlu1 %v387_v48  ;;  %v3330_v59 = vpop.f32.mrf.mxu1  ;;  %v375_v61 = vsel %vm356_vm1, %v3328_v58, -inf }
  0xf2   :  { %v399_v60 = vsel %vm356_vm1, %v3330_v59, -inf }
  0xf4   :  { %373 = vmax.xlane.f32.xlu0 %v372_v53 }
  0xf5   :  { %397 = vmax.xlane.f32.xlu1 %v396_v52 }
  0xf8   :  { %370 = vmax.xlane.f32.xlu0 %v369_v57 }
  0xf9   :  { %394 = vmax.xlane.f32.xlu1 %v393_v56 }
  0xfc   :  { %376 = vmax.xlane.f32.xlu0 %v375_v61 }
  0xfd   :  { %400 = vmax.xlane.f32.xlu1 %v399_v60 }
 0x100   :  { %379 = vmax.xlane.f32.xlu0 %v378_v63 }
 0x101   :  { %403 = vmax.xlane.f32.xlu1 %v402_v62 }
 0x16d   :  { %v3345_v3 = vpop.xlane.xlu0 %361 }
 0x16e   :  { %v3343_v2 = vpop.xlane.xlu1 %385  ;;  %5683 = vst [vmem:[#allocation9_spill] sm:$0xff] %v3345_v3  ;;  %vm406_vm2 = vcmp.eq.f32.partialorder %v3276_v32, %v3345_v3 }
 0x16f   :  { %5682 = vst [vmem:[#allocation8_spill] sm:$0xff] %v3343_v2  ;;  %vm414_vm3 = vcmp.eq.f32.partialorder %v3278_v33, %v3343_v2  ;;  %v422_v4 = vsel %vm406_vm2, %v3341_v1, 64 }
 0x170   :  { %v430_v5 = vsel %vm414_vm3, %v3341_v1, 64  ;;  %v3354_v6 = vsel %vm356_vm1, %v422_v4, 2147483647 }
 0x171   :  { %v3357_v7 = vsel %vm356_vm1, %v430_v5, 2147483647  ;;  %v3361_v9 = vpop.xlane.xlu0 %358  ;;  %v454_v10 = vshra.s32 %v3354_v6, 16 }
 0x172   :  { %v3359_v8 = vpop.xlane.xlu1 %382  ;;  %5685 = vst [vmem:[#allocation11_spill] sm:$0xff] %v3361_v9  ;;  %vm405_vm4 = vcmp.eq.f32.partialorder %v3284_v36, %v3361_v9  ;;  %v574_v12 = vshra.s32 %v3357_v7, 16 }
 0x173   :  { %5684 = vst [vmem:[#allocation10_spill] sm:$0xff] %v3359_v8  ;;  %vm413_vm5 = vcmp.eq.f32.partialorder %v3286_v37, %v3359_v8  ;;  %v3368_v11 = vcvt.s32.f32 %v454_v10  ;;  %v421_v13 = vsel %vm405_vm4, %v3341_v1, 64 }
 0x174   :  { %v429_v14 = vsel %vm413_vm5, %v3341_v1, 64  ;;  %v3374_v15 = vsel %vm356_vm1, %v421_v13, 2147483647  ;;  %v3390_v21 = vcvt.s32.f32 %v574_v12 }
 0x175   :  { %v3377_v16 = vsel %vm356_vm1, %v429_v14, 2147483647  ;;  %457 = vmin.xlane.f32.xlu1 %v3368_v11  ;;  %v3382_v18 = vpop.xlane.xlu0 %367  ;;  %v439_v19 = vshra.s32 %v3374_v15, 16 }
 0x176   :  { %v3379_v17 = vpop.xlane.xlu1 %391  ;;  %5687 = vst [vmem:[#allocation13_spill] sm:$0xff] %v3382_v18  ;;  %v559_v20 = vshra.s32 %v3377_v16, 16  ;;  %vm408_vm7 = vcmp.eq.f32.partialorder %v3290_v39, %v3382_v18  ;;  %v558_v8 = vand.u32 65535, %v3377_v16 }
 0x177   :  { %5686 = vst [vmem:[#allocation12_spill] sm:$0xff] %v3379_v17  ;;  %vm416_vm6 = vcmp.eq.f32.partialorder %v3292_v40, %v3379_v17  ;;  %v3392_v22 = vcvt.s32.f32 %v439_v19  ;;  %v424_v24 = vsel %vm408_vm7, %v3341_v1, 64 }
 0x178   :  { %v432_v23 = vsel %vm416_vm6, %v3341_v1, 64  ;;  %v3400_v26 = vsel %vm356_vm1, %v424_v24, 2147483647  ;;  %v3409_v30 = vcvt.s32.f32 %v559_v20 }
 0x179   :  { %v3397_v25 = vsel %vm356_vm1, %v432_v23, 2147483647  ;;  %577 = vmin.xlane.f32.xlu1 %v3390_v21  ;;  %v3405_v28 = vpop.xlane.xlu0 %364  ;;  %442 = vmin.xlane.f32.xlu0 %v3392_v22  ;;  %v484_v35 = vshra.s32 %v3400_v26, 16  ;;  %v483_v16 = vand.u32 65535, %v3400_v26 }
 0x17a   :  { %v3402_v27 = vpop.xlane.xlu1 %388  ;;  %5689 = vst [vmem:[#allocation15_spill] sm:$0xff] %v3405_v28  ;;  %v604_v29 = vshra.s32 %v3397_v25, 16  ;;  %vm407_vm9 = vcmp.eq.f32.partialorder %v3300_v44, %v3405_v28 }
 0x17b   :  { %5688 = vst [vmem:[#allocation14_spill] sm:$0xff] %v3402_v27  ;;  %vm415_vm8 = vcmp.eq.f32.partialorder %v3302_v45, %v3402_v27  ;;  %v423_v38 = vsel %vm407_vm9, %v3341_v1, 64  ;;  %v3440_v56 = vcvt.s32.f32 %v484_v35 }
 0x17c   :  { %v3415_v31 = vcvt.s32.f32 %v604_v29  ;;  %v431_v34 = vsel %vm415_vm8, %v3341_v1, 64  ;;  %v3424_v42 = vsel %vm356_vm1, %v423_v38, 2147483647 }
 0x17d   :  { %v3421_v41 = vsel %vm356_vm1, %v431_v34, 2147483647  ;;  %v3429_v48 = vpop.xlane.xlu0 %373  ;;  %562 = vmin.xlane.f32.xlu0 %v3409_v30  ;;  %v469_v52 = vshra.s32 %v3424_v42, 16  ;;  %v468_v26 = vand.u32 65535, %v3424_v42 }
 0x17e   :  { %v3426_v43 = vpop.xlane.xlu1 %397  ;;  %607 = vmin.xlane.f32.xlu1 %v3415_v31  ;;  %5691 = vst [vmem:[#allocation17_spill] sm:$0xff] %v3429_v48  ;;  %v589_v49 = vshra.s32 %v3421_v41, 16  ;;  %vm410_vm11 = vcmp.eq.f32.partialorder %v3304_v46, %v3429_v48 }
 0x17f   :  { %5690 = vst [vmem:[#allocation16_spill] sm:$0xff] %v3426_v43  ;;  %vm418_vm10 = vcmp.eq.f32.partialorder %v3306_v47, %v3426_v43  ;;  %v426_v60 = vsel %vm410_vm11, %v3341_v1, 64  ;;  %v3457_v10 = vcvt.s32.f32 %v469_v52 }
 0x180   :  { %v3438_v53 = vcvt.s32.f32 %v589_v49  ;;  %v434_v57 = vsel %vm418_vm10, %v3341_v1, 64  ;;  %v3448_v62 = vsel %vm356_vm1, %v426_v60, 2147483647 }
 0x181   :  { %v3445_v61 = vsel %vm356_vm1, %v434_v57, 2147483647  ;;  %v3453_v4 = vpop.xlane.xlu0 %370  ;;  %487 = vmin.xlane.f32.xlu0 %v3440_v56  ;;  %v514_v14 = vshra.s32 %v3448_v62, 16  ;;  %v513_v42 = vand.u32 65535, %v3448_v62 }
 0x182   :  { %v3450_v63 = vpop.xlane.xlu1 %394  ;;  %592 = vmin.xlane.f32.xlu1 %v3438_v53  ;;  %5693 = vst [vmem:[#allocation19_spill] sm:$0xff] %v3453_v4  ;;  %v634_v5 = vshra.s32 %v3445_v61, 16  ;;  %vm409_vm13 = vcmp.eq.f32.partialorder %v3312_v50, %v3453_v4 }
 0x183   :  { %5692 = vst [vmem:[#allocation18_spill] sm:$0xff] %v3450_v63  ;;  %vm417_vm12 = vcmp.eq.f32.partialorder %v3314_v51, %v3450_v63  ;;  %v425_v19 = vsel %vm409_vm13, %v3341_v1, 64  ;;  %v3488_v49 = vcvt.s32.f32 %v514_v14 }
 0x184   :  { %v3463_v12 = vcvt.s32.f32 %v634_v5  ;;  %v433_v13 = vsel %vm417_vm12, %v3341_v1, 64  ;;  %v3472_v23 = vsel %vm356_vm1, %v425_v19, 2147483647 }
 0x185   :  { %v3469_v20 = vsel %vm356_vm1, %v433_v13, 2147483647  ;;  %472 = vmin.xlane.f32.xlu0 %v3457_v10  ;;  %v3478_v29 = vpop.xlane.xlu0 %376  ;;  %v499_v35 = vshra.s32 %v3472_v23, 16  ;;  %v498_v62 = vand.u32 65535, %v3472_v23 }
 0x186   :  { %v3474_v24 = vpop.xlane.xlu1 %400  ;;  %637 = vmin.xlane.f32.xlu1 %v3463_v12  ;;  %5695 = vst [vmem:[#allocation21_spill] sm:$0xff] %v3478_v29  ;;  %v619_v34 = vshra.s32 %v3469_v20, 16  ;;  %vm411_vm15 = vcmp.eq.f32.partialorder %v3328_v58, %v3478_v29 }
 0x187   :  { %5694 = vst [vmem:[#allocation20_spill] sm:$0xff] %v3474_v24  ;;  %vm419_vm14 = vcmp.eq.f32.partialorder %v3330_v59, %v3474_v24  ;;  %v427_v57 = vsel %vm411_vm15, %v3341_v1, 64 }
 0x188   :  { %v3486_v38 = vcvt.s32.f32 %v619_v34  ;;  %v435_v52 = vsel %vm419_vm14, %v3341_v1, 64  ;;  %v3496_v5 = vsel %vm356_vm1, %v427_v57, 2147483647  ;;  %v3505_v34 = vcvt.s32.f32 %v499_v35 }
 0x189   :  { %v3493_v60 = vsel %vm356_vm1, %v435_v52, 2147483647  ;;  %517 = vmin.xlane.f32.xlu0 %v3488_v49  ;;  %v3502_v19 = vpop.xlane.xlu0 %379  ;;  %v529_v0 = vshra.s32 %v3496_v5, 16  ;;  %v528_v23 = vand.u32 65535, %v3496_v5 }
 0x18a   :  { %v3498_v13 = vpop.xlane.xlu1 %403  ;;  %622 = vmin.xlane.f32.xlu1 %v3486_v38  ;;  %5697 = vst [vmem:[#allocation23_spill] sm:$0xff] %v3502_v19  ;;  %v649_v14 = vshra.s32 %v3493_v60, 16  ;;  %vm412_vm2 = vcmp.eq.f32.partialorder %v3322_v55, %v3502_v19 }
 0x18b   :  { %5696 = vst [vmem:[#allocation22_spill] sm:$0xff] %v3498_v13  ;;  %vm420_vm0 = vcmp.eq.f32.partialorder %v3320_v54, %v3498_v13  ;;  %v428_v29 = vsel %vm412_vm2, %v3341_v1, 64  ;;  %v3527_v13 = vcvt.s32.f32 %v529_v0  ;;  %v438_v0 = vand.u32 65535, %v3374_v15 }
 0x18c   :  { %v3511_v52 = vcvt.s32.f32 %v649_v14  ;;  %v436_v57 = vsel %vm420_vm0, %v3341_v1, 64  ;;  %v3520_v35 = vsel %vm356_vm1, %v428_v29, 2147483647  ;;  %v453_v29 = vand.u32 65535, %v3354_v6 }
 0x18d   :  { %v3517_v4 = vsel %vm356_vm1, %v436_v57, 2147483647  ;;  %502 = vmin.xlane.f32.xlu0 %v3505_v34  ;;  %v544_v24 = vshra.s32 %v3520_v35, 16  ;;  %v440_v27 = vcvt.s32.f32 %v438_v0  ;;  %v603_v6 = vand.u32 65535, %v3397_v25 }
 0x18e   :  { %652 = vmin.xlane.f32.xlu1 %v3511_v52  ;;  %v664_v19 = vshra.s32 %v3517_v4, 16  ;;  %v455_v63 = vcvt.s32.f32 %v453_v29  ;;  %v560_v29 = vcvt.s32.f32 %v558_v8  ;;  %v588_v25 = vand.u32 65535, %v3421_v41 }
 0x18f   :  { %v3532_v57 = vcvt.s32.f32 %v544_v24  ;;  %v485_v8 = vcvt.s32.f32 %v483_v16  ;;  %v633_v41 = vand.u32 65535, %v3445_v61  ;;  %v618_v61 = vand.u32 65535, %v3469_v20 }
 0x190   :  { %v3525_v14 = vcvt.s32.f32 %v664_v19  ;;  %v573_v19 = vand.u32 65535, %v3357_v7  ;;  %v515_v16 = vcvt.s32.f32 %v513_v42  ;;  %v648_v20 = vand.u32 65535, %v3493_v60 }
 0x191   :  { %532 = vmin.xlane.f32.xlu0 %v3527_v13  ;;  %v663_v60 = vand.u32 65535, %v3517_v4  ;;  %v543_v4 = vand.u32 65535, %v3520_v35 }
 0x192   :  { %667 = vmin.xlane.f32.xlu1 %v3525_v14  ;;  %v575_v18 = vcvt.s32.f32 %v573_v19  ;;  %v590_v19 = vcvt.s32.f32 %v588_v25  ;;  %v620_v25 = vcvt.s32.f32 %v618_v61  ;;  %v5698_v61 = vlaneseq }
 0x194   :  { %v3617_v42 = vshrl.u32 %v5698_v61, 7 }
 0x195   :  { %547 = vmin.xlane.f32.xlu0 %v3532_v57 }
 0x1fe   :  { %v3536_v48 = vpop.xlane.xlu1 %457 }
 0x1ff   :  { %vm459_vm3 = vcmp.eq.f32.partialorder %v3368_v11, %v3536_v48  ;;  %v464_v35 = vcvt.f32.s32 %v3536_v48 }
 0x200   :  { %v460_v28 = vsel %vm459_vm3, %v455_v63, inf  ;;  %v605_v63 = vcvt.s32.f32 %v603_v6 }
 0x201   :  { %461 = vmin.xlane.f32.xlu1 %v460_v28 }
 0x202   :  { %v3542_v43 = vpop.xlane.xlu1 %577  ;;  %v3544_v24 = vpop.xlane.xlu0 %442 }
 0x203   :  { %vm579_vm4 = vcmp.eq.f32.partialorder %v3390_v21, %v3542_v43  ;;  %vm444_vm5 = vcmp.eq.f32.partialorder %v3392_v22, %v3544_v24 }
 0x204   :  { %v580_v7 = vsel %vm579_vm4, %v575_v18, inf  ;;  %v445_v11 = vsel %vm444_vm5, %v440_v27, inf  ;;  %vm686_vm5 = vcmask 130112  }
 0x205   :  { %581 = vmin.xlane.f32.xlu1 %v580_v7  ;;  %446 = vmin.xlane.f32.xlu0 %v445_v11  ;;  %v635_v7 = vcvt.s32.f32 %v633_v41  ;;  %v470_v11 = vcvt.s32.f32 %v468_v26 }
 0x206   :  { %v3554_v28 = vpop.xlane.xlu0 %562 }
 0x207   :  { %v3552_v15 = vpop.xlane.xlu1 %607  ;;  %vm564_vm7 = vcmp.eq.f32.partialorder %v3409_v30, %v3554_v28 }
 0x208   :  { %vm609_vm6 = vcmp.eq.f32.partialorder %v3415_v31, %v3552_v15  ;;  %v565_v21 = vsel %vm564_vm7, %v560_v29, inf }
 0x209   :  { %v610_v18 = vsel %vm609_vm6, %v605_v63, inf  ;;  %566 = vmin.xlane.f32.xlu0 %v565_v21 }
 0x20a   :  { %611 = vmin.xlane.f32.xlu1 %v610_v18  ;;  %v3564_v27 = vpop.xlane.xlu0 %487 }
 0x20b   :  { %v3562_v22 = vpop.xlane.xlu1 %592  ;;  %vm489_vm9 = vcmp.eq.f32.partialorder %v3440_v56, %v3564_v27 }
 0x20c   :  { %vm594_vm8 = vcmp.eq.f32.partialorder %v3438_v53, %v3562_v22  ;;  %v490_v31 = vsel %vm489_vm9, %v485_v8, inf  ;;  %v500_v8 = vcvt.s32.f32 %v498_v62  ;;  %v465_v62 = vshll.u32 %v464_v35, 16 }
 0x20d   :  { %v595_v30 = vsel %vm594_vm8, %v590_v19, inf  ;;  %491 = vmin.xlane.f32.xlu0 %v490_v31  ;;  %v650_v19 = vcvt.s32.f32 %v648_v20  ;;  %v530_v31 = vcvt.s32.f32 %v528_v23  ;;  %vm693_vm8 = vcmask 195712  }
 0x20e   :  { %596 = vmin.xlane.f32.xlu1 %v595_v30  ;;  %v3574_v6 = vpop.xlane.xlu0 %472  ;;  %v665_v30 = vcvt.s32.f32 %v663_v60 }
 0x20f   :  { %v3572_v0 = vpop.xlane.xlu1 %637  ;;  %vm474_vm11 = vcmp.eq.f32.partialorder %v3457_v10, %v3574_v6 }
 0x210   :  { %vm639_vm10 = vcmp.eq.f32.partialorder %v3463_v12, %v3572_v0  ;;  %v475_v56 = vsel %vm474_vm11, %v470_v11, inf  ;;  %v644_v20 = vcvt.f32.s32 %v3572_v0  ;;  %vm700_vm11 = vcmask 261312  }
 0x211   :  { %v640_v53 = vsel %vm639_vm10, %v635_v7, inf  ;;  %476 = vmin.xlane.f32.xlu0 %v475_v56  ;;  %v545_v7 = vcvt.s32.f32 %v543_v4  ;;  %v614_v56 = vcvt.f32.s32 %v3552_v15 }
 0x212   :  { %641 = vmin.xlane.f32.xlu1 %v640_v53  ;;  %v3584_v29 = vpop.xlane.xlu0 %517  ;;  %v449_v53 = vcvt.f32.s32 %v3544_v24 }
 0x213   :  { %v3582_v63 = vpop.xlane.xlu1 %622  ;;  %vm519_vm13 = vcmp.eq.f32.partialorder %v3488_v49, %v3584_v29  ;;  %v524_v0 = vcvt.f32.s32 %v3584_v29 }
 0x214   :  { %vm624_vm12 = vcmp.eq.f32.partialorder %v3486_v38, %v3582_v63  ;;  %v520_v12 = vsel %vm519_vm13, %v515_v16, inf  ;;  %v599_v16 = vcvt.f32.s32 %v3562_v22  ;;  %v450_v24 = vshll.u32 %v449_v53, 16 }
 0x215   :  { %v625_v10 = vsel %vm624_vm12, %v620_v25, inf  ;;  %521 = vmin.xlane.f32.xlu0 %v520_v12  ;;  %v569_v25 = vcvt.f32.s32 %v3554_v28  ;;  %v629_v22 = vcvt.f32.s32 %v3582_v63  ;;  %vm707_vm13 = vcmask 326912  }
 0x216   :  { %626 = vmin.xlane.f32.xlu1 %v625_v10  ;;  %v3594_v21 = vpop.xlane.xlu0 %502  ;;  %v479_v10 = vcvt.f32.s32 %v3574_v6  ;;  %v600_v60 = vshll.u32 %v599_v16, 16 }
 0x217   :  { %v3592_v18 = vpop.xlane.xlu1 %652  ;;  %vm504_vm15 = vcmp.eq.f32.partialorder %v3505_v34, %v3594_v21  ;;  %v570_v15 = vshll.u32 %v569_v25, 16  ;;  %v509_v63 = vcvt.f32.s32 %v3594_v21 }
 0x218   :  { %vm654_vm14 = vcmp.eq.f32.partialorder %v3511_v52, %v3592_v18  ;;  %v505_v49 = vsel %vm504_vm15, %v500_v8, inf  ;;  %v615_v8 = vshll.u32 %v614_v56, 16  ;;  %v659_v6 = vcvt.f32.s32 %v3592_v18 }
 0x219   :  { %v655_v38 = vsel %vm654_vm14, %v650_v19, inf  ;;  %506 = vmin.xlane.f32.xlu0 %v505_v49  ;;  %v688_v18 = vadd.s32 4294967280, %v3341_v1  ;;  %vm714_vm15 = vcmask 392512  }
 0x21a   :  { %656 = vmin.xlane.f32.xlu1 %v655_v38  ;;  %v3604_v26 = vpop.xlane.xlu0 %532  ;;  %v3662_v21 = vshll.u32 %v659_v6, 16 }
 0x21b   :  { %v3602_v41 = vpop.xlane.xlu1 %667  ;;  %vm534_vm2 = vcmp.eq.f32.partialorder %v3527_v13, %v3604_v26  ;;  %v584_v13 = vcvt.f32.s32 %v3542_v43  ;;  %v539_v25 = vcvt.f32.s32 %v3604_v26 }
 0x21c   :  { %vm669_vm0 = vcmp.eq.f32.partialorder %v3525_v14, %v3602_v41  ;;  %v535_v34 = vsel %vm534_vm2, %v530_v31, inf  ;;  %v681_v14 = vadd.s32 4294967288, %v3341_v1  ;;  %v3639_v31 = vshll.u32 %v479_v10, 16 }
 0x21d   :  { %v670_v5 = vsel %vm669_vm0, %v665_v30, inf  ;;  %536 = vmin.xlane.f32.xlu0 %v535_v34  ;;  %v585_v19 = vshll.u32 %v584_v13, 16  ;;  %v695_v30 = vadd.s32 4294967272, %v3341_v1  ;;  %v3646_v34 = vsub.s32 %v3341_v1, %v3617_v42 }
 0x21e   :  { %671 = vmin.xlane.f32.xlu1 %v670_v5  ;;  %v3611_v52 = vpop.xlane.xlu0 %547  ;;  %v3629_v12 = vsub.s32 %v681_v14, %v3617_v42  ;;  %v3660_v14 = vshll.u32 %v524_v0, 16  ;;  %v674_v13 = vcvt.f32.s32 %v3602_v41  ;;  %v3675_v41 = vsub.s32 %v688_v18, %v3617_v42 }
 0x21f   :  { %vm549_vm3 = vcmp.eq.f32.partialorder %v3532_v57, %v3611_v52  ;;  %v494_v57 = vcvt.f32.s32 %v3564_v27  ;;  %v3634_v27 = vshll.u32 %v644_v20, 16  ;;  %5699 = vst [vmem:[#allocation24_spill] sm:$0xff] %v3646_v34  ;;  %v709_v20 = vadd.s32 4294967256, %v3341_v1 }
 0x220   :  { %v550_v11 = vsel %vm549_vm3, %v545_v7, inf  ;;  %v3652_v7 = vshll.u32 %v629_v22, 16  ;;  %5701 = vst [vmem:[#allocation26_spill] sm:$0xff] %v3675_v41  ;;  %vm721_vm0 = vcmask 458112  }
 0x221   :  { %551 = vmin.xlane.f32.xlu0 %v550_v11  ;;  %v495_v28 = vshll.u32 %v494_v57, 16 }
 0x28a   :  { %v462_v48 = vpop.xlane.xlu1 %461 }
 0x28b   :  { %v463_v43 = vcvt.f32.s32 %v462_v48  ;;  %v3670_v48 = vshll.u32 %v509_v63, 16 }
 0x28d   :  { %v3632_v23 = vadd.s32 %v465_v62, %v463_v43  ;;  %v554_v62 = vcvt.f32.s32 %v3611_v52  ;;  %v3695_v52 = vshll.u32 %v539_v25, 16 }
 0x28e   :  { %v582_v38 = vpop.xlane.xlu1 %581  ;;  %v447_v49 = vpop.xlane.xlu0 %446 }
 0x28f   :  { %v583_v4 = vcvt.f32.s32 %v582_v38  ;;  %v448_v5 = vcvt.f32.s32 %v447_v49  ;;  %vm773_vm4 = vcmp.eq.s32.totalorder %v3341_v1, %v3632_v23  ;;  %v702_v38 = vadd.s32 4294967264, %v3341_v1 }
 0x290   :  { %v3649_v29 = vsel %vm773_vm4, -inf, %v3276_v32  ;;  %v3666_v32 = vsub.s32 %v695_v30, %v3617_v42  ;;  %v3707_v30 = vshll.u32 %v554_v62, 16  ;;  %vm728_vm4 = vcmask 523712  }
 0x291   :  { %v3654_v11 = vadd.s32 %v585_v19, %v583_v4  ;;  %v3656_v35 = vadd.s32 %v450_v24, %v448_v5  ;;  %v807_v61 = vsel %vm356_vm1, %v3649_v29, -inf  ;;  %v3687_v19 = vshll.u32 %v674_v13, 16 }
 0x292   :  { %808 = vmax.xlane.f32.xlu1 %v807_v61  ;;  %5700 = vst [vmem:[#allocation25_spill] sm:$0xff] %v3666_v32  ;;  %v567_v56 = vpop.xlane.xlu0 %566  ;;  %v3722_v25 = vsub.s32 %v702_v38, %v3617_v42 }
 0x293   :  { %v612_v53 = vpop.xlane.xlu1 %611  ;;  %v568_v57 = vcvt.f32.s32 %v567_v56  ;;  %vm781_vm6 = vcmp.eq.s32.totalorder %v3341_v1, %v3654_v11  ;;  %vm772_vm7 = vcmp.eq.s32.totalorder %v3341_v1, %v3656_v35 }
 0x294   :  { %v613_v16 = vcvt.f32.s32 %v612_v53  ;;  %v3685_v43 = vsel %vm781_vm6, -inf, %v3278_v33  ;;  %v3692_v0 = vsel %vm772_vm7, -inf, %v3284_v36  ;;  %v716_v36 = vadd.s32 4294967248, %v3341_v1  ;;  %5703 = vst [vmem:[#allocation28_spill] sm:$0xff] %v3722_v25 }
 0x295   :  { %v3682_v26 = vadd.s32 %v570_v15, %v568_v57  ;;  %v831_v24 = vsel %vm356_vm1, %v3685_v43, -inf  ;;  %v804_v33 = vsel %vm356_vm1, %v3692_v0, -inf  ;;  %v3700_v15 = vsub.s32 %v709_v20, %v3617_v42 }
 0x296   :  { %v3680_v10 = vadd.s32 %v615_v8, %v613_v16  ;;  %v492_v6 = vpop.xlane.xlu0 %491  ;;  %832 = vmax.xlane.f32.xlu1 %v831_v24  ;;  %805 = vmax.xlane.f32.xlu0 %v804_v33  ;;  %v3735_v57 = vsub.s32 %v716_v36, %v3617_v42  ;;  %vm769_vm7 = vcmask 516096  }
 0x297   :  { %v597_v22 = vpop.xlane.xlu1 %596  ;;  %5702 = vst [vmem:[#allocation27_spill] sm:$0xff] %v3700_v15  ;;  %v493_v49 = vcvt.f32.s32 %v492_v6  ;;  %vm780_vm10 = vcmp.eq.s32.totalorder %v3341_v1, %v3682_v26 }
 0x298   :  { %v598_v8 = vcvt.f32.s32 %v597_v22  ;;  %vm783_vm9 = vcmp.eq.s32.totalorder %v3341_v1, %v3680_v10  ;;  %v3713_v63 = vsel %vm780_vm10, -inf, %v3286_v37  ;;  %5704 = vst [vmem:[#allocation29_spill] sm:$0xff] %v3735_v57 }
 0x299   :  { %v3710_v5 = vsel %vm783_vm9, -inf, %v3292_v40  ;;  %v3715_v18 = vadd.s32 %v495_v28, %v493_v49  ;;  %v828_v53 = vsel %vm356_vm1, %v3713_v63, -inf  ;;  %v680_v40 = vrot.slane %v3656_v35, %v3646_v34 }
 0x29a   :  { %v601_v4 = vadd.s32 %v600_v60, %v598_v8  ;;  %v837_v61 = vsel %vm356_vm1, %v3710_v5, -inf  ;;  %v477_v56 = vpop.xlane.xlu0 %476  ;;  %v685_v28 = vrot.slane %v3632_v23, %v3629_v12  ;;  %829 = vmax.xlane.f32.xlu0 %v828_v53  ;;  %v733_v35 = vrot.slane %v3682_v26, %v3646_v34 }
 0x29b   :  { %v642_v13 = vpop.xlane.xlu1 %641  ;;  %838 = vmax.xlane.f32.xlu1 %v837_v61  ;;  %v478_v60 = vcvt.f32.s32 %v477_v56  ;;  %vm775_vm14 = vcmp.eq.s32.totalorder %v3341_v1, %v3715_v18  ;;  %v723_v26 = vadd.s32 4294967240, %v3341_v1 }
 0x29c   :  { %v643_v37 = vcvt.f32.s32 %v642_v13  ;;  %vm782_vm12 = vcmp.eq.s32.totalorder %v3341_v1, %v601_v4  ;;  %v742_v24 = vrot.slane %v601_v4, %v3675_v41  ;;  %v3749_v6 = vsel %vm775_vm14, -inf, %v3290_v39 }
 0x29d   :  { %v3730_v16 = vsel %vm782_vm12, -inf, %v3302_v45  ;;  %v481_v62 = vadd.s32 %v3639_v31, %v478_v60  ;;  %v737_v45 = vrot.slane %v3654_v11, %v3629_v12  ;;  %v747_v31 = vrot.slane %v3680_v10, %v3666_v32 }
 0x29e   :  { %v3740_v20 = vadd.s32 %v3634_v27, %v643_v37  ;;  %v834_v23 = vsel %vm356_vm1, %v3730_v16, -inf  ;;  %v522_v38 = vpop.xlane.xlu0 %521  ;;  %v687_v27 = vsel %vm686_vm5, %v685_v28, %v680_v40  ;;  %v813_v11 = vsel %vm356_vm1, %v3749_v6, -inf }
 0x29f   :  { %v627_v22 = vpop.xlane.xlu1 %626  ;;  %835 = vmax.xlane.f32.xlu1 %v834_v23  ;;  %v692_v33 = vrot.slane %v481_v62, %v3675_v41  ;;  %814 = vmax.xlane.f32.xlu0 %v813_v11  ;;  %v523_v39 = vcvt.f32.s32 %v522_v38  ;;  %vm774_vm3 = vcmp.eq.s32.totalorder %v3341_v1, %v481_v62  ;;  %v738_v49 = vsel %vm686_vm5, %v737_v45, %v733_v35 }
 0x2a0   :  { %v628_v8 = vcvt.f32.s32 %v627_v22  ;;  %vm785_vm2 = vcmp.eq.s32.totalorder %v3341_v1, %v3740_v20  ;;  %v3767_v4 = vsel %vm774_vm3, -inf, %v3300_v44  ;;  %v743_v61 = vsel %vm693_vm8, %v742_v24, %v738_v49 }
 0x2a1   :  { %v3764_v10 = vsel %vm785_vm2, -inf, %v3306_v47  ;;  %v3771_v13 = vadd.s32 %v3660_v14, %v523_v39  ;;  %v810_v40 = vsel %vm356_vm1, %v3767_v4, -inf  ;;  %v699_v14 = vrot.slane %v3715_v18, %v3666_v32 }
 0x2a2   :  { %v631_v36 = vadd.s32 %v3652_v7, %v628_v8  ;;  %v843_v53 = vsel %vm356_vm1, %v3764_v10, -inf  ;;  %v507_v37 = vpop.xlane.xlu0 %506  ;;  %v694_v60 = vsel %vm693_vm8, %v692_v33, %v687_v27  ;;  %v748_v35 = vsel %vm700_vm11, %v747_v31, %v743_v61 }
 0x2a3   :  { %v657_v56 = vpop.xlane.xlu1 %656  ;;  %844 = vmax.xlane.f32.xlu1 %v843_v53  ;;  %v508_v44 = vcvt.f32.s32 %v507_v37  ;;  %811 = vmax.xlane.f32.xlu0 %v810_v40  ;;  %vm777_vm9 = vcmp.eq.s32.totalorder %v3341_v1, %v3771_v13  ;;  %v757_v18 = vrot.slane %v3740_v20, %v3700_v15 }
 0x2a4   :  { %v752_v47 = vrot.slane %v631_v36, %v3722_v25  ;;  %v658_v7 = vcvt.f32.s32 %v657_v56  ;;  %vm784_vm6 = vcmp.eq.s32.totalorder %v3341_v1, %v631_v36  ;;  %v3799_v38 = vsel %vm777_vm9, -inf, %v3304_v46 }
 0x2a5   :  { %v3783_v28 = vsel %vm784_vm6, -inf, %v3314_v51  ;;  %v511_v23 = vadd.s32 %v3670_v48, %v508_v44  ;;  %v3796_v51 = vsub.s32 %v723_v26, %v3617_v42  ;;  %v701_v48 = vsel %vm700_vm11, %v699_v14, %v694_v60 }
 0x2a6   :  { %v661_v62 = vadd.s32 %v3662_v21, %v658_v7  ;;  %v840_v45 = vsel %vm356_vm1, %v3783_v28, -inf  ;;  %v753_v24 = vsel %vm707_vm13, %v752_v47, %v748_v35  ;;  %v537_v27 = vpop.xlane.xlu0 %536  ;;  %v819_v8 = vsel %vm356_vm1, %v3799_v38, -inf }
 0x2a7   :  { %5705 = vst [vmem:[#allocation30_spill] sm:$0xff] %v3796_v51  ;;  %v672_v22 = vpop.xlane.xlu1 %671  ;;  %841 = vmax.xlane.f32.xlu1 %v840_v45  ;;  %v706_v20 = vrot.slane %v511_v23, %v3722_v25  ;;  %820 = vmax.xlane.f32.xlu0 %v819_v8  ;;  %v538_v11 = vcvt.f32.s32 %v537_v27  ;;  %vm776_vm12 = vcmp.eq.s32.totalorder %v3341_v1, %v511_v23 }
 0x2a8   :  { %v762_v21 = vrot.slane %v661_v62, %v3735_v57  ;;  %v673_v31 = vcvt.f32.s32 %v672_v22  ;;  %vm786_vm10 = vcmp.eq.s32.totalorder %v3341_v1, %v661_v62  ;;  %v713_v46 = vrot.slane %v3771_v13, %v3700_v15 }
 0x2a9   :  { %v758_v42 = vsel %vm714_vm15, %v757_v18, %v753_v24  ;;  %v3813_v33 = vsel %vm786_vm10, -inf, %v3330_v59  ;;  %v541_v49 = vadd.s32 %v3695_v52, %v538_v11  ;;  %v3820_v61 = vsel %vm776_vm12, -inf, %v3312_v50 }
 0x2aa   :  { %v676_v26 = vadd.s32 %v3687_v19, %v673_v31  ;;  %v763_v39 = vsel %vm721_vm0, %v762_v21, %v758_v42  ;;  %v846_v36 = vsel %vm356_vm1, %v3813_v33, -inf  ;;  %v552_v53 = vpop.xlane.xlu0 %551  ;;  %v816_v19 = vsel %vm356_vm1, %v3820_v61, -inf }
 0x2ab   :  { %847 = vmax.xlane.f32.xlu1 %v846_v36  ;;  %v553_v56 = vcvt.f32.s32 %v552_v53  ;;  %v708_v59 = vsel %vm707_vm13, %v706_v20, %v701_v48  ;;  %v720_v52 = vrot.slane %v541_v49, %v3735_v57  ;;  %817 = vmax.xlane.f32.xlu0 %v816_v19  ;;  %vm778_vm2 = vcmp.eq.s32.totalorder %v3341_v1, %v541_v49 }
 0x2ac   :  { %v767_v13 = vrot.slane %v676_v26, %v3796_v51  ;;  %vm787_vm14 = vcmp.eq.s32.totalorder %v3341_v1, %v676_v26  ;;  %v3837_v7 = vsel %vm778_vm2, -inf, %v3328_v58 }
 0x2ad   :  { %v3829_v40 = vsel %vm787_vm14, -inf, %v3320_v54  ;;  %v556_v37 = vadd.s32 %v3707_v30, %v553_v56  ;;  %5707 = vst [vmem:[#allocation32_spill] sm:$0xff] %v3837_v7  ;;  %v822_v44 = vsel %vm356_vm1, %v3837_v7, -inf  ;;  %v715_v54 = vsel %vm714_vm15, %v713_v46, %v708_v59 }
 0x2ae   :  { %5706 = vst [vmem:[#allocation31_spill] sm:$0xff] %v3829_v40  ;;  %v768_v50 = vsel %vm728_vm4, %v767_v13, %v763_v39  ;;  %v849_v47 = vsel %vm356_vm1, %v3829_v40, -inf  ;;  %v722_v30 = vsel %vm721_vm0, %v720_v52, %v715_v54 }
 0x2af   :  { %771 = vst.msk [vmem:[#allocation4 + $0x4] sm:$0x1] %vm769_vm7, %v768_v50  ;;  %v727_v14 = vrot.slane %v556_v37, %v3796_v51  ;;  %850 = vmax.xlane.f32.xlu1 %v849_v47  ;;  %vm779_vm3 = vcmp.eq.s32.totalorder %v3341_v1, %v556_v37  ;;  %823 = vmax.xlane.f32.xlu0 %v822_v44 }
 0x2b0   :  { %v3847_v60 = vsel %vm779_vm3, -inf, %v3322_v55 }
 0x2b1   :  { %5708 = vst [vmem:[#allocation33_spill] sm:$0xff] %v3847_v60  ;;  %v729_v58 = vsel %vm728_vm4, %v727_v14, %v722_v30  ;;  %v825_v35 = vsel %vm356_vm1, %v3847_v60, -inf }
 0x2b2   :  { %770 = vst.msk [vmem:[#allocation4] sm:$0x1] %vm769_vm7, %v729_v58 }
 0x2b3   :  { %826 = vmax.xlane.f32.xlu0 %v825_v35 }
 0x31b   :  { %v3853_v62 = vpop.xlane.xlu1 %808 }
 0x31c   :  { %5709 = vst [vmem:[#allocation34_spill] sm:$0xff] %v3853_v62  ;;  %vm853_vm6 = vcmp.eq.f32.partialorder %v3649_v29, %v3853_v62 }
 0x31d   :  { %v869_v23 = vsel %vm853_vm6, %v3341_v1, 64 }
 0x31e   :  { %v3859_v45 = vsel %vm356_vm1, %v869_v23, 2147483647 }
 0x31f   :  { %v901_v55 = vshra.s32 %v3859_v45, 16  ;;  %v3862_v18 = vpop.xlane.xlu1 %832  ;;  %v3866_v24 = vpop.xlane.xlu0 %805 }
 0x320   :  { %5710 = vst [vmem:[#allocation35_spill] sm:$0xff] %v3862_v18  ;;  %vm861_vm9 = vcmp.eq.f32.partialorder %v3685_v43, %v3862_v18  ;;  %5711 = vst [vmem:[#allocation36_spill] sm:$0xff] %v3866_v24  ;;  %vm852_vm10 = vcmp.eq.f32.partialorder %v3692_v0, %v3866_v24 }
 0x321   :  { %v3868_v22 = vcvt.s32.f32 %v901_v55  ;;  %v877_v27 = vsel %vm861_vm9, %v3341_v1, 64  ;;  %v868_v48 = vsel %vm852_vm10, %v3341_v1, 64 }
 0x322   :  { %v3875_v21 = vsel %vm356_vm1, %v877_v27, 2147483647  ;;  %v3882_v20 = vsel %vm356_vm1, %v868_v48, 2147483647 }
 0x323   :  { %904 = vmin.xlane.f32.xlu1 %v3868_v22  ;;  %v1021_v8 = vshra.s32 %v3875_v21, 16  ;;  %v3886_v11 = vpop.xlane.xlu0 %829  ;;  %v886_v46 = vshra.s32 %v3882_v20, 16  ;;  %v1020_v62 = vand.u32 65535, %v3875_v21  ;;  %v885_v3 = vand.u32 65535, %v3882_v20 }
 0x324   :  { %v3878_v31 = vpop.xlane.xlu1 %838  ;;  %5713 = vst [vmem:[#allocation38_spill] sm:$0xff] %v3886_v11  ;;  %vm860_vm14 = vcmp.eq.f32.partialorder %v3713_v63, %v3886_v11 }
 0x325   :  { %5712 = vst [vmem:[#allocation37_spill] sm:$0xff] %v3878_v31  ;;  %vm863_vm12 = vcmp.eq.f32.partialorder %v3710_v5, %v3878_v31  ;;  %v3891_v42 = vcvt.s32.f32 %v1021_v8  ;;  %v3893_v26 = vcvt.s32.f32 %v886_v46  ;;  %v876_v53 = vsel %vm860_vm14, %v3341_v1, 64 }
 0x326   :  { %v879_v39 = vsel %vm863_vm12, %v3341_v1, 64  ;;  %v3912_v56 = vsel %vm356_vm1, %v876_v53, 2147483647 }
 0x327   :  { %1024 = vmin.xlane.f32.xlu1 %v3891_v42  ;;  %v3900_v36 = vsel %vm356_vm1, %v879_v39, 2147483647  ;;  %889 = vmin.xlane.f32.xlu0 %v3893_v26  ;;  %v1006_v52 = vshra.s32 %v3912_v56, 16  ;;  %v1005_v21 = vand.u32 65535, %v3912_v56 }
 0x328   :  { %v3897_v49 = vpop.xlane.xlu1 %835  ;;  %v3906_v13 = vpop.xlane.xlu0 %814  ;;  %v1051_v19 = vshra.s32 %v3900_v36, 16 }
 0x329   :  { %5714 = vst [vmem:[#allocation39_spill] sm:$0xff] %v3897_v49  ;;  %vm862_vm2 = vcmp.eq.f32.partialorder %v3730_v16, %v3897_v49  ;;  %5715 = vst [vmem:[#allocation40_spill] sm:$0xff] %v3906_v13  ;;  %vm855_vm3 = vcmp.eq.f32.partialorder %v3749_v6, %v3906_v13  ;;  %v3922_v44 = vcvt.s32.f32 %v1006_v52 }
 0x32a   :  { %v3914_v59 = vcvt.s32.f32 %v1051_v19  ;;  %v878_v37 = vsel %vm862_vm2, %v3341_v1, 64  ;;  %v871_v47 = vsel %vm855_vm3, %v3341_v1, 64 }
 0x32b   :  { %v3927_v14 = vsel %vm356_vm1, %v878_v37, 2147483647  ;;  %1009 = vmin.xlane.f32.xlu0 %v3922_v44  ;;  %v3932_v58 = vsel %vm356_vm1, %v871_v47, 2147483647 }
 0x32c   :  { %v3917_v50 = vpop.xlane.xlu1 %844  ;;  %1054 = vmin.xlane.f32.xlu1 %v3914_v59  ;;  %v3924_v54 = vpop.xlane.xlu0 %811  ;;  %v1036_v30 = vshra.s32 %v3927_v14, 16  ;;  %v931_v23 = vshra.s32 %v3932_v58, 16 }
 0x32d   :  { %5716 = vst [vmem:[#allocation41_spill] sm:$0xff] %v3917_v50  ;;  %5717 = vst [vmem:[#allocation42_spill] sm:$0xff] %v3924_v54  ;;  %vm865_vm6 = vcmp.eq.f32.partialorder %v3764_v10, %v3917_v50  ;;  %vm854_vm9 = vcmp.eq.f32.partialorder %v3767_v4, %v3924_v54 }
 0x32e   :  { %v3941_v55 = vcvt.s32.f32 %v1036_v30  ;;  %v3945_v48 = vcvt.s32.f32 %v931_v23  ;;  %v881_v8 = vsel %vm865_vm6, %v3341_v1, 64  ;;  %v870_v46 = vsel %vm854_vm9, %v3341_v1, 64 }
 0x32f   :  { %v3952_v39 = vsel %vm356_vm1, %v881_v8, 2147483647  ;;  %v3955_v53 = vsel %vm356_vm1, %v870_v46, 2147483647 }
 0x330   :  { %v3938_v35 = vpop.xlane.xlu1 %841  ;;  %v3943_v27 = vpop.xlane.xlu0 %820  ;;  %1039 = vmin.xlane.f32.xlu1 %v3941_v55  ;;  %934 = vmin.xlane.f32.xlu0 %v3945_v48  ;;  %v1081_v19 = vshra.s32 %v3952_v39, 16  ;;  %v916_v47 = vshra.s32 %v3955_v53, 16 }
 0x331   :  { %5718 = vst [vmem:[#allocation43_spill] sm:$0xff] %v3938_v35  ;;  %5719 = vst [vmem:[#allocation44_spill] sm:$0xff] %v3943_v27  ;;  %vm864_vm10 = vcmp.eq.f32.partialorder %v3783_v28, %v3938_v35  ;;  %vm857_vm12 = vcmp.eq.f32.partialorder %v3799_v38, %v3943_v27 }
 0x332   :  { %v3965_v30 = vcvt.s32.f32 %v1081_v19  ;;  %v3969_v23 = vcvt.s32.f32 %v916_v47  ;;  %v880_v8 = vsel %vm864_vm10, %v3341_v1, 64  ;;  %v873_v47 = vsel %vm857_vm12, %v3341_v1, 64 }
 0x333   :  { %v3974_v46 = vsel %vm356_vm1, %v880_v8, 2147483647  ;;  %v3990_v8 = vsel %vm356_vm1, %v873_v47, 2147483647 }
 0x334   :  { %v3960_v52 = vpop.xlane.xlu1 %847  ;;  %v3962_v37 = vpop.xlane.xlu0 %817  ;;  %1084 = vmin.xlane.f32.xlu1 %v3965_v30  ;;  %919 = vmin.xlane.f32.xlu0 %v3969_v23  ;;  %v1066_v54 = vshra.s32 %v3974_v46, 16  ;;  %v961_v50 = vshra.s32 %v3990_v8, 16 }
 0x335   :  { %5720 = vst [vmem:[#allocation45_spill] sm:$0xff] %v3960_v52  ;;  %5721 = vst [vmem:[#allocation46_spill] sm:$0xff] %v3962_v37  ;;  %vm866_vm14 = vcmp.eq.f32.partialorder %v3813_v33, %v3960_v52  ;;  %vm856_vm2 = vcmp.eq.f32.partialorder %v3820_v61, %v3962_v37 }
 0x336   :  { %v3987_v27 = vcvt.s32.f32 %v1066_v54  ;;  %v882_v37 = vsel %vm866_vm14, %v3341_v1, 64  ;;  %v872_v52 = vsel %vm856_vm2, %v3341_v1, 64  ;;  %v4000_v49 = vcvt.s32.f32 %v961_v50 }
 0x337   :  { %v4003_v54 = vsel %vm356_vm1, %v882_v37, 2147483647  ;;  %v4006_v47 = vsel %vm356_vm1, %v872_v52, 2147483647 }
 0x338   :  { %v3976_v35 = vpop.xlane.xlu0 %823  ;;  %v3984_v19 = vpop.xlane.xlu1 %850  ;;  %1069 = vmin.xlane.f32.xlu1 %v3987_v27  ;;  %v1096_v11 = vshra.s32 %v4003_v54, 16  ;;  %v946_v31 = vshra.s32 %v4006_v47, 16  ;;  %964 = vmin.xlane.f32.xlu0 %v4000_v49 }
 0x339   :  { %5722 = vst [vmem:[#allocation47_spill] sm:$0xff] %v3976_v35  ;;  %5723 = vst [vmem:[#allocation48_spill] sm:$0xff] %v3984_v19  ;;  %vm867_vm3 = vcmp.eq.f32.partialorder %v3829_v40, %v3984_v19  ;;  %vm858_vm6 = vcmp.eq.f32.partialorder %v3837_v7, %v3976_v35 }
 0x33a   :  { %v883_v50 = vsel %vm867_vm3, %v3341_v1, 64  ;;  %v4016_v19 = vcvt.s32.f32 %v1096_v11  ;;  %v4018_v37 = vcvt.s32.f32 %v946_v31  ;;  %v874_v17 = vsel %vm858_vm6, %v3341_v1, 64 }
 0x33b   :  { %v4021_v52 = vsel %vm356_vm1, %v883_v50, 2147483647 }
 0x33c   :  { %v3993_v13 = vpop.xlane.xlu0 %826  ;;  %v1111_v35 = vshra.s32 %v4021_v52, 16  ;;  %1099 = vmin.xlane.f32.xlu1 %v4016_v19  ;;  %949 = vmin.xlane.f32.xlu0 %v4018_v37 }
 0x33d   :  { %5724 = vst [vmem:[#allocation49_spill] sm:$0xff] %v3993_v13  ;;  %vm859_vm9 = vcmp.eq.f32.partialorder %v3847_v60, %v3993_v13  ;;  %v4028_v13 = vsel %vm356_vm1, %v874_v17, 2147483647  ;;  %v900_v17 = vand.u32 65535, %v3859_v45  ;;  %v887_v45 = vcvt.s32.f32 %v885_v3 }
 0x33e   :  { %v875_v24 = vsel %vm859_vm9, %v3341_v1, 64  ;;  %v4034_v31 = vcvt.s32.f32 %v1111_v35  ;;  %v976_v11 = vshra.s32 %v4028_v13, 16 }
 0x33f   :  { %v4031_v9 = vsel %vm356_vm1, %v875_v24, 2147483647  ;;  %v902_v35 = vcvt.s32.f32 %v900_v17  ;;  %v1050_v17 = vand.u32 65535, %v3900_v36  ;;  %v1035_v36 = vand.u32 65535, %v3927_v14 }
 0x340   :  { %v991_v50 = vshra.s32 %v4031_v9, 16  ;;  %v4038_v18 = vcvt.s32.f32 %v976_v11  ;;  %1114 = vmin.xlane.f32.xlu1 %v4034_v31  ;;  %v1080_v14 = vand.u32 65535, %v3952_v39  ;;  %v960_v39 = vand.u32 65535, %v3990_v8 }
 0x342   :  { %979 = vmin.xlane.f32.xlu0 %v4038_v18  ;;  %v4042_v2 = vcvt.s32.f32 %v991_v50  ;;  %v1022_v50 = vcvt.s32.f32 %v1020_v62  ;;  %v1052_v62 = vcvt.s32.f32 %v1050_v17 }
 0x346   :  { %994 = vmin.xlane.f32.xlu0 %v4042_v2 }
 0x3ac   :  { %v4046_v24 = vpop.xlane.xlu1 %904 }
 0x3ad   :  { %vm906_vm10 = vcmp.eq.f32.partialorder %v3868_v22, %v4046_v24 }
 0x3ae   :  { %v907_v11 = vsel %vm906_vm10, %v902_v35, inf }
 0x3af   :  { %908 = vmin.xlane.f32.xlu1 %v907_v11  ;;  %v1037_v11 = vcvt.s32.f32 %v1035_v36 }
 0x3b0   :  { %v4052_v60 = vpop.xlane.xlu1 %1024  ;;  %v4054_v7 = vpop.xlane.xlu0 %889 }
 0x3b1   :  { %vm1026_vm12 = vcmp.eq.f32.partialorder %v3891_v42, %v4052_v60  ;;  %vm891_vm14 = vcmp.eq.f32.partialorder %v3893_v26, %v4054_v7  ;;  %v1007_v42 = vcvt.s32.f32 %v1005_v21 }
 0x3b2   :  { %v1027_v40 = vsel %vm1026_vm12, %v1022_v50, inf  ;;  %v892_v22 = vsel %vm891_vm14, %v887_v45, inf }
 0x3b3   :  { %1028 = vmin.xlane.f32.xlu1 %v1027_v40  ;;  %893 = vmin.xlane.f32.xlu0 %v892_v22  ;;  %v930_v40 = vand.u32 65535, %v3932_v58  ;;  %v915_v58 = vand.u32 65535, %v3955_v53  ;;  %v1082_v22 = vcvt.s32.f32 %v1080_v14 }
 0x3b4   :  { %v4066_v35 = vpop.xlane.xlu0 %1009 }
 0x3b5   :  { %v4062_v20 = vpop.xlane.xlu1 %1054  ;;  %vm1011_vm3 = vcmp.eq.f32.partialorder %v3922_v44, %v4066_v35 }
 0x3b6   :  { %vm1056_vm2 = vcmp.eq.f32.partialorder %v3914_v59, %v4062_v20  ;;  %v1012_v26 = vsel %vm1011_vm3, %v1007_v42, inf  ;;  %v932_v59 = vcvt.s32.f32 %v930_v40 }
 0x3b7   :  { %v1057_v3 = vsel %vm1056_vm2, %v1052_v62, inf  ;;  %1013 = vmin.xlane.f32.xlu0 %v1012_v26  ;;  %v1065_v62 = vand.u32 65535, %v3974_v46  ;;  %v962_v46 = vcvt.s32.f32 %v960_v39  ;;  %v1031_v39 = vcvt.f32.s32 %v4052_v60 }
 0x3b8   :  { %1058 = vmin.xlane.f32.xlu1 %v1057_v3 }
 0x3b9   :  { %v4072_v56 = vpop.xlane.xlu1 %1039  ;;  %v4074_v50 = vpop.xlane.xlu0 %934  ;;  %v1067_v42 = vcvt.s32.f32 %v1065_v62 }
 0x3ba   :  { %vm1041_vm6 = vcmp.eq.f32.partialorder %v3941_v55, %v4072_v56  ;;  %vm936_vm9 = vcmp.eq.f32.partialorder %v3945_v48, %v4074_v50  ;;  %v917_v55 = vcvt.s32.f32 %v915_v58 }
 0x3bb   :  { %v1042_v45 = vsel %vm1041_vm6, %v1037_v11, inf  ;;  %v937_v44 = vsel %vm936_vm9, %v932_v59, inf  ;;  %v1110_v59 = vand.u32 65535, %v4021_v52 }
 0x3bc   :  { %1043 = vmin.xlane.f32.xlu1 %v1042_v45  ;;  %938 = vmin.xlane.f32.xlu0 %v937_v44  ;;  %v975_v45 = vand.u32 65535, %v4028_v13 }
 0x3bd   :  { %v4082_v17 = vpop.xlane.xlu1 %1084  ;;  %v4084_v21 = vpop.xlane.xlu0 %919  ;;  %v1112_v44 = vcvt.s32.f32 %v1110_v59 }
 0x3be   :  { %vm1086_vm10 = vcmp.eq.f32.partialorder %v3965_v30, %v4082_v17  ;;  %vm921_vm12 = vcmp.eq.f32.partialorder %v3969_v23, %v4084_v21  ;;  %v1095_v30 = vand.u32 65535, %v4003_v54  ;;  %v945_v23 = vand.u32 65535, %v4006_v47 }
 0x3bf   :  { %v1087_v3 = vsel %vm1086_vm10, %v1082_v22, inf  ;;  %v922_v48 = vsel %vm921_vm12, %v917_v55, inf  ;;  %v977_v52 = vcvt.s32.f32 %v975_v45 }
 0x3c0   :  { %1088 = vmin.xlane.f32.xlu1 %v1087_v3  ;;  %923 = vmin.xlane.f32.xlu0 %v922_v48  ;;  %v1097_v11 = vcvt.s32.f32 %v1095_v30  ;;  %v947_v54 = vcvt.s32.f32 %v945_v23  ;;  %v1032_v30 = vshll.u32 %v1031_v39, 16  ;;  %v1091_v39 = vcvt.f32.s32 %v4082_v17 }
 0x3c1   :  { %v4092_v53 = vpop.xlane.xlu1 %1069  ;;  %v4097_v40 = vpop.xlane.xlu0 %964 }
 0x3c2   :  { %vm1071_vm14 = vcmp.eq.f32.partialorder %v3987_v27, %v4092_v53  ;;  %vm966_vm2 = vcmp.eq.f32.partialorder %v4000_v49, %v4097_v40 }
 0x3c3   :  { %v1072_v36 = vsel %vm1071_vm14, %v1067_v42, inf  ;;  %v967_v26 = vsel %vm966_vm2, %v962_v46, inf }
 0x3c4   :  { %1073 = vmin.xlane.f32.xlu1 %v1072_v36  ;;  %968 = vmin.xlane.f32.xlu0 %v967_v26  ;;  %v1061_v26 = vcvt.f32.s32 %v4062_v20 }
 0x3c5   :  { %v4102_v8 = vpop.xlane.xlu1 %1099  ;;  %v4105_v27 = vpop.xlane.xlu0 %949 }
 0x3c6   :  { %vm1101_vm3 = vcmp.eq.f32.partialorder %v4016_v19, %v4102_v8  ;;  %vm951_vm6 = vcmp.eq.f32.partialorder %v4018_v37, %v4105_v27  ;;  %v990_v19 = vand.u32 65535, %v4031_v9 }
 0x3c7   :  { %v1102_v14 = vsel %vm1101_vm3, %v1097_v11, inf  ;;  %v952_v49 = vsel %vm951_vm6, %v947_v54, inf }
 0x3c8   :  { %1103 = vmin.xlane.f32.xlu1 %v1102_v14  ;;  %953 = vmin.xlane.f32.xlu0 %v952_v49  ;;  %v992_v55 = vcvt.s32.f32 %v990_v19  ;;  %v1046_v19 = vcvt.f32.s32 %v4072_v56 }
 0x3c9   :  { %v4112_v47 = vpop.xlane.xlu1 %1114 }
 0x3ca   :  { %vm1116_vm9 = vcmp.eq.f32.partialorder %v4034_v31, %v4112_v47  ;;  %v911_v31 = vcvt.f32.s32 %v4046_v24  ;;  %v1047_v56 = vshll.u32 %v1046_v19, 16  ;;  %v956_v19 = vcvt.f32.s32 %v4105_v27 }
 0x3cb   :  { %v4114_v58 = vpop.xlane.xlu0 %979  ;;  %v1117_v22 = vsel %vm1116_vm9, %v1112_v44, inf }
 0x3cc   :  { %vm981_vm10 = vcmp.eq.f32.partialorder %v4038_v18, %v4114_v58  ;;  %1118 = vmin.xlane.f32.xlu1 %v1117_v22  ;;  %v912_v48 = vshll.u32 %v911_v31, 16  ;;  %v896_v18 = vcvt.f32.s32 %v4054_v7  ;;  %v1016_v7 = vcvt.f32.s32 %v4066_v35 }
 0x3cd   :  { %v982_v13 = vsel %vm981_vm10, %v977_v52, inf }
 0x3ce   :  { %983 = vmin.xlane.f32.xlu0 %v982_v13  ;;  %v897_v24 = vshll.u32 %v896_v18, 16  ;;  %v1017_v20 = vshll.u32 %v1016_v7, 16 }
 0x3cf   :  { %v4121_v37 = vpop.xlane.xlu0 %994 }
 0x3d0   :  { %vm996_vm12 = vcmp.eq.f32.partialorder %v4042_v2, %v4121_v37 }
 0x3d1   :  { %v997_v62 = vsel %vm996_vm12, %v992_v55, inf  ;;  %v941_v55 = vcvt.f32.s32 %v4074_v50 }
 0x3d2   :  { %998 = vmin.xlane.f32.xlu0 %v997_v62 }
 0x3d3   :  { %v942_v50 = vshll.u32 %v941_v55, 16 }
 0x438   :  { %v909_v3 = vpop.xlane.xlu1 %908 }
 0x439   :  { %v910_v9 = vcvt.f32.s32 %v909_v3 }
 0x43b   :  { %v4128_v42 = vadd.s32 %v912_v48, %v910_v9 }
 0x43c   :  { %v1029_v36 = vpop.xlane.xlu1 %1028  ;;  %v894_v2 = vpop.xlane.xlu0 %893 }
 0x43d   :  { %vm1205_vm14 = vcmp.eq.s32.totalorder %v3341_v1, %v4128_v42  ;;  %v1030_v46 = vcvt.f32.s32 %v1029_v36  ;;  %v895_v11 = vcvt.f32.s32 %v894_v2 }
 0x43e   :  { %v4133_v23 = vsel %vm1205_vm14, -inf, %v3649_v29  ;;  %v1062_v29 = vshll.u32 %v1061_v26, 16 }
 0x43f   :  { %v1239_v60 = vsel %vm356_vm1, %v4133_v23, -inf  ;;  %v4139_v59 = vadd.s32 %v1032_v30, %v1030_v46  ;;  %v4141_v54 = vadd.s32 %v897_v24, %v895_v11  ;;  %v926_v46 = vcvt.f32.s32 %v4084_v21 }
 0x440   :  { %1240 = vmax.xlane.f32.xlu1 %v1239_v60  ;;  %v1014_v44 = vpop.xlane.xlu0 %1013  ;;  %v1092_v24 = vshll.u32 %v1091_v39, 16  ;;  %v986_v39 = vcvt.f32.s32 %v4114_v58 }
 0x441   :  { %v1059_v45 = vpop.xlane.xlu1 %1058  ;;  %vm1213_vm2 = vcmp.eq.s32.totalorder %v3341_v1, %v4139_v59  ;;  %vm1204_vm3 = vcmp.eq.s32.totalorder %v3341_v1, %v4141_v54  ;;  %v1015_v13 = vcvt.f32.s32 %v1014_v44 }
 0x442   :  { %v1060_v14 = vcvt.f32.s32 %v1059_v45  ;;  %v4146_v49 = vsel %vm1213_vm2, -inf, %v3685_v43  ;;  %v4153_v52 = vsel %vm1204_vm3, -inf, %v3692_v0  ;;  %v927_v45 = vshll.u32 %v926_v46, 16 }
 0x443   :  { %v1263_v35 = vsel %vm356_vm1, %v4146_v49, -inf  ;;  %v1236_v43 = vsel %vm356_vm1, %v4153_v52, -inf  ;;  %v4161_v62 = vadd.s32 %v1017_v20, %v1015_v13 }
 0x444   :  { %v4156_v22 = vadd.s32 %v1062_v29, %v1060_v14  ;;  %1264 = vmax.xlane.f32.xlu1 %v1263_v35  ;;  %1237 = vmax.xlane.f32.xlu0 %v1236_v43  ;;  %v971_v14 = vcvt.f32.s32 %v4097_v40 }
 0x445   :  { %v1044_v31 = vpop.xlane.xlu1 %1043  ;;  %v939_v48 = vpop.xlane.xlu0 %938  ;;  %vm1212_vm9 = vcmp.eq.s32.totalorder %v3341_v1, %v4161_v62  ;;  %v1166_v43 = vrot.slane %v4161_v62, %v3646_v34 }
 0x446   :  { %vm1215_vm6 = vcmp.eq.s32.totalorder %v3341_v1, %v4156_v22  ;;  %v1045_v3 = vcvt.f32.s32 %v1044_v31  ;;  %v940_v18 = vcvt.f32.s32 %v939_v48  ;;  %v4174_v36 = vsel %vm1212_vm9, -inf, %v3713_v63 }
 0x447   :  { %v4166_v0 = vsel %vm1215_vm6, -inf, %v3710_v5  ;;  %v1260_v5 = vsel %vm356_vm1, %v4174_v36, -inf  ;;  %v1076_v63 = vcvt.f32.s32 %v4092_v53  ;;  %v1106_v53 = vcvt.f32.s32 %v4102_v8 }
 0x448   :  { %v1269_v9 = vsel %vm356_vm1, %v4166_v0, -inf  ;;  %v1048_v30 = vadd.s32 %v1047_v56, %v1045_v3  ;;  %v4179_v2 = vadd.s32 %v942_v50, %v940_v18  ;;  %1261 = vmax.xlane.f32.xlu0 %v1260_v5  ;;  %v972_v8 = vshll.u32 %v971_v14, 16 }
 0x449   :  { %1270 = vmax.xlane.f32.xlu1 %v1269_v9  ;;  %v1089_v26 = vpop.xlane.xlu1 %1088  ;;  %v924_v60 = vpop.xlane.xlu0 %923  ;;  %v1077_v35 = vshll.u32 %v1076_v63, 16  ;;  %v1107_v56 = vshll.u32 %v1106_v53, 16  ;;  %v1170_v3 = vrot.slane %v4139_v59, %v3629_v12  ;;  %v957_v9 = vshll.u32 %v956_v19, 16 }
 0x44a   :  { %vm1214_vm10 = vcmp.eq.s32.totalorder %v3341_v1, %v1048_v30  ;;  %vm1207_vm12 = vcmp.eq.s32.totalorder %v3341_v1, %v4179_v2  ;;  %v1090_v11 = vcvt.f32.s32 %v1089_v26  ;;  %v925_v29 = vcvt.f32.s32 %v924_v60 }
 0x44b   :  { %v4183_v17 = vsel %vm1214_vm10, -inf, %v3730_v16  ;;  %v4191_v7 = vsel %vm1207_vm12, -inf, %v3749_v6  ;;  %v1121_v6 = vcvt.f32.s32 %v4112_v47  ;;  %v1175_v31 = vrot.slane %v1048_v30, %v3675_v41 }
 0x44c   :  { %v1266_v21 = vsel %vm356_vm1, %v4183_v17, -inf  ;;  %v1245_v16 = vsel %vm356_vm1, %v4191_v7, -inf  ;;  %v4196_v20 = vadd.s32 %v1092_v24, %v1090_v11  ;;  %v928_v44 = vadd.s32 %v927_v45, %v925_v29 }
 0x44d   :  { %1267 = vmax.xlane.f32.xlu1 %v1266_v21  ;;  %1246 = vmax.xlane.f32.xlu0 %v1245_v16  ;;  %v1074_v13 = vpop.xlane.xlu1 %1073  ;;  %v969_v48 = vpop.xlane.xlu0 %968  ;;  %v1122_v50 = vshll.u32 %v1121_v6, 16  ;;  %v1127_v30 = vrot.slane %v4141_v54, %v3646_v34  ;;  %v1171_v59 = vsel %vm686_vm5, %v1170_v3, %v1166_v43  ;;  %v987_v21 = vshll.u32 %v986_v39, 16 }
 0x44e   :  { %vm1217_vm14 = vcmp.eq.s32.totalorder %v3341_v1, %v4196_v20  ;;  %v1075_v55 = vcvt.f32.s32 %v1074_v13  ;;  %vm1206_vm2 = vcmp.eq.s32.totalorder %v3341_v1, %v928_v44  ;;  %v970_v18 = vcvt.f32.s32 %v969_v48 }
 0x44f   :  { %v4206_v40 = vsel %vm1217_vm14, -inf, %v3764_v10  ;;  %v4213_v47 = vsel %vm1206_vm2, -inf, %v3767_v4  ;;  %v1131_v4 = vrot.slane %v4128_v42, %v3629_v12  ;;  %v1176_v5 = vsel %vm693_vm8, %v1175_v31, %v1171_v59 }
 0x450   :  { %v1275_v27 = vsel %vm356_vm1, %v4206_v40, -inf  ;;  %v1078_v62 = vadd.s32 %v1077_v35, %v1075_v55  ;;  %v1242_v10 = vsel %vm356_vm1, %v4213_v47, -inf  ;;  %v1136_v46 = vrot.slane %v928_v44, %v3675_v41 }
 0x451   :  { %1276 = vmax.xlane.f32.xlu1 %v1275_v27  ;;  %1243 = vmax.xlane.f32.xlu0 %v1242_v10  ;;  %v4228_v24 = vadd.s32 %v972_v8, %v970_v18  ;;  %v1104_v26 = vpop.xlane.xlu1 %1103  ;;  %v1180_v42 = vrot.slane %v4156_v22, %v3666_v32  ;;  %v954_v11 = vpop.xlane.xlu0 %953  ;;  %v1001_v45 = vcvt.f32.s32 %v4121_v37  ;;  %v1190_v53 = vrot.slane %v4196_v20, %v3700_v15 }
 0x452   :  { %vm1216_vm3 = vcmp.eq.s32.totalorder %v3341_v1, %v1078_v62  ;;  %v1185_v63 = vrot.slane %v1078_v62, %v3722_v25  ;;  %v1105_v54 = vcvt.f32.s32 %v1104_v26  ;;  %v955_v29 = vcvt.f32.s32 %v954_v11  ;;  %v5726_v26 = vld [vmem:[#allocation32_spill] sm:$0xff] }
 0x453   :  { %v4231_v58 = vsel %vm1216_vm3, -inf, %v3783_v28  ;;  %vm1209_vm6 = vcmp.eq.s32.totalorder %v3341_v1, %v4228_v24  ;;  %v1132_v28 = vsel %vm686_vm5, %v1131_v4, %v1127_v30  ;;  %v1181_v16 = vsel %vm700_vm11, %v1180_v42, %v1176_v5  ;;  %v5725_v4 = vld [vmem:[#allocation31_spill] sm:$0xff] }
 0x454   :  { %v1272_v60 = vsel %vm356_vm1, %v4231_v58, -inf  ;;  %v1108_v22 = vadd.s32 %v1107_v56, %v1105_v54  ;;  %v4244_v14 = vsel %vm1209_vm6, -inf, %v3799_v38  ;;  %v1137_v44 = vsel %vm693_vm8, %v1136_v46, %v1132_v28 }
 0x455   :  { %1273 = vmax.xlane.f32.xlu1 %v1272_v60  ;;  %v958_v35 = vadd.s32 %v957_v9, %v955_v29  ;;  %v1119_v37 = vpop.xlane.xlu1 %1118  ;;  %v1251_v19 = vsel %vm356_vm1, %v4244_v14, -inf  ;;  %v1186_v6 = vsel %vm707_vm13, %v1185_v63, %v1181_v16  ;;  %v1141_v31 = vrot.slane %v4179_v2, %v3666_v32  ;;  %v5728_v29 = vld [vmem:[#allocation33_spill] sm:$0xff] }
 0x456   :  { %v1195_v13 = vrot.slane %v1108_v22, %v3735_v57  ;;  %v1120_v43 = vcvt.f32.s32 %v1119_v37  ;;  %1252 = vmax.xlane.f32.xlu0 %v1251_v19  ;;  %vm1218_vm9 = vcmp.eq.s32.totalorder %v3341_v1, %v1108_v22  ;;  %v1002_v62 = vshll.u32 %v1001_v45, 16 }
 0x457   :  { %v984_v55 = vpop.xlane.xlu0 %983  ;;  %v1146_v38 = vrot.slane %v958_v35, %v3722_v25  ;;  %v4256_v20 = vsel %vm1218_vm9, -inf, %v3813_v33  ;;  %vm1208_vm10 = vcmp.eq.s32.totalorder %v3341_v1, %v958_v35  ;;  %v1191_v48 = vsel %vm714_vm15, %v1190_v53, %v1186_v6 }
 0x458   :  { %v985_v8 = vcvt.f32.s32 %v984_v55  ;;  %v1123_v27 = vadd.s32 %v1122_v50, %v1120_v43  ;;  %v1278_v56 = vsel %vm356_vm1, %v4256_v20, -inf  ;;  %v4264_v3 = vsel %vm1208_vm10, -inf, %v3820_v61 }
 0x459   :  { %1279 = vmax.xlane.f32.xlu1 %v1278_v56  ;;  %v1248_v33 = vsel %vm356_vm1, %v4264_v3, -inf  ;;  %v1196_v9 = vsel %vm721_vm0, %v1195_v13, %v1191_v48  ;;  %v1142_v39 = vsel %vm700_vm11, %v1141_v31, %v1137_v44  ;;  %v1151_v63 = vrot.slane %v4228_v24, %v3700_v15 }
 0x45a   :  { %v988_v10 = vadd.s32 %v987_v21, %v985_v8  ;;  %v1200_v2 = vrot.slane %v1123_v27, %v3796_v51  ;;  %vm1219_vm12 = vcmp.eq.s32.totalorder %v3341_v1, %v1123_v27  ;;  %1249 = vmax.xlane.f32.xlu0 %v1248_v33  ;;  %v1147_v61 = vsel %vm707_vm13, %v1146_v38, %v1142_v39 }
 0x45b   :  { %v999_v50 = vpop.xlane.xlu0 %998  ;;  %v4275_v30 = vsel %vm1219_vm12, -inf, %v5725_v4  ;;  %v1152_v60 = vsel %vm714_vm15, %v1151_v63, %v1147_v61 }
 0x45c   :  { %v1000_v18 = vcvt.f32.s32 %v999_v50  ;;  %vm1210_vm14 = vcmp.eq.s32.totalorder %v3341_v1, %v988_v10  ;;  %v1201_v59 = vsel %vm728_vm4, %v1200_v2, %v1196_v9  ;;  %v1156_v5 = vrot.slane %v988_v10, %v3735_v57 }
 0x45d   :  { %v1281_v46 = vsel %vm356_vm1, %v4275_v30, -inf  ;;  %v4283_v42 = vsel %vm1210_vm14, -inf, %v5726_v26  ;;  %1203 = vst.msk [vmem:[#allocation4 + $0x5] sm:$0x1] %vm769_vm7, %v1201_v59 }
 0x45e   :  { %5727 = vst [vmem:[#allocation31_spill] sm:$0xff] %v4283_v42  ;;  %v1003_v54 = vadd.s32 %v1002_v62, %v1000_v18  ;;  %1282 = vmax.xlane.f32.xlu1 %v1281_v46  ;;  %v1254_v11 = vsel %vm356_vm1, %v4283_v42, -inf  ;;  %v1157_v45 = vsel %vm721_vm0, %v1156_v5, %v1152_v60 }
 0x45f   :  { %1255 = vmax.xlane.f32.xlu0 %v1254_v11 }
 0x460   :  { %v1161_v21 = vrot.slane %v1003_v54, %v3796_v51  ;;  %vm1211_vm2 = vcmp.eq.s32.totalorder %v3341_v1, %v1003_v54 }
 0x461   :  { %v4295_v28 = vsel %vm1211_vm2, -inf, %v5728_v29 }
 0x462   :  { %5729 = vst [vmem:[#allocation32_spill] sm:$0xff] %v4295_v28  ;;  %v1162_v24 = vsel %vm728_vm4, %v1161_v21, %v1157_v45  ;;  %v1257_v16 = vsel %vm356_vm1, %v4295_v28, -inf }
 0x463   :  { %1202 = vst.msk [vmem:[#allocation4 + $0x1] sm:$0x1] %vm769_vm7, %v1162_v24  ;;  %1258 = vmax.xlane.f32.xlu0 %v1257_v16 }
 0x4c9   :  { %v4301_v22 = vpop.xlane.xlu1 %1240 }
 0x4ca   :  { %5730 = vst [vmem:[#allocation33_spill] sm:$0xff] %v4301_v22  ;;  %vm1285_vm3 = vcmp.eq.f32.partialorder %v4133_v23, %v4301_v22 }
 0x4cb   :  { %v1301_v53 = vsel %vm1285_vm3, %v3341_v1, 64 }
 0x4cc   :  { %v4307_v44 = vsel %vm356_vm1, %v1301_v53, 2147483647 }
 0x4cd   :  { %v1333_v35 = vshra.s32 %v4307_v44, 16  ;;  %v4310_v37 = vpop.xlane.xlu1 %1264  ;;  %v4314_v19 = vpop.xlane.xlu0 %1237 }
 0x4ce   :  { %5731 = vst [vmem:[#allocation50_spill] sm:$0xff] %v4310_v37  ;;  %vm1293_vm6 = vcmp.eq.f32.partialorder %v4146_v49, %v4310_v37  ;;  %5732 = vst [vmem:[#allocation51_spill] sm:$0xff] %v4314_v19  ;;  %vm1284_vm9 = vcmp.eq.f32.partialorder %v4153_v52, %v4314_v19 }
 0x4cf   :  { %v4316_v6 = vcvt.s32.f32 %v1333_v35  ;;  %v1309_v13 = vsel %vm1293_vm6, %v3341_v1, 64  ;;  %v1300_v55 = vsel %vm1284_vm9, %v3341_v1, 64 }
 0x4d0   :  { %v4322_v43 = vsel %vm356_vm1, %v1309_v13, 2147483647  ;;  %v4327_v38 = vsel %vm356_vm1, %v1300_v55, 2147483647 }
 0x4d1   :  { %1336 = vmin.xlane.f32.xlu1 %v4316_v6  ;;  %v1453_v8 = vshra.s32 %v4322_v43, 16  ;;  %v1318_v27 = vshra.s32 %v4327_v38, 16  ;;  %v4338_v48 = vpop.xlane.xlu0 %1261  ;;  %v1317_v22 = vand.u32 65535, %v4327_v38 }
 0x4d2   :  { %v4330_v31 = vpop.xlane.xlu1 %1270  ;;  %5734 = vst [vmem:[#allocation53_spill] sm:$0xff] %v4338_v48  ;;  %vm1292_vm12 = vcmp.eq.f32.partialorder %v4174_v36, %v4338_v48 }
 0x4d3   :  { %5733 = vst [vmem:[#allocation52_spill] sm:$0xff] %v4330_v31  ;;  %vm1295_vm10 = vcmp.eq.f32.partialorder %v4166_v0, %v4330_v31  ;;  %v4335_v56 = vcvt.s32.f32 %v1453_v8  ;;  %v4340_v10 = vcvt.s32.f32 %v1318_v27  ;;  %v1308_v9 = vsel %vm1292_vm12, %v3341_v1, 64 }
 0x4d4   :  { %v1311_v62 = vsel %vm1295_vm10, %v3341_v1, 64  ;;  %v4352_v2 = vsel %vm356_vm1, %v1308_v9, 2147483647 }
 0x4d5   :  { %v4343_v33 = vsel %vm356_vm1, %v1311_v62, 2147483647  ;;  %1456 = vmin.xlane.f32.xlu1 %v4335_v56  ;;  %1321 = vmin.xlane.f32.xlu0 %v4340_v10  ;;  %v1438_v18 = vshra.s32 %v4352_v2, 16 }
 0x4d6   :  { %v1483_v39 = vshra.s32 %v4343_v33, 16  ;;  %v4354_v50 = vpop.xlane.xlu1 %1267  ;;  %v4361_v4 = vpop.xlane.xlu0 %1246 }
 0x4d7   :  { %5735 = vst [vmem:[#allocation54_spill] sm:$0xff] %v4354_v50  ;;  %vm1294_vm14 = vcmp.eq.f32.partialorder %v4183_v17, %v4354_v50  ;;  %5736 = vst [vmem:[#allocation55_spill] sm:$0xff] %v4361_v4  ;;  %vm1287_vm2 = vcmp.eq.f32.partialorder %v4191_v7, %v4361_v4  ;;  %v4371_v26 = vcvt.s32.f32 %v1438_v18 }
 0x4d8   :  { %v4356_v61 = vcvt.s32.f32 %v1483_v39  ;;  %v1310_v59 = vsel %vm1294_vm14, %v3341_v1, 64  ;;  %v1303_v46 = vsel %vm1287_vm2, %v3341_v1, 64 }
 0x4d9   :  { %v4368_v5 = vsel %vm356_vm1, %v1310_v59, 2147483647  ;;  %v4374_v63 = vsel %vm356_vm1, %v1303_v46, 2147483647  ;;  %1441 = vmin.xlane.f32.xlu0 %v4371_v26 }
 0x4da   :  { %1486 = vmin.xlane.f32.xlu1 %v4356_v61  ;;  %v1468_v54 = vshra.s32 %v4368_v5, 16  ;;  %v1363_v11 = vshra.s32 %v4374_v63, 16  ;;  %v4379_v60 = vpop.xlane.xlu1 %1276  ;;  %v4385_v45 = vpop.xlane.xlu0 %1243 }
 0x4db   :  { %5737 = vst [vmem:[#allocation56_spill] sm:$0xff] %v4379_v60  ;;  %vm1297_vm3 = vcmp.eq.f32.partialorder %v4206_v40, %v4379_v60  ;;  %5738 = vst [vmem:[#allocation57_spill] sm:$0xff] %v4385_v45  ;;  %vm1286_vm6 = vcmp.eq.f32.partialorder %v4213_v47, %v4385_v45 }
 0x4dc   :  { %v4381_v21 = vcvt.s32.f32 %v1468_v54  ;;  %v4387_v29 = vcvt.s32.f32 %v1363_v11  ;;  %v1313_v24 = vsel %vm1297_vm3, %v3341_v1, 64  ;;  %v1302_v53 = vsel %vm1286_vm6, %v3341_v1, 64 }
 0x4dd   :  { %v4394_v16 = vsel %vm356_vm1, %v1313_v24, 2147483647  ;;  %v4399_v35 = vsel %vm356_vm1, %v1302_v53, 2147483647 }
 0x4de   :  { %1471 = vmin.xlane.f32.xlu1 %v4381_v21  ;;  %1366 = vmin.xlane.f32.xlu0 %v4387_v29  ;;  %v1513_v13 = vshra.s32 %v4394_v16, 16  ;;  %v4402_v55 = vpop.xlane.xlu1 %1273  ;;  %v1348_v8 = vshra.s32 %v4399_v35, 16 }
 0x4df   :  { %5739 = vst [vmem:[#allocation58_spill] sm:$0xff] %v4402_v55  ;;  %vm1296_vm9 = vcmp.eq.f32.partialorder %v4231_v58, %v4402_v55  ;;  %v4415_v18 = vpop.xlane.xlu0 %1252 }
 0x4e0   :  { %v4407_v27 = vcvt.s32.f32 %v1513_v13  ;;  %v1312_v62 = vsel %vm1296_vm9, %v3341_v1, 64  ;;  %v4410_v9 = vcvt.s32.f32 %v1348_v8  ;;  %5740 = vst [vmem:[#allocation59_spill] sm:$0xff] %v4415_v18  ;;  %vm1289_vm10 = vcmp.eq.f32.partialorder %v4244_v14, %v4415_v18 }
 0x4e1   :  { %v4413_v39 = vsel %vm356_vm1, %v1312_v62, 2147483647  ;;  %v1305_v46 = vsel %vm1289_vm10, %v3341_v1, 64 }
 0x4e2   :  { %1516 = vmin.xlane.f32.xlu1 %v4407_v27  ;;  %1351 = vmin.xlane.f32.xlu0 %v4410_v9  ;;  %v1498_v59 = vshra.s32 %v4413_v39, 16  ;;  %v4424_v54 = vsel %vm356_vm1, %v1305_v46, 2147483647  ;;  %v4426_v11 = vpop.xlane.xlu1 %1279 }
 0x4e3   :  { %5741 = vst [vmem:[#allocation60_spill] sm:$0xff] %v4426_v11  ;;  %vm1298_vm12 = vcmp.eq.f32.partialorder %v4256_v20, %v4426_v11  ;;  %v4432_v53 = vpop.xlane.xlu0 %1249  ;;  %v1393_v62 = vshra.s32 %v4424_v54, 16 }
 0x4e4   :  { %v4428_v24 = vcvt.s32.f32 %v1498_v59  ;;  %5742 = vst [vmem:[#allocation61_spill] sm:$0xff] %v4432_v53  ;;  %v1314_v13 = vsel %vm1298_vm12, %v3341_v1, 64  ;;  %vm1288_vm14 = vcmp.eq.f32.partialorder %v4264_v3, %v4432_v53 }
 0x4e5   :  { %v1304_v8 = vsel %vm1288_vm14, %v3341_v1, 64  ;;  %v4443_v59 = vsel %vm356_vm1, %v1314_v13, 2147483647  ;;  %v4453_v55 = vcvt.s32.f32 %v1393_v62 }
 0x4e6   :  { %1501 = vmin.xlane.f32.xlu1 %v4428_v24  ;;  %v4450_v18 = vsel %vm356_vm1, %v1304_v8, 2147483647  ;;  %v1528_v8 = vshra.s32 %v4443_v59, 16 }
 0x4e7   :  { %v4440_v46 = vpop.xlane.xlu1 %1282  ;;  %1396 = vmin.xlane.f32.xlu0 %v4453_v55  ;;  %v1378_v60 = vshra.s32 %v4450_v18, 16 }
 0x4e8   :  { %5743 = vst [vmem:[#allocation62_spill] sm:$0xff] %v4440_v46  ;;  %vm1299_vm2 = vcmp.eq.f32.partialorder %v4275_v30, %v4440_v46  ;;  %v4447_v11 = vpop.xlane.xlu0 %1255  ;;  %v4471_v50 = vcvt.s32.f32 %v1528_v8 }
 0x4e9   :  { %5744 = vst [vmem:[#allocation63_spill] sm:$0xff] %v4447_v11  ;;  %v1315_v53 = vsel %vm1299_vm2, %v3341_v1, 64  ;;  %vm1290_vm3 = vcmp.eq.f32.partialorder %v4283_v42, %v4447_v11 }
 0x4ea   :  { %v4458_v45 = vsel %vm356_vm1, %v1315_v53, 2147483647  ;;  %v1306_v13 = vsel %vm1290_vm3, %v3341_v1, 64  ;;  %v4475_v53 = vcvt.s32.f32 %v1378_v60  ;;  %1531 = vmin.xlane.f32.xlu1 %v4471_v50 }
 0x4eb   :  { %v4463_v46 = vsel %vm356_vm1, %v1306_v13, 2147483647  ;;  %v1543_v62 = vshra.s32 %v4458_v45, 16 }
 0x4ec   :  { %v4467_v4 = vpop.xlane.xlu0 %1258  ;;  %v1408_v11 = vshra.s32 %v4463_v46, 16  ;;  %1381 = vmin.xlane.f32.xlu0 %v4475_v53 }
 0x4ed   :  { %5745 = vst [vmem:[#allocation64_spill] sm:$0xff] %v4467_v4  ;;  %vm1291_vm6 = vcmp.eq.f32.partialorder %v4295_v28, %v4467_v4  ;;  %v4482_v31 = vcvt.s32.f32 %v1543_v62  ;;  %v1332_v4 = vand.u32 65535, %v4307_v44  ;;  %v1319_v44 = vcvt.s32.f32 %v1317_v22 }
 0x4ee   :  { %v1307_v13 = vsel %vm1291_vm6, %v3341_v1, 64  ;;  %v4485_v19 = vcvt.s32.f32 %v1408_v11  ;;  %v1452_v11 = vand.u32 65535, %v4322_v43  ;;  %v1467_v22 = vand.u32 65535, %v4368_v5 }
 0x4ef   :  { %v4480_v48 = vsel %vm356_vm1, %v1307_v13, 2147483647  ;;  %1546 = vmin.xlane.f32.xlu1 %v4482_v31  ;;  %v1334_v62 = vcvt.s32.f32 %v1332_v4  ;;  %v1482_v4 = vand.u32 65535, %v4343_v33 }
 0x4f0   :  { %v1423_v8 = vshra.s32 %v4480_v48, 16  ;;  %1411 = vmin.xlane.f32.xlu0 %v4485_v19 }
 0x4f2   :  { %v4490_v60 = vcvt.s32.f32 %v1423_v8  ;;  %v1454_v8 = vcvt.s32.f32 %v1452_v11 }
 0x4f4   :  { %1426 = vmin.xlane.f32.xlu0 %v4490_v60 }
 0x55a   :  { %v4494_v13 = vpop.xlane.xlu1 %1336 }
 0x55b   :  { %vm1338_vm9 = vcmp.eq.f32.partialorder %v4316_v6, %v4494_v13 }
 0x55c   :  { %v1339_v37 = vsel %vm1338_vm9, %v1334_v62, inf  ;;  %v1484_v62 = vcvt.s32.f32 %v1482_v4 }
 0x55d   :  { %1340 = vmin.xlane.f32.xlu1 %v1339_v37  ;;  %v1437_v37 = vand.u32 65535, %v4352_v2 }
 0x55e   :  { %v4500_v28 = vpop.xlane.xlu1 %1456  ;;  %v4504_v42 = vpop.xlane.xlu0 %1321 }
 0x55f   :  { %vm1458_vm10 = vcmp.eq.f32.partialorder %v4335_v56, %v4500_v28  ;;  %vm1323_vm12 = vcmp.eq.f32.partialorder %v4340_v10, %v4504_v42  ;;  %v1439_v33 = vcvt.s32.f32 %v1437_v37  ;;  %v1362_v10 = vand.u32 65535, %v4374_v63 }
 0x560   :  { %v1459_v6 = vsel %vm1458_vm10, %v1454_v8, inf  ;;  %v1324_v43 = vsel %vm1323_vm12, %v1319_v44, inf  ;;  %v1469_v44 = vcvt.s32.f32 %v1467_v22  ;;  %v1512_v63 = vand.u32 65535, %v4394_v16 }
 0x561   :  { %1460 = vmin.xlane.f32.xlu1 %v1459_v6  ;;  %1325 = vmin.xlane.f32.xlu0 %v1324_v43  ;;  %v1364_v5 = vcvt.s32.f32 %v1362_v10 }
 0x562   :  { %v4515_v11 = vpop.xlane.xlu0 %1441  ;;  %v1514_v37 = vcvt.s32.f32 %v1512_v63 }
 0x563   :  { %v4510_v38 = vpop.xlane.xlu1 %1486  ;;  %vm1443_vm2 = vcmp.eq.f32.partialorder %v4371_v26, %v4515_v11  ;;  %v1347_v26 = vand.u32 65535, %v4399_v35 }
 0x564   :  { %vm1488_vm14 = vcmp.eq.f32.partialorder %v4356_v61, %v4510_v38  ;;  %v1444_v8 = vsel %vm1443_vm2, %v1439_v33, inf }
 0x565   :  { %v1489_v56 = vsel %vm1488_vm14, %v1484_v62, inf  ;;  %1445 = vmin.xlane.f32.xlu0 %v1444_v8  ;;  %v1349_v62 = vcvt.s32.f32 %v1347_v26  ;;  %v1527_v8 = vand.u32 65535, %v4443_v59  ;;  %v1407_v59 = vand.u32 65535, %v4463_v46 }
 0x566   :  { %1490 = vmin.xlane.f32.xlu1 %v1489_v56  ;;  %v1497_v56 = vand.u32 65535, %v4413_v39 }
 0x567   :  { %v4520_v2 = vpop.xlane.xlu1 %1471  ;;  %v4524_v61 = vpop.xlane.xlu0 %1366 }
 0x568   :  { %vm1473_vm3 = vcmp.eq.f32.partialorder %v4381_v21, %v4520_v2  ;;  %vm1368_vm6 = vcmp.eq.f32.partialorder %v4387_v29, %v4524_v61  ;;  %v1499_v22 = vcvt.s32.f32 %v1497_v56 }
 0x569   :  { %v1474_v4 = vsel %vm1473_vm3, %v1469_v44, inf  ;;  %v1369_v6 = vsel %vm1368_vm6, %v1364_v5, inf }
 0x56a   :  { %1475 = vmin.xlane.f32.xlu1 %v1474_v4  ;;  %1370 = vmin.xlane.f32.xlu0 %v1369_v6  ;;  %v1529_v4 = vcvt.s32.f32 %v1527_v8 }
 0x56b   :  { %v4530_v43 = vpop.xlane.xlu1 %1516  ;;  %v4534_v21 = vpop.xlane.xlu0 %1351 }
 0x56c   :  { %vm1518_vm9 = vcmp.eq.f32.partialorder %v4407_v27, %v4530_v43  ;;  %vm1353_vm10 = vcmp.eq.f32.partialorder %v4410_v9, %v4534_v21  ;;  %v1392_v27 = vand.u32 65535, %v4424_v54  ;;  %v1377_v9 = vand.u32 65535, %v4450_v18 }
 0x56d   :  { %v1519_v29 = vsel %vm1518_vm9, %v1514_v37, inf  ;;  %v1354_v16 = vsel %vm1353_vm10, %v1349_v62, inf  ;;  %v1422_v37 = vand.u32 65535, %v4480_v48 }
 0x56e   :  { %1520 = vmin.xlane.f32.xlu1 %v1519_v29  ;;  %1355 = vmin.xlane.f32.xlu0 %v1354_v16  ;;  %v1394_v39 = vcvt.s32.f32 %v1392_v27  ;;  %v1379_v63 = vcvt.s32.f32 %v1377_v9  ;;  %v1493_v9 = vcvt.f32.s32 %v4510_v38 }
 0x56f   :  { %v4539_v35 = vpop.xlane.xlu1 %1501  ;;  %v1424_v56 = vcvt.s32.f32 %v1422_v37  ;;  %v1478_v37 = vcvt.f32.s32 %v4520_v2 }
 0x570   :  { %vm1503_vm12 = vcmp.eq.f32.partialorder %v4428_v24, %v4539_v35  ;;  %v4544_v10 = vpop.xlane.xlu0 %1396  ;;  %v1542_v24 = vand.u32 65535, %v4458_v45 }
 0x571   :  { %v1504_v33 = vsel %vm1503_vm12, %v1499_v22, inf  ;;  %vm1398_vm14 = vcmp.eq.f32.partialorder %v4453_v55, %v4544_v10  ;;  %v1479_v2 = vshll.u32 %v1478_v37, 16 }
 0x572   :  { %1505 = vmin.xlane.f32.xlu1 %v1504_v33  ;;  %v1399_v44 = vsel %vm1398_vm14, %v1394_v39, inf  ;;  %v1544_v26 = vcvt.s32.f32 %v1542_v24  ;;  %v1463_v33 = vcvt.f32.s32 %v4500_v28 }
 0x573   :  { %1400 = vmin.xlane.f32.xlu0 %v1399_v44  ;;  %v4550_v5 = vpop.xlane.xlu1 %1531 }
 0x574   :  { %vm1533_vm2 = vcmp.eq.f32.partialorder %v4471_v50, %v4550_v5  ;;  %v1409_v50 = vcvt.s32.f32 %v1407_v59  ;;  %v1464_v8 = vshll.u32 %v1463_v33, 16  ;;  %v1494_v59 = vshll.u32 %v1493_v9, 16 }
 0x575   :  { %v4555_v54 = vpop.xlane.xlu0 %1381  ;;  %v1534_v55 = vsel %vm1533_vm2, %v1529_v4, inf }
 0x576   :  { %vm1383_vm3 = vcmp.eq.f32.partialorder %v4475_v53, %v4555_v54  ;;  %1535 = vmin.xlane.f32.xlu1 %v1534_v55  ;;  %v1448_v55 = vcvt.f32.s32 %v4515_v11 }
 0x577   :  { %v1384_v18 = vsel %vm1383_vm3, %v1379_v63, inf }
 0x578   :  { %1385 = vmin.xlane.f32.xlu0 %v1384_v18  ;;  %v4560_v6 = vpop.xlane.xlu1 %1546 }
 0x579   :  { %vm1548_vm6 = vcmp.eq.f32.partialorder %v4482_v31, %v4560_v6  ;;  %v4564_v45 = vpop.xlane.xlu0 %1411  ;;  %v1343_v31 = vcvt.f32.s32 %v4494_v13 }
 0x57a   :  { %vm1413_vm9 = vcmp.eq.f32.partialorder %v4485_v19, %v4564_v45  ;;  %v1549_v46 = vsel %vm1548_vm6, %v1544_v26, inf  ;;  %v1328_v19 = vcvt.f32.s32 %v4504_v42 }
 0x57b   :  { %1550 = vmin.xlane.f32.xlu1 %v1549_v46  ;;  %v1414_v53 = vsel %vm1413_vm9, %v1409_v50, inf  ;;  %v1344_v22 = vshll.u32 %v1343_v31, 16 }
 0x57c   :  { %1415 = vmin.xlane.f32.xlu0 %v1414_v53  ;;  %v1329_v13 = vshll.u32 %v1328_v19, 16  ;;  %v1373_v53 = vcvt.f32.s32 %v4524_v61  ;;  %v1523_v19 = vcvt.f32.s32 %v4530_v43 }
 0x57d   :  { %v4569_v62 = vpop.xlane.xlu0 %1426 }
 0x57e   :  { %vm1428_vm10 = vcmp.eq.f32.partialorder %v4490_v60, %v4569_v62  ;;  %v1374_v61 = vshll.u32 %v1373_v53, 16 }
 0x57f   :  { %v1429_v29 = vsel %vm1428_vm10, %v1424_v56, inf }
 0x580   :  { %1430 = vmin.xlane.f32.xlu0 %v1429_v29 }
 0x5e6   :  { %v1341_v16 = vpop.xlane.xlu1 %1340 }
 0x5e7   :  { %v1342_v48 = vcvt.f32.s32 %v1341_v16  ;;  %v1449_v16 = vshll.u32 %v1448_v55, 16  ;;  %v1508_v55 = vcvt.f32.s32 %v4539_v35 }
 0x5e9   :  { %v1345_v27 = vadd.s32 %v1344_v22, %v1342_v48 }
 0x5ea   :  { %v1461_v39 = vpop.xlane.xlu1 %1460  ;;  %v1326_v60 = vpop.xlane.xlu0 %1325 }
 0x5eb   :  { %vm1637_vm12 = vcmp.eq.s32.totalorder %v3341_v1, %v1345_v27  ;;  %v1462_v44 = vcvt.f32.s32 %v1461_v39  ;;  %v1327_v24 = vcvt.f32.s32 %v1326_v60  ;;  %v1563_v18 = vrot.slane %v1345_v27, %v3629_v12 }
 0x5ec   :  { %v4579_v4 = vsel %vm1637_vm12, -inf, %v4133_v23 }
 0x5ed   :  { %v1671_v63 = vsel %vm356_vm1, %v4579_v4, -inf  ;;  %v1465_v28 = vadd.s32 %v1464_v8, %v1462_v44  ;;  %v1330_v42 = vadd.s32 %v1329_v13, %v1327_v24  ;;  %v1358_v24 = vcvt.f32.s32 %v4534_v21 }
 0x5ee   :  { %1672 = vmax.xlane.f32.xlu1 %v1671_v63  ;;  %v1446_v31 = vpop.xlane.xlu0 %1445 }
 0x5ef   :  { %v1491_v26 = vpop.xlane.xlu1 %1490  ;;  %vm1645_vm14 = vcmp.eq.s32.totalorder %v3341_v1, %v1465_v28  ;;  %v1559_v38 = vrot.slane %v1330_v42, %v3646_v34  ;;  %vm1636_vm2 = vcmp.eq.s32.totalorder %v3341_v1, %v1330_v42  ;;  %v1447_v22 = vcvt.f32.s32 %v1446_v31 }
 0x5f0   :  { %v1492_v23 = vcvt.f32.s32 %v1491_v26  ;;  %v4588_v50 = vsel %vm1645_vm14, -inf, %v4146_v49  ;;  %v4595_v11 = vsel %vm1636_vm2, -inf, %v4153_v52  ;;  %v1602_v9 = vrot.slane %v1465_v28, %v3629_v12 }
 0x5f1   :  { %v1695_v46 = vsel %vm356_vm1, %v4588_v50, -inf  ;;  %v4599_v56 = vsel %vm686_vm5, %v1563_v18, %v1559_v38  ;;  %v1668_v49 = vsel %vm356_vm1, %v4595_v11, -inf  ;;  %v1450_v48 = vadd.s32 %v1449_v16, %v1447_v22 }
 0x5f2   :  { %v1495_v29 = vadd.s32 %v1494_v59, %v1492_v23  ;;  %1696 = vmax.xlane.f32.xlu1 %v1695_v46  ;;  %1669 = vmax.xlane.f32.xlu0 %v1668_v49  ;;  %v1524_v59 = vshll.u32 %v1523_v19, 16  ;;  %v1359_v53 = vshll.u32 %v1358_v24, 16  ;;  %v1509_v16 = vshll.u32 %v1508_v55, 16 }
 0x5f3   :  { %v1476_v52 = vpop.xlane.xlu1 %1475  ;;  %v1371_v39 = vpop.xlane.xlu0 %1370  ;;  %v1598_v44 = vrot.slane %v1450_v48, %v3646_v34  ;;  %vm1644_vm6 = vcmp.eq.s32.totalorder %v3341_v1, %v1450_v48  ;;  %v1553_v55 = vcvt.f32.s32 %v4560_v6  ;;  %v1433_v6 = vcvt.f32.s32 %v4569_v62 }
 0x5f4   :  { %vm1647_vm3 = vcmp.eq.s32.totalorder %v3341_v1, %v1495_v29  ;;  %v1477_v27 = vcvt.f32.s32 %v1476_v52  ;;  %v1372_v60 = vcvt.f32.s32 %v1371_v39  ;;  %v1612_v18 = vrot.slane %v1495_v29, %v3666_v32 }
 0x5f5   :  { %v4605_v33 = vsel %vm1647_vm3, -inf, %v4166_v0  ;;  %v4614_v0 = vsel %vm1644_vm6, -inf, %v4174_v36  ;;  %v1603_v43 = vsel %vm686_vm5, %v1602_v9, %v1598_v44  ;;  %v1403_v52 = vcvt.f32.s32 %v4544_v10 }
 0x5f6   :  { %v1701_v8 = vsel %vm356_vm1, %v4605_v33, -inf  ;;  %v1480_v13 = vadd.s32 %v1479_v2, %v1477_v27  ;;  %v1375_v63 = vadd.s32 %v1374_v61, %v1372_v60  ;;  %v1692_v42 = vsel %vm356_vm1, %v4614_v0, -inf }
 0x5f7   :  { %1702 = vmax.xlane.f32.xlu1 %v1701_v8  ;;  %1693 = vmax.xlane.f32.xlu0 %v1692_v42  ;;  %v1521_v36 = vpop.xlane.xlu1 %1520  ;;  %v1356_v23 = vpop.xlane.xlu0 %1355  ;;  %v1404_v44 = vshll.u32 %v1403_v52, 16  ;;  %v1388_v42 = vcvt.f32.s32 %v4555_v54 }
 0x5f8   :  { %v1607_v28 = vrot.slane %v1480_v13, %v3675_v41  ;;  %vm1646_vm9 = vcmp.eq.s32.totalorder %v3341_v1, %v1480_v13  ;;  %vm1639_vm10 = vcmp.eq.s32.totalorder %v3341_v1, %v1375_v63  ;;  %v1522_v38 = vcvt.f32.s32 %v1521_v36 }
 0x5f9   :  { %v4625_v26 = vsel %vm1646_vm9, -inf, %v4183_v17  ;;  %v4632_v46 = vsel %vm1639_vm10, -inf, %v4191_v7  ;;  %v1357_v35 = vcvt.f32.s32 %v1356_v23  ;;  %v1573_v61 = vrot.slane %v1375_v63, %v3666_v32 }
 0x5fa   :  { %v1608_v21 = vsel %vm693_vm8, %v1607_v28, %v1603_v43  ;;  %v1698_v37 = vsel %vm356_vm1, %v4625_v26, -inf  ;;  %v1677_v17 = vsel %vm356_vm1, %v4632_v46, -inf  ;;  %v1525_v31 = vadd.s32 %v1524_v59, %v1522_v38 }
 0x5fb   :  { %1699 = vmax.xlane.f32.xlu1 %v1698_v37  ;;  %v1613_v29 = vsel %vm700_vm11, %v1612_v18, %v1608_v21  ;;  %1678 = vmax.xlane.f32.xlu0 %v1677_v17  ;;  %v1360_v49 = vadd.s32 %v1359_v53, %v1357_v35  ;;  %v1506_v22 = vpop.xlane.xlu1 %1505  ;;  %v1418_v18 = vcvt.f32.s32 %v4564_v45  ;;  %v1389_v38 = vshll.u32 %v1388_v42, 16 }
 0x5fc   :  { %vm1649_vm12 = vcmp.eq.s32.totalorder %v3341_v1, %v1525_v31  ;;  %v1507_v48 = vcvt.f32.s32 %v1506_v22  ;;  %v1622_v60 = vrot.slane %v1525_v31, %v3700_v15  ;;  %v1554_v35 = vshll.u32 %v1553_v55, 16  ;;  %v5748_v55 = vld [vmem:[#allocation32_spill] sm:$0xff] }
 0x5fd   :  { %v1568_v2 = vrot.slane %v1360_v49, %v3675_v41  ;;  %v4640_v7 = vsel %vm1649_vm12, -inf, %v4206_v40  ;;  %vm1638_vm14 = vcmp.eq.s32.totalorder %v3341_v1, %v1360_v49 }
 0x5fe   :  { %v1707_v19 = vsel %vm356_vm1, %v4640_v7, -inf  ;;  %v4648_v27 = vsel %vm1638_vm14, -inf, %v4213_v47  ;;  %v1510_v8 = vadd.s32 %v1509_v16, %v1507_v48  ;;  %v1401_v47 = vpop.xlane.xlu0 %1400 }
 0x5ff   :  { %v1569_v39 = vsel %vm693_vm8, %v1568_v2, %v4599_v56  ;;  %1708 = vmax.xlane.f32.xlu1 %v1707_v19  ;;  %v1674_v40 = vsel %vm356_vm1, %v4648_v27, -inf  ;;  %v1538_v56 = vcvt.f32.s32 %v4550_v5  ;;  %v1402_v43 = vcvt.f32.s32 %v1401_v47 }
 0x600   :  { %1675 = vmax.xlane.f32.xlu0 %v1674_v40  ;;  %v1574_v9 = vsel %vm700_vm11, %v1573_v61, %v1569_v39  ;;  %v1617_v10 = vrot.slane %v1510_v8, %v3722_v25  ;;  %vm1648_vm2 = vcmp.eq.s32.totalorder %v3341_v1, %v1510_v8 }
 0x601   :  { %v4659_v13 = vsel %vm1648_vm2, -inf, %v4231_v58  ;;  %v1405_v28 = vadd.s32 %v1404_v44, %v1402_v43  ;;  %v1536_v58 = vpop.xlane.xlu1 %1535  ;;  %v1539_v36 = vshll.u32 %v1538_v56, 16  ;;  %v5746_v43 = vld [vmem:[#allocation31_spill] sm:$0xff] }
 0x602   :  { %v1618_v24 = vsel %vm707_vm13, %v1617_v10, %v1613_v29  ;;  %v1704_v63 = vsel %vm356_vm1, %v4659_v13, -inf  ;;  %v1537_v21 = vcvt.f32.s32 %v1536_v58  ;;  %v1386_v5 = vpop.xlane.xlu0 %1385  ;;  %v1419_v29 = vshll.u32 %v1418_v18, 16 }
 0x603   :  { %v1623_v59 = vsel %vm714_vm15, %v1622_v60, %v1618_v24  ;;  %1705 = vmax.xlane.f32.xlu1 %v1704_v63  ;;  %vm1641_vm3 = vcmp.eq.s32.totalorder %v3341_v1, %v1405_v28  ;;  %v1387_v23 = vcvt.f32.s32 %v1386_v5  ;;  %v1583_v31 = vrot.slane %v1405_v28, %v3700_v15  ;;  %v5751_v5 = vld [vmem:[#allocation34_spill] sm:$0xff] }
 0x604   :  { %v4671_v37 = vsel %vm1641_vm3, -inf, %v4244_v14  ;;  %v1540_v54 = vadd.s32 %v1539_v36, %v1537_v21  ;;  %v5750_v21 = vld [vmem:[#allocation9_spill] sm:$0xff] }
 0x605   :  { %v1683_v53 = vsel %vm356_vm1, %v4671_v37, -inf  ;;  %v1390_v45 = vadd.s32 %v1389_v38, %v1387_v23  ;;  %v1551_v17 = vpop.xlane.xlu1 %1550  ;;  %v2069_v38 = vsub.f32 %v5751_v5, %v5750_v21  ;;  %v5752_v23 = vld [vmem:[#allocation8_spill] sm:$0xff] }
 0x606   :  { %1684 = vmax.xlane.f32.xlu0 %v1683_v53  ;;  %v1627_v49 = vrot.slane %v1540_v54, %v3735_v57  ;;  %v1552_v16 = vcvt.f32.s32 %v1551_v17  ;;  %v1416_v22 = vpop.xlane.xlu0 %1415  ;;  %vm1650_vm6 = vcmp.eq.s32.totalorder %v3341_v1, %v1540_v54  ;;  %v5753_v54 = vld [vmem:[#allocation35_spill] sm:$0xff]  ;;  %v5757_v17 = vld [vmem:[#allocation37_spill] sm:$0xff] }
 0x607   :  { %v1578_v14 = vrot.slane %v1390_v45, %v3722_v25  ;;  %v1417_v2 = vcvt.f32.s32 %v1416_v22  ;;  %v4681_v48 = vsel %vm1650_vm6, -inf, %v4256_v20  ;;  %vm1640_vm9 = vcmp.eq.s32.totalorder %v3341_v1, %v1390_v45  ;;  %v5756_v45 = vld [vmem:[#allocation12_spill] sm:$0xff]  ;;  %v5759_v22 = vld [vmem:[#allocation38_spill] sm:$0xff] }
 0x608   :  { %v1628_v62 = vsel %vm721_vm0, %v1627_v49, %v1623_v59  ;;  %v1555_v52 = vadd.s32 %v1554_v35, %v1552_v16  ;;  %v1710_v61 = vsel %vm356_vm1, %v4681_v48, -inf  ;;  %v4688_v19 = vsel %vm1640_vm9, -inf, %v4264_v3  ;;  %v5754_v35 = vld [vmem:[#allocation11_spill] sm:$0xff]  ;;  %v5758_v16 = vld [vmem:[#allocation10_spill] sm:$0xff] }
 0x609   :  { %v1579_v39 = vsel %vm707_vm13, %v1578_v14, %v1574_v9  ;;  %v1420_v8 = vadd.s32 %v1419_v29, %v1417_v2  ;;  %1711 = vmax.xlane.f32.xlu1 %v1710_v61  ;;  %v1680_v40 = vsel %vm356_vm1, %v4688_v19, -inf  ;;  %v1434_v20 = vshll.u32 %v1433_v6, 16  ;;  %v5755_v29 = vld [vmem:[#allocation36_spill] sm:$0xff] }
 0x60a   :  { %v1632_v10 = vrot.slane %v1555_v52, %v3796_v51  ;;  %v1584_v44 = vsel %vm714_vm15, %v1583_v31, %v1579_v39  ;;  %1681 = vmax.xlane.f32.xlu0 %v1680_v40  ;;  %v1431_v60 = vpop.xlane.xlu0 %1430  ;;  %vm1651_vm10 = vcmp.eq.s32.totalorder %v3341_v1, %v1555_v52  ;;  %v2077_v53 = vsub.f32 %v5753_v54, %v5752_v23  ;;  %v5761_v52 = vld [vmem:[#allocation39_spill] sm:$0xff]  ;;  %v5763_v40 = vld [vmem:[#allocation40_spill] sm:$0xff] }
 0x60b   :  { %v1588_v47 = vrot.slane %v1420_v8, %v3735_v57  ;;  %v1432_v3 = vcvt.f32.s32 %v1431_v60  ;;  %v4698_v56 = vsel %vm1651_vm10, -inf, %v4275_v30  ;;  %vm1642_vm12 = vcmp.eq.s32.totalorder %v3341_v1, %v1420_v8  ;;  %v5762_v8 = vld [vmem:[#allocation13_spill] sm:$0xff]  ;;  %v5771_v54 = vld [vmem:[#allocation44_spill] sm:$0xff] }
 0x60c   :  { %v1633_v9 = vsel %vm728_vm4, %v1632_v10, %v1628_v62  ;;  %v1713_v24 = vsel %vm356_vm1, %v4698_v56, -inf  ;;  %v4705_v63 = vsel %vm1642_vm12, -inf, %v5746_v43  ;;  %v2068_v6 = vsub.f32 %v5755_v29, %v5754_v35  ;;  %v5760_v62 = vld [vmem:[#allocation14_spill] sm:$0xff]  ;;  %v5765_v60 = vld [vmem:[#allocation41_spill] sm:$0xff] }
 0x60d   :  { %5747 = vst [vmem:[#allocation31_spill] sm:$0xff] %v4705_v63  ;;  %1635 = vst.msk [vmem:[#allocation4 + $0x6] sm:$0x1] %vm769_vm7, %v1633_v9  ;;  %v1589_v42 = vsel %vm721_vm0, %v1588_v47, %v1584_v44  ;;  %v1435_v59 = vadd.s32 %v1434_v20, %v1432_v3  ;;  %1714 = vmax.xlane.f32.xlu1 %v1713_v24  ;;  %v1686_v30 = vsel %vm356_vm1, %v4705_v63, -inf  ;;  %v2085_v49 = vmul.f32 0.17677669, %v2069_v38 }
 0x60e   :  { %1687 = vmax.xlane.f32.xlu0 %v1686_v30  ;;  %v2079_v31 = vsub.f32 %v5757_v17, %v5756_v45  ;;  %v2076_v14 = vsub.f32 %v5759_v22, %v5758_v16  ;;  %v2093_v2 = vmul.f32 0.17677669, %v2077_v53  ;;  %v2078_v61 = vsub.f32 %v5761_v52, %v5760_v62  ;;  %v5764_v44 = vld [vmem:[#allocation16_spill] sm:$0xff]  ;;  %v5766_v24 = vld [vmem:[#allocation15_spill] sm:$0xff]  ;;  %v5767_v43 = vld [vmem:[#allocation42_spill] sm:$0xff] }
 0x60f   :  { %v1593_v28 = vrot.slane %v1435_v59, %v3796_v51  ;;  %vm1643_vm14 = vcmp.eq.s32.totalorder %v3341_v1, %v1435_v59  ;;  %v2084_v39 = vmul.f32 0.17677669, %v2068_v6  ;;  %v2071_v20 = vsub.f32 %v5763_v40, %v5762_v8  ;;  %v5770_v38 = vld [vmem:[#allocation17_spill] sm:$0xff]  ;;  %v5772_v17 = vld [vmem:[#allocation20_spill] sm:$0xff]  ;;  %v5775_v40 = vld [vmem:[#allocation46_spill] sm:$0xff] }
 0x610   :  { %v4714_v18 = vsel %vm1643_vm14, -inf, %v5748_v55  ;;  %v2095_v10 = vmul.f32 0.17677669, %v2079_v31  ;;  %v2081_v47 = vsub.f32 %v5765_v60, %v5764_v44  ;;  %v2102_v3 = vmul.f32 1.442695, %v2085_v49  ;;  %v5769_v55 = vld [vmem:[#allocation43_spill] sm:$0xff] }
 0x611   :  { %5749 = vst [vmem:[#allocation32_spill] sm:$0xff] %v4714_v18  ;;  %v1594_v58 = vsel %vm728_vm4, %v1593_v28, %v1589_v42  ;;  %v1689_v36 = vsel %vm356_vm1, %v4714_v18, -inf  ;;  %v2092_v9 = vmul.f32 0.17677669, %v2076_v14  ;;  %v2070_v42 = vsub.f32 %v5767_v43, %v5766_v24  ;;  %v5768_v28 = vld [vmem:[#allocation18_spill] sm:$0xff]  ;;  %v5773_v31 = vld [vmem:[#allocation45_spill] sm:$0xff] }
 0x612   :  { %1634 = vst.msk [vmem:[#allocation4 + $0x2] sm:$0x1] %vm769_vm7, %v1594_v58  ;;  %1690 = vmax.xlane.f32.xlu0 %v1689_v36  ;;  %v2118_v59 = vmul.f32 1.442695, %v2093_v2  ;;  %v2094_v30 = vmul.f32 0.17677669, %v2078_v61  ;;  %v2080_v58 = vsub.f32 %v5769_v55, %v5768_v28  ;;  %v2073_v53 = vsub.f32 %v5771_v54, %v5770_v38 }
 0x613   :  { %v2100_v36 = vmul.f32 1.442695, %v2084_v39  ;;  %v2087_v5 = vmul.f32 0.17677669, %v2071_v20  ;;  %v2122_v29 = vmul.f32 1.442695, %v2095_v10  ;;  %v2082_v22 = vsub.f32 %v5773_v31, %v5772_v17 }
 0x614   :  { %v2097_v6 = vmul.f32 0.17677669, %v2081_v47  ;;  %2936 = vpow2.f32 %v2102_v3  ;;  %v2116_v49 = vmul.f32 1.442695, %v2092_v9  ;;  %v2086_v14 = vmul.f32 0.17677669, %v2070_v42 }
 0x615   :  { %2938 = vpow2.f32 %v2118_v59  ;;  %v2120_v52 = vmul.f32 1.442695, %v2094_v30  ;;  %v2096_v2 = vmul.f32 0.17677669, %v2080_v58  ;;  %v5774_v61 = vld [vmem:[#allocation19_spill] sm:$0xff]  ;;  %v5776_v43 = vld [vmem:[#allocation33_spill] sm:$0xff] }
 0x616   :  { %v2072_v60 = vsub.f32 %v5775_v40, %v5774_v61  ;;  %2940 = vpow2.f32 %v2100_v36  ;;  %v2106_v39 = vmul.f32 1.442695, %v2087_v5  ;;  %v2089_v20 = vmul.f32 0.17677669, %v2073_v53  ;;  %v5777_v54 = vld [vmem:[#allocation50_spill] sm:$0xff]  ;;  %v5782_v40 = vld [vmem:[#allocation47_spill] sm:$0xff] }
 0x617   :  { %v2149_v55 = vsub.f32 %v5776_v43, %v5750_v21  ;;  %2942 = vpow2.f32 %v2122_v29  ;;  %v2126_v10 = vmul.f32 1.442695, %v2097_v6  ;;  %v2098_v47 = vmul.f32 0.17677669, %v2082_v22  ;;  %v5778_v29 = vld [vmem:[#allocation22_spill] sm:$0xff]  ;;  %v5779_v6 = vld [vmem:[#allocation48_spill] sm:$0xff] }
 0x618   :  { %v2157_v3 = vsub.f32 %v5777_v54, %v5752_v23  ;;  %2944 = vpow2.f32 %v2116_v49  ;;  %v2104_v9 = vmul.f32 1.442695, %v2086_v14  ;;  %v2124_v42 = vmul.f32 1.442695, %v2096_v2  ;;  %v5780_v14 = vld [vmem:[#allocation51_spill] sm:$0xff]  ;;  %v5781_v2 = vld [vmem:[#allocation21_spill] sm:$0xff] }
 0x619   :  { %2946 = vpow2.f32 %v2120_v52  ;;  %v2088_v59 = vmul.f32 0.17677669, %v2072_v60  ;;  %v2110_v30 = vmul.f32 1.442695, %v2089_v20  ;;  %v2165_v58 = vmul.f32 0.17677669, %v2149_v55 }
 0x61a   :  { %2948 = vpow2.f32 %v2106_v39  ;;  %v2128_v36 = vmul.f32 1.442695, %v2098_v47  ;;  %v2173_v5 = vmul.f32 0.17677669, %v2157_v3  ;;  %v2083_v31 = vsub.f32 %v5779_v6, %v5778_v29  ;;  %v5784_v20 = vld [vmem:[#allocation23_spill] sm:$0xff]  ;;  %v5785_v43 = vld [vmem:[#allocation49_spill] sm:$0xff] }
 0x61b   :  { %2950 = vpow2.f32 %v2126_v10  ;;  %v2108_v53 = vmul.f32 1.442695, %v2088_v59  ;;  %v2182_v22 = vmul.f32 1.442695, %v2165_v58  ;;  %v2148_v52 = vsub.f32 %v5780_v14, %v5754_v35  ;;  %v5787_v54 = vld [vmem:[#allocation52_spill] sm:$0xff]  ;;  %v5789_v59 = vld [vmem:[#allocation53_spill] sm:$0xff] }
 0x61c   :  { %2952 = vpow2.f32 %v2104_v9  ;;  %v2198_v49 = vmul.f32 1.442695, %v2173_v5  ;;  %v2074_v60 = vsub.f32 %v5782_v40, %v5781_v2  ;;  %v2075_v55 = vsub.f32 %v5785_v43, %v5784_v20  ;;  %v5792_v6 = vld [vmem:[#allocation54_spill] sm:$0xff]  ;;  %v5794_v43 = vld [vmem:[#allocation55_spill] sm:$0xff]  ;;  %v5796_v51 = vld [vmem:[#allocation56_spill] sm:$0xff] }
 0x61d   :  { %2954 = vpow2.f32 %v2124_v42  ;;  %v2099_v47 = vmul.f32 0.17677669, %v2083_v31  ;;  %v2159_v3 = vsub.f32 %v5787_v54, %v5756_v45  ;;  %v2164_v42 = vmul.f32 0.17677669, %v2148_v52 }
 0x61e   :  { %2956 = vpow2.f32 %v2110_v30  ;;  %v2156_v30 = vsub.f32 %v5789_v59, %v5758_v16  ;;  %v2158_v31 = vsub.f32 %v5792_v6, %v5760_v62 }
 0x61f   :  { %2958 = vpow2.f32 %v2128_v36  ;;  %v2090_v36 = vmul.f32 0.17677669, %v2074_v60  ;;  %v2130_v14 = vmul.f32 1.442695, %v2099_v47  ;;  %v2175_v40 = vmul.f32 0.17677669, %v2159_v3 }
 0x620   :  { %2960 = vpow2.f32 %v2108_v53  ;;  %v2091_v53 = vmul.f32 0.17677669, %v2075_v55  ;;  %v2180_v54 = vmul.f32 1.442695, %v2164_v42  ;;  %v2172_v59 = vmul.f32 0.17677669, %v2156_v30 }
 0x621   :  { %v4756_v39 = vpop.eup %2936  ;;  %2962 = vpow2.f32 %v2182_v22  ;;  %v2161_v60 = vsub.f32 %v5796_v51, %v5764_v44  ;;  %v2112_v47 = vmul.f32 1.442695, %v2090_v36  ;;  %v2174_v51 = vmul.f32 0.17677669, %v2158_v31  ;;  %v5803_v31 = vld [vmem:[#allocation58_spill] sm:$0xff] }
 0x622   :  { %5783 = vst [vmem:[#allocation9_spill] sm:$0xff] %v4756_v39  ;;  %v4760_v10 = vpop.eup %2938  ;;  %2964 = vpow2.f32 %v2198_v49  ;;  %v2151_v49 = vsub.f32 %v5794_v43, %v5762_v8  ;;  %v2133_v55 = vadd.f32 1.0, %v4756_v39  ;;  %v2114_v30 = vmul.f32 1.442695, %v2091_v53 }
 0x623   :  { %5786 = vst [vmem:[#allocation34_spill] sm:$0xff] %v4760_v10  ;;  %v4764_v9 = vpop.eup %2940  ;;  %v2141_v6 = vadd.f32 1.0, %v4760_v10  ;;  %2966 = vpow2.f32 %v2130_v14  ;;  %v2202_v10 = vmul.f32 1.442695, %v2175_v40  ;;  %v2196_v36 = vmul.f32 1.442695, %v2172_v59 }
 0x624   :  { %5788 = vst [vmem:[#allocation8_spill] sm:$0xff] %v4764_v9  ;;  %v4768_v58 = vpop.eup %2942  ;;  %v4787_v25 = vadd.f32 1.0, %v4764_v9  ;;  %v2167_v9 = vmul.f32 0.17677669, %v2151_v49  ;;  %2968 = vpow2.f32 %v2180_v54  ;;  %v2177_v41 = vmul.f32 0.17677669, %v2161_v60 }
 0x625   :  { %5790 = vst [vmem:[#allocation35_spill] sm:$0xff] %v4768_v58  ;;  %v4770_v5 = vpop.eup %2944  ;;  %v4792_v43 = vadd.f32 1.0, %v4768_v58  ;;  %v5801_v58 = vld [vmem:[#allocation57_spill] sm:$0xff]  ;;  %2970 = vpow2.f32 %v2112_v47  ;;  %v5804_v14 = vld [vmem:[#allocation59_spill] sm:$0xff] }
 0x626   :  { %5791 = vst [vmem:[#allocation11_spill] sm:$0xff] %v4770_v5  ;;  %v4774_v22 = vpop.eup %2946  ;;  %v4795_v42 = vadd.f32 1.0, %v4770_v5  ;;  %v2150_v18 = vsub.f32 %v5801_v58, %v5766_v24  ;;  %v2153_v40 = vsub.f32 %v5804_v14, %v5770_v38  ;;  %2972 = vpow2.f32 %v2114_v30 }
 0x627   :  { %5793 = vst [vmem:[#allocation36_spill] sm:$0xff] %v4774_v22  ;;  %v4778_v52 = vpop.eup %2948  ;;  %v4800_v39 = vadd.f32 1.0, %v4774_v22  ;;  %v2160_v22 = vsub.f32 %v5803_v31, %v5768_v28  ;;  %v2200_v58 = vmul.f32 1.442695, %v2174_v51  ;;  %2974 = vpow2.f32 %v2202_v10 }
 0x628   :  { %5795 = vst [vmem:[#allocation12_spill] sm:$0xff] %v4778_v52  ;;  %v4782_v57 = vpop.eup %2950  ;;  %v4809_v53 = vadd.f32 1.0, %v4778_v52  ;;  %v2186_v31 = vmul.f32 1.442695, %v2167_v9  ;;  %2976 = vpow2.f32 %v2196_v36  ;;  %v2169_v34 = vmul.f32 0.17677669, %v2153_v40 }
 0x629   :  { %5797 = vst [vmem:[#allocation37_spill] sm:$0xff] %v4782_v57  ;;  %v4789_v3 = vpop.eup %2952  ;;  %v4816_v49 = vadd.f32 1.0, %v4782_v57  ;;  %v2206_v57 = vmul.f32 1.442695, %v2177_v41  ;;  %v2176_v63 = vmul.f32 0.17677669, %v2160_v22  ;;  %2978 = vpow2.f32 %v2200_v58 }
 0x62a   :  { %5798 = vst [vmem:[#allocation10_spill] sm:$0xff] %v4789_v3  ;;  %v4797_v15 = vpop.eup %2954  ;;  %v4819_v54 = vadd.f32 1.0, %v4789_v3  ;;  %v2166_v3 = vmul.f32 0.17677669, %v2150_v18  ;;  %v5807_v9 = vld [vmem:[#allocation60_spill] sm:$0xff]  ;;  %2980 = vpow2.f32 %v2186_v31 }
 0x62b   :  { %5799 = vst [vmem:[#allocation38_spill] sm:$0xff] %v4797_v15  ;;  %v4802_v32 = vpop.eup %2956  ;;  %v4824_v60 = vadd.f32 1.0, %v4797_v15  ;;  %2982 = vpow2.f32 %v2206_v57  ;;  %v2204_v58 = vmul.f32 1.442695, %v2176_v63 }
 0x62c   :  { %5800 = vst [vmem:[#allocation14_spill] sm:$0xff] %v4802_v32  ;;  %v4806_v5 = vpop.eup %2958  ;;  %v4827_v47 = vadd.f32 1.0, %v4802_v32 }
 0x62d   :  { %5802 = vst [vmem:[#allocation39_spill] sm:$0xff] %v4806_v5  ;;  %v4821_v59 = vpop.eup %2960  ;;  %v4832_v14 = vadd.f32 1.0, %v4806_v5  ;;  %v2162_v5 = vsub.f32 %v5807_v9, %v5772_v17  ;;  %v5809_v9 = vld [vmem:[#allocation61_spill] sm:$0xff] }
 0x62e   :  { %5805 = vst [vmem:[#allocation13_spill] sm:$0xff] %v4821_v59  ;;  %v4829_v52 = vpop.eup %2962  ;;  %v4839_v10 = vadd.f32 1.0, %v4821_v59  ;;  %v2152_v59 = vsub.f32 %v5809_v9, %v5774_v61 }
 0x62f   :  { %5806 = vst [vmem:[#allocation40_spill] sm:$0xff] %v4829_v52  ;;  %v4834_v51 = vpop.eup %2964  ;;  %v4845_v41 = vadd.f32 %v4829_v52, %v2133_v55  ;;  %v2178_v52 = vmul.f32 0.17677669, %v2162_v5 }
 0x630   :  { %v4863_v63 = vpop.eup %2966 }
 0x677   :  { %v1673_v30 = vpop.xlane.xlu1 %1672 }
 0x678   :  { %vm1717_vm2 = vcmp.eq.f32.partialorder %v4579_v4, %v1673_v30  ;;  %v2229_v32 = vsub.f32 %v1673_v30, %v5750_v21  ;;  %v4851_v4 = vadd.f32 %v4834_v51, %v2141_v6  ;;  %v2184_v21 = vmul.f32 1.442695, %v2166_v3 }
 0x679   :  { %v1733_v36 = vsel %vm1717_vm2, %v3341_v1, 64  ;;  %v2190_v30 = vmul.f32 1.442695, %v2169_v34 }
 0x67a   :  { %v4848_v18 = vsel %vm356_vm1, %v1733_v36, 2147483647  ;;  %v2245_v22 = vmul.f32 0.17677669, %v2229_v32 }
 0x67b   :  { %5808 = vst [vmem:[#allocation16_spill] sm:$0xff] %v4848_v18  ;;  %v1765_v40 = vshra.s32 %v4848_v18, 16  ;;  %v1697_v55 = vpop.xlane.xlu1 %1696  ;;  %v1670_v32 = vpop.xlane.xlu0 %1669  ;;  %v5865_v18 = vld [vmem:[#allocation38_spill] sm:$0xff] }
 0x67c   :  { %v2262_v15 = vmul.f32 1.442695, %v2245_v22  ;;  %vm1725_vm3 = vcmp.eq.f32.partialorder %v4588_v50, %v1697_v55  ;;  %v2237_v31 = vsub.f32 %v1697_v55, %v5752_v23  ;;  %vm1716_vm6 = vcmp.eq.f32.partialorder %v4595_v11, %v1670_v32  ;;  %v4870_v23 = vpop.eup %2968 }
 0x67d   :  { %v4858_v36 = vcvt.s32.f32 %v1765_v40  ;;  %v1741_v57 = vsel %vm1725_vm3, %v3341_v1, 64  ;;  %v2228_v34 = vsub.f32 %v1670_v32, %v5754_v35  ;;  %v1732_v50 = vsel %vm1716_vm6, %v3341_v1, 64  ;;  %v4876_v3 = vpop.eup %2970 }
 0x67e   :  { %2984 = vpow2.f32 %v2262_v15  ;;  %v4866_v6 = vsel %vm356_vm1, %v1741_v57, 2147483647  ;;  %v2253_v5 = vmul.f32 0.17677669, %v2237_v31  ;;  %v4873_v15 = vsel %vm356_vm1, %v1732_v50, 2147483647  ;;  %v4881_v32 = vpop.eup %2972 }
 0x67f   :  { %5810 = vst [vmem:[#allocation41_spill] sm:$0xff] %v4858_v36  ;;  %2986 = vpow2.f32 %v2184_v21  ;;  %5811 = vst [vmem:[#allocation15_spill] sm:$0xff] %v4866_v6  ;;  %1768 = vmin.xlane.f32.xlu1 %v4858_v36  ;;  %v2244_v11 = vmul.f32 0.17677669, %v2228_v34  ;;  %v1885_v35 = vshra.s32 %v4866_v6, 16  ;;  %v5813_v21 = vld [vmem:[#allocation62_spill] sm:$0xff]  ;;  %v4887_v50 = vpop.eup %2974 }
 0x680   :  { %2988 = vpow2.f32 %v2204_v58  ;;  %5812 = vst [vmem:[#allocation42_spill] sm:$0xff] %v4873_v15  ;;  %v2168_v22 = vmul.f32 0.17677669, %v2152_v59  ;;  %v2163_v40 = vsub.f32 %v5813_v21, %v5778_v29  ;;  %v2278_v9 = vmul.f32 1.442695, %v2253_v5  ;;  %v1703_v55 = vpop.xlane.xlu1 %1702 }
 0x681   :  { %v1750_v31 = vshra.s32 %v4873_v15, 16  ;;  %v2260_v57 = vmul.f32 1.442695, %v2244_v11  ;;  %vm1727_vm9 = vcmp.eq.f32.partialorder %v4605_v33, %v1703_v55  ;;  %v2239_v58 = vsub.f32 %v1703_v55, %v5756_v45  ;;  %v4896_v15 = vpop.eup %2976 }
 0x682   :  { %v4885_v34 = vcvt.s32.f32 %v1885_v35  ;;  %v4891_v59 = vadd.f32 %v4870_v23, %v4787_v25  ;;  %2990 = vpow2.f32 %v2278_v9  ;;  %v1743_v5 = vsel %vm1727_vm9, %v3341_v1, 64  ;;  %v1694_v35 = vpop.xlane.xlu0 %1693 }
 0x683   :  { %v4894_v21 = vcvt.s32.f32 %v1750_v31  ;;  %v2208_v11 = vmul.f32 1.442695, %v2178_v52  ;;  %2992 = vpow2.f32 %v2260_v57  ;;  %v4899_v33 = vsel %vm356_vm1, %v1743_v5, 2147483647  ;;  %v4908_v31 = vpop.eup %2978 }
 0x684   :  { %5814 = vst [vmem:[#allocation18_spill] sm:$0xff] %v4885_v34  ;;  %5816 = vst [vmem:[#allocation17_spill] sm:$0xff] %v4899_v33  ;;  %v2255_v45 = vmul.f32 0.17677669, %v2239_v58  ;;  %1888 = vmin.xlane.f32.xlu1 %v4885_v34  ;;  %v4902_v55 = vmul.f32 1.442695, %v2168_v22  ;;  %vm1724_vm10 = vcmp.eq.f32.partialorder %v4614_v0, %v1694_v35  ;;  %v2236_v25 = vsub.f32 %v1694_v35, %v5758_v16  ;;  %v4911_v5 = vpop.eup %2980  ;;  %v1700_v35 = vpop.xlane.xlu1 %1699 }
 0x685   :  { %5815 = vst [vmem:[#allocation43_spill] sm:$0xff] %v4894_v21  ;;  %1753 = vmin.xlane.f32.xlu0 %v4894_v21  ;;  %v1915_v9 = vshra.s32 %v4899_v33, 16  ;;  %2994 = vpow2.f32 %v2190_v30  ;;  %v2179_v52 = vmul.f32 0.17677669, %v2163_v40  ;;  %v1740_v58 = vsel %vm1724_vm10, %v3341_v1, 64  ;;  %v5817_v22 = vld [vmem:[#allocation63_spill] sm:$0xff]  ;;  %v4920_v33 = vpop.eup %2982 }
 0x686   :  { %v2282_v57 = vmul.f32 1.442695, %v2255_v45  ;;  %v2154_v34 = vsub.f32 %v5817_v22, %v5781_v2  ;;  %v4916_v0 = vsel %vm356_vm1, %v1740_v58, 2147483647  ;;  %v2252_v16 = vmul.f32 0.17677669, %v2236_v25  ;;  %v1679_v40 = vpop.xlane.xlu0 %1678 }
 0x687   :  { %5818 = vst [vmem:[#allocation44_spill] sm:$0xff] %v4916_v0  ;;  %v4918_v21 = vcvt.s32.f32 %v1915_v9  ;;  %5820 = vst [vmem:[#allocation45_spill] sm:$0xff] %v4920_v33  ;;  %vm1726_vm12 = vcmp.eq.f32.partialorder %v4625_v26, %v1700_v35  ;;  %v2238_v30 = vsub.f32 %v1700_v35, %v5760_v62  ;;  %v1870_v45 = vshra.s32 %v4916_v0, 16 }
 0x688   :  { %2996 = vpow2.f32 %v2282_v57  ;;  %v2276_v6 = vmul.f32 1.442695, %v2252_v16  ;;  %v1742_v22 = vsel %vm1726_vm12, %v3341_v1, 64  ;;  %vm1719_vm14 = vcmp.eq.f32.partialorder %v4632_v46, %v1679_v40  ;;  %v1709_v0 = vpop.xlane.xlu1 %1708 }
 0x689   :  { %5819 = vst [vmem:[#allocation20_spill] sm:$0xff] %v4918_v21  ;;  %v2231_v25 = vsub.f32 %v1679_v40, %v5762_v8  ;;  %1918 = vmin.xlane.f32.xlu1 %v4918_v21  ;;  %v4930_v9 = vsel %vm356_vm1, %v1742_v22, 2147483647  ;;  %v2254_v57 = vmul.f32 0.17677669, %v2238_v30  ;;  %v1735_v26 = vsel %vm1719_vm14, %v3341_v1, 64 }
 0x68a   :  { %5821 = vst [vmem:[#allocation19_spill] sm:$0xff] %v4930_v9  ;;  %v4933_v58 = vcvt.s32.f32 %v1870_v45  ;;  %2998 = vpow2.f32 %v2276_v6  ;;  %v4938_v16 = vsel %vm356_vm1, %v1735_v26, 2147483647  ;;  %v1900_v46 = vshra.s32 %v4930_v9, 16  ;;  %v1676_v9 = vpop.xlane.xlu0 %1675 }
 0x68b   :  { %v4935_v62 = vpop.eup %2984  ;;  %5823 = vst [vmem:[#allocation33_spill] sm:$0xff] %v4938_v16  ;;  %v2247_v35 = vmul.f32 0.17677669, %v2231_v25  ;;  %3000 = vpow2.f32 %v2208_v11  ;;  %v2280_v30 = vmul.f32 1.442695, %v2254_v57  ;;  %v1795_v45 = vshra.s32 %v4938_v16, 16 }
 0x68c   :  { %5822 = vst [vmem:[#allocation46_spill] sm:$0xff] %v4933_v58  ;;  %v4941_v8 = vpop.eup %2986  ;;  %v2293_v40 = vadd.f32 %v4935_v62, %v4845_v41  ;;  %1873 = vmin.xlane.f32.xlu0 %v4933_v58  ;;  %v2210_v6 = vmul.f32 1.442695, %v2179_v52  ;;  %v2170_v21 = vmul.f32 0.17677669, %v2154_v34  ;;  %v4949_v25 = vcvt.s32.f32 %v1900_v46  ;;  %v5856_v16 = vld [vmem:[#allocation28_spill] sm:$0xff] }
 0x68d   :  { %v4947_v22 = vpop.eup %2988  ;;  %v2266_v26 = vmul.f32 1.442695, %v2247_v35  ;;  %vm1729_vm2 = vcmp.eq.f32.partialorder %v4640_v7, %v1709_v0  ;;  %v2241_v11 = vsub.f32 %v1709_v0, %v5764_v44  ;;  %v4953_v41 = vcvt.s32.f32 %v1795_v45 }
 0x68e   :  { %5824 = vst [vmem:[#allocation50_spill] sm:$0xff] %v4947_v22  ;;  %5825 = vst [vmem:[#allocation22_spill] sm:$0xff] %v4949_v25  ;;  %3002 = vrcp.f32 %v2293_v40  ;;  %v1745_v57 = vsel %vm1729_vm2, %v3341_v1, 64  ;;  %vm1718_vm3 = vcmp.eq.f32.partialorder %v4648_v27, %v1676_v9  ;;  %v2230_v52 = vsub.f32 %v1676_v9, %v5766_v24  ;;  %1903 = vmin.xlane.f32.xlu1 %v4949_v25  ;;  %v5829_v40 = vld [vmem:[#allocation64_spill] sm:$0xff] }
 0x68f   :  { %5826 = vst [vmem:[#allocation48_spill] sm:$0xff] %v4953_v41  ;;  %3004 = vpow2.f32 %v2280_v30  ;;  %v4959_v34 = vpop.eup %2990  ;;  %v4962_v35 = vsel %vm356_vm1, %v1745_v57, 2147483647  ;;  %v2257_v7 = vmul.f32 0.17677669, %v2241_v11  ;;  %v1734_v44 = vsel %vm1718_vm3, %v3341_v1, 64  ;;  %v1706_v11 = vpop.xlane.xlu1 %1705 }
 0x690   :  { %3006 = vpow2.f32 %v2266_v26  ;;  %5827 = vst [vmem:[#allocation51_spill] sm:$0xff] %v4962_v35  ;;  %1798 = vmin.xlane.f32.xlu0 %v4953_v41  ;;  %v4966_v0 = vpop.eup %2992  ;;  %v2301_v27 = vadd.f32 %v4959_v34, %v4851_v4  ;;  %v4971_v24 = vsel %vm356_vm1, %v1734_v44, 2147483647  ;;  %v2246_v9 = vmul.f32 0.17677669, %v2230_v52 }
 0x691   :  { %5828 = vst [vmem:[#allocation21_spill] sm:$0xff] %v4971_v24  ;;  %v1945_v46 = vshra.s32 %v4962_v35, 16  ;;  %v2155_v30 = vsub.f32 %v5829_v40, %v5784_v20  ;;  %v2292_v45 = vadd.f32 %v4966_v0, %v4891_v59  ;;  %v2286_v26 = vmul.f32 1.442695, %v2257_v7 }
 0x692   :  { %v1780_v57 = vshra.s32 %v4971_v24, 16  ;;  %v4979_v41 = vpop.eup %2994  ;;  %3008 = vrcp.f32 %v2301_v27  ;;  %v2264_v4 = vmul.f32 1.442695, %v2246_v9  ;;  %vm1728_vm6 = vcmp.eq.f32.partialorder %v4659_v13, %v1706_v11 }
 0x693   :  { %v2240_v52 = vsub.f32 %v1706_v11, %v5768_v28  ;;  %3010 = vrcp.f32 %v2292_v45  ;;  %v1744_v44 = vsel %vm1728_vm6, %v3341_v1, 64  ;;  %v4984_v35 = vcvt.s32.f32 %v1945_v46  ;;  %v1685_v11 = vpop.xlane.xlu0 %1684 }
 0x694   :  { %v4986_v40 = vcvt.s32.f32 %v1780_v57  ;;  %v2223_v7 = vadd.f32 %v4887_v50, %v4792_v43  ;;  %3012 = vpow2.f32 %v2286_v26  ;;  %v4993_v27 = vsel %vm356_vm1, %v1744_v44, 2147483647 }
 0x695   :  { %5830 = vst [vmem:[#allocation47_spill] sm:$0xff] %v4984_v35  ;;  %v4988_v59 = vpop.eup %2996  ;;  %5832 = vst [vmem:[#allocation49_spill] sm:$0xff] %v4993_v27  ;;  %v2256_v9 = vmul.f32 0.17677669, %v2240_v52  ;;  %v2192_v13 = vmul.f32 1.442695, %v2170_v21  ;;  %3014 = vpow2.f32 %v2264_v4  ;;  %1948 = vmin.xlane.f32.xlu1 %v4984_v35  ;;  %v2220_v46 = vadd.f32 %v4896_v15, %v4795_v42 }
 0x696   :  { %5831 = vst [vmem:[#allocation23_spill] sm:$0xff] %v4986_v40  ;;  %v2171_v24 = vmul.f32 0.17677669, %v2155_v30  ;;  %1783 = vmin.xlane.f32.xlu0 %v4986_v40  ;;  %v1930_v28 = vshra.s32 %v4993_v27, 16  ;;  %v2222_v43 = vadd.f32 %v4908_v31, %v4800_v39  ;;  %3016 = vpow2.f32 %v4902_v55 }
 0x697   :  { %v2284_v45 = vmul.f32 1.442695, %v2256_v9  ;;  %v5003_v26 = vpop.eup %2998  ;;  %v2215_v21 = vadd.f32 %v4911_v5, %v4809_v53  ;;  %3018 = vpow2.f32 %v2210_v6  ;;  %v2303_v30 = vadd.f32 %v4988_v59, %v2223_v7  ;;  %v1712_v9 = vpop.xlane.xlu1 %1711 }
 0x698   :  { %v5008_v57 = vcvt.s32.f32 %v1930_v28  ;;  %v5010_v4 = vpop.eup %3000  ;;  %v2300_v42 = vadd.f32 %v5003_v26, %v2220_v46  ;;  %vm1721_vm9 = vcmp.eq.f32.partialorder %v4671_v37, %v1685_v11  ;;  %v2233_v39 = vsub.f32 %v1685_v11, %v5770_v38  ;;  %v1682_v11 = vpop.xlane.xlu0 %1681 }
 0x699   :  { %5834 = vst [vmem:[#allocation53_spill] sm:$0xff] %v5010_v4  ;;  %3020 = vpow2.f32 %v2284_v45  ;;  %v2225_v55 = vadd.f32 %v4920_v33, %v4816_v49  ;;  %v2194_v53 = vmul.f32 1.442695, %v2171_v24  ;;  %v1737_v6 = vsel %vm1721_vm9, %v3341_v1, 64 }
 0x69a   :  { %5833 = vst [vmem:[#allocation52_spill] sm:$0xff] %v5008_v57  ;;  %3022 = vpow2.f32 %v2192_v13  ;;  %1933 = vmin.xlane.f32.xlu1 %v5008_v57  ;;  %v2214_v44 = vadd.f32 %v4941_v8, %v4819_v54  ;;  %v5024_v7 = vsel %vm356_vm1, %v1737_v6, 2147483647  ;;  %v2249_v37 = vmul.f32 0.17677669, %v2233_v39 }
 0x69b   :  { %v5019_v52 = vpop.eup %3002  ;;  %3024 = vrcp.f32 %v2300_v42  ;;  %5835 = vst [vmem:[#allocation54_spill] sm:$0xff] %v5024_v7  ;;  %v2224_v49 = vadd.f32 %v4947_v22, %v4824_v60  ;;  %v1825_v13 = vshra.s32 %v5024_v7, 16  ;;  %vm1730_vm10 = vcmp.eq.f32.partialorder %v4681_v48, %v1712_v9  ;;  %v5851_v7 = vld [vmem:[#allocation25_spill] sm:$0xff] }
 0x69c   :  { %v5026_v38 = vpop.eup %3004  ;;  %v2667_v24 = vmul.f32 %v5019_v52, %v4935_v62  ;;  %3026 = vrcp.f32 %v2303_v30  ;;  %v2270_v46 = vmul.f32 1.442695, %v2249_v37  ;;  %v2242_v45 = vsub.f32 %v1712_v9, %v5772_v17  ;;  %v1688_v37 = vpop.xlane.xlu0 %1687 }
 0x69d   :  { %v5033_v28 = vpop.eup %3006  ;;  %v2302_v54 = vadd.f32 %v5026_v38, %v2222_v43  ;;  %3028 = vpow2.f32 %v2194_v53  ;;  %v1746_v42 = vsel %vm1730_vm10, %v3341_v1, 64  ;;  %vm1720_vm12 = vcmp.eq.f32.partialorder %v4688_v19, %v1682_v11 }
 0x69e   :  { %v2295_v60 = vadd.f32 %v5033_v28, %v2215_v21  ;;  %v5043_v62 = vadd.f32 %v4979_v41, %v4827_v47  ;;  %v2258_v30 = vmul.f32 0.17677669, %v2242_v45  ;;  %v1736_v43 = vsel %vm1720_vm12, %v3341_v1, 64  ;;  %v1715_v21 = vpop.xlane.xlu1 %1714 }
 0x69f   :  { %3030 = vrcp.f32 %v2302_v54  ;;  %v5046_v39 = vpop.eup %3008  ;;  %v2705_v48 = vrot.slane %v2667_v24, %v3629_v12  ;;  %v2232_v17 = vsub.f32 %v1682_v11, %v5774_v61  ;;  %v5050_v53 = vcvt.s32.f32 %v1825_v13 }
 0x6a0   :  { %3032 = vrcp.f32 %v2295_v60  ;;  %v5052_v6 = vpop.eup %3010  ;;  %v5055_v19 = vsel %vm356_vm1, %v1746_v42, 2147483647  ;;  %v2288_v47 = vmul.f32 1.442695, %v2258_v30  ;;  %vm1731_vm14 = vcmp.eq.f32.partialorder %v4698_v56, %v1715_v21 }
 0x6a1   :  { %5836 = vst [vmem:[#allocation55_spill] sm:$0xff] %v5050_v53  ;;  %3034 = vpow2.f32 %v2270_v46  ;;  %5837 = vst [vmem:[#allocation56_spill] sm:$0xff] %v5055_v19  ;;  %v5058_v9 = vpop.eup %3012  ;;  %v2666_v24 = vmul.f32 %v5052_v6, %v4966_v0  ;;  %v5063_v61 = vsel %vm356_vm1, %v1736_v43, 2147483647  ;;  %v2248_v13 = vmul.f32 0.17677669, %v2232_v17  ;;  %1828 = vmin.xlane.f32.xlu0 %v5050_v53 }
 0x6a2   :  { %5838 = vst [vmem:[#allocation57_spill] sm:$0xff] %v5063_v61  ;;  %v2243_v54 = vsub.f32 %v1715_v21, %v5778_v29  ;;  %v5067_v46 = vpop.eup %3014  ;;  %v2675_v45 = vmul.f32 %v5046_v39, %v4959_v34  ;;  %v2305_v56 = vadd.f32 %v5058_v9, %v2225_v55  ;;  %3036 = vpow2.f32 %v2288_v47  ;;  %v5839_v0 = vld [vmem:[#allocation24_spill] sm:$0xff]  ;;  %v5841_v21 = vld [vmem:[#allocation31_spill] sm:$0xff] }
 0x6a3   :  { %v1747_v11 = vsel %vm1731_vm14, %v3341_v1, 64  ;;  %v5073_v60 = vpop.eup %3016  ;;  %v2701_v42 = vrot.slane %v2666_v24, %v5839_v0  ;;  %v2294_v30 = vadd.f32 %v5067_v46, %v2214_v44  ;;  %v2268_v43 = vmul.f32 1.442695, %v2248_v13 }
 0x6a4   :  { %v2259_v29 = vmul.f32 0.17677669, %v2243_v54  ;;  %v5077_v17 = vpop.eup %3018  ;;  %3038 = vrcp.f32 %v2305_v56  ;;  %vm1722_vm2 = vcmp.eq.f32.partialorder %v5841_v21, %v1688_v37  ;;  %v2234_v34 = vsub.f32 %v1688_v37, %v5781_v2  ;;  %v1691_v37 = vpop.xlane.xlu0 %1690 }
 0x6a5   :  { %5840 = vst [vmem:[#allocation58_spill] sm:$0xff] %v5077_v17  ;;  %v1960_v55 = vshra.s32 %v5055_v19, 16  ;;  %v5085_v53 = vsel %vm686_vm5, %v2705_v48, %v2701_v42  ;;  %3040 = vrcp.f32 %v2294_v30  ;;  %v5088_v24 = vsel %vm356_vm1, %v1747_v11, 2147483647 }
 0x6a6   :  { %v5082_v47 = vpop.eup %3020  ;;  %5842 = vst [vmem:[#allocation59_spill] sm:$0xff] %v5088_v24  ;;  %v2290_v44 = vmul.f32 1.442695, %v2259_v29  ;;  %3042 = vpow2.f32 %v2268_v43  ;;  %v1738_v56 = vsel %vm1722_vm2, %v3341_v1, 64  ;;  %v2250_v2 = vmul.f32 0.17677669, %v2234_v34 }
 0x6a7   :  { %v5090_v13 = vpop.eup %3022  ;;  %v2304_v54 = vadd.f32 %v5082_v47, %v2224_v49  ;;  %v2744_v19 = vrot.slane %v2675_v45, %v3629_v12  ;;  %v5098_v48 = vsel %vm356_vm1, %v1738_v56, 2147483647  ;;  %v5100_v11 = vcvt.s32.f32 %v1960_v55  ;;  %v5845_v29 = vld [vmem:[#allocation32_spill] sm:$0xff] }
 0x6a8   :  { %v5094_v21 = vpop.eup %3024  ;;  %3044 = vpow2.f32 %v2290_v44  ;;  %5843 = vst [vmem:[#allocation60_spill] sm:$0xff] %v5098_v48  ;;  %v2272_v30 = vmul.f32 1.442695, %v2250_v2  ;;  %v1810_v43 = vshra.s32 %v5063_v61, 16  ;;  %vm1723_vm3 = vcmp.eq.f32.partialorder %v5845_v29, %v1691_v37 }
 0x6a9   :  { %5844 = vst [vmem:[#allocation61_spill] sm:$0xff] %v5100_v11  ;;  %v5102_v42 = vpop.eup %3026  ;;  %v2674_v49 = vmul.f32 %v5094_v21, %v5003_v26  ;;  %3046 = vrcp.f32 %v2304_v54  ;;  %1963 = vmin.xlane.f32.xlu1 %v5100_v11  ;;  %v2235_v45 = vsub.f32 %v1691_v37, %v5784_v20  ;;  %v1975_v34 = vshra.s32 %v5088_v24, 16 }
 0x6aa   :  { %v1840_v55 = vshra.s32 %v5098_v48, 16  ;;  %v5112_v44 = vpop.eup %3028  ;;  %3048 = vpow2.f32 %v2272_v30  ;;  %v5115_v26 = vcvt.s32.f32 %v1810_v43  ;;  %v1739_v54 = vsel %vm1723_vm3, %v3341_v1, 64 }
 0x6ab   :  { %v2740_v56 = vrot.slane %v2674_v49, %v5839_v0  ;;  %v2677_v29 = vmul.f32 %v5102_v42, %v4988_v59  ;;  %v5123_v20 = vsel %vm356_vm1, %v1739_v54, 2147483647  ;;  %v2251_v37 = vmul.f32 0.17677669, %v2235_v45 }
 0x6ac   :  { %5846 = vst [vmem:[#allocation62_spill] sm:$0xff] %v5115_v26  ;;  %v5118_v2 = vpop.eup %3030  ;;  %5847 = vst [vmem:[#allocation63_spill] sm:$0xff] %v5123_v20  ;;  %v5125_v11 = vcvt.s32.f32 %v1975_v34  ;;  %1813 = vmin.xlane.f32.xlu0 %v5115_v26  ;;  %v5133_v1 = vcvt.s32.f32 %v1840_v55  ;;  %v1855_v43 = vshra.s32 %v5123_v20, 16  ;;  %v2147_v54 = vadd.f32 1.0, %v4863_v63  ;;  %v5850_v55 = vld [vmem:[#allocation26_spill] sm:$0xff] }
 0x6ad   :  { %v5127_v48 = vpop.eup %3032  ;;  %v2745_v49 = vsel %vm686_vm5, %v2744_v19, %v2740_v56  ;;  %v2676_v30 = vmul.f32 %v5118_v2, %v5026_v38  ;;  %v2138_v45 = vadd.f32 1.0, %v4876_v3  ;;  %v2139_v34 = vadd.f32 1.0, %v4881_v32 }
 0x6ae   :  { %5848 = vst [vmem:[#allocation64_spill] sm:$0xff] %v5125_v11  ;;  %5849 = vst [vmem:[#allocation31_spill] sm:$0xff] %v5133_v1  ;;  %v5136_v59 = vpop.eup %3034  ;;  %v2274_v24 = vmul.f32 1.442695, %v2251_v37  ;;  %1978 = vmin.xlane.f32.xlu1 %v5125_v11  ;;  %v2226_v38 = vadd.f32 %v5010_v4, %v4832_v14  ;;  %v2216_v19 = vadd.f32 %v5073_v60, %v4839_v10 }
 0x6af   :  { %v2749_v56 = vrot.slane %v2676_v30, %v5850_v55  ;;  %v2297_v20 = vadd.f32 %v5136_v59, %v5043_v62  ;;  %v5149_v26 = vpop.eup %3036  ;;  %v2227_v61 = vadd.f32 %v5077_v17, %v2147_v54  ;;  %v2754_v57 = vrot.slane %v2677_v29, %v5851_v7 }
 0x6b0   :  { %v2669_v37 = vmul.f32 %v5127_v48, %v5033_v28  ;;  %3050 = vpow2.f32 %v2274_v24  ;;  %v2306_v10 = vadd.f32 %v5149_v26, %v2226_v38  ;;  %1843 = vmin.xlane.f32.xlu0 %v5133_v1  ;;  %v5158_v30 = vcvt.s32.f32 %v1855_v43  ;;  %v5854_v1 = vld [vmem:[#allocation27_spill] sm:$0xff] }
 0x6b1   :  { %v2750_v14 = vsel %vm693_vm8, %v2749_v56, %v2745_v49  ;;  %3052 = vrcp.f32 %v2297_v20  ;;  %v5160_v62 = vpop.eup %3038  ;;  %v2218_v11 = vadd.f32 %v5090_v13, %v2138_v45  ;;  %v2359_v29 = vrot.slane %v5052_v6, %v5839_v0 }
 0x6b2   :  { %5852 = vst [vmem:[#allocation32_spill] sm:$0xff] %v5158_v30  ;;  %5853 = vst [vmem:[#allocation26_spill] sm:$0xff] %v5160_v62  ;;  %v2755_v54 = vsel %vm700_vm11, %v2754_v57, %v2750_v14  ;;  %v2363_v28 = vrot.slane %v5019_v52, %v3629_v12  ;;  %v5168_v24 = vpop.eup %3040  ;;  %v2219_v20 = vadd.f32 %v5112_v44, %v2139_v34  ;;  %3054 = vrcp.f32 %v2306_v10 }
 0x6b3   :  { %v2679_v49 = vmul.f32 %v5160_v62, %v5058_v9  ;;  %v2398_v43 = vrot.slane %v5094_v21, %v5839_v0  ;;  %v5175_v45 = vpop.eup %3042  ;;  %v2715_v57 = vrot.slane %v2669_v37, %v5851_v7  ;;  %v2668_v38 = vmul.f32 %v5168_v24, %v5067_v46 }
 0x6b4   :  { %v2364_v56 = vsel %vm686_vm5, %v2363_v28, %v2359_v29  ;;  %v2373_v14 = vrot.slane %v5127_v48, %v5851_v7  ;;  %v2296_v10 = vadd.f32 %v5175_v45, %v2216_v19  ;;  %1858 = vmin.xlane.f32.xlu0 %v5158_v30  ;;  %v2368_v40 = vrot.slane %v5168_v24, %v5850_v55 }
 0x6b5   :  { %v5183_v34 = vpop.eup %3044  ;;  %v2764_v9 = vrot.slane %v2679_v49, %v5854_v1  ;;  %v2402_v37 = vrot.slane %v5046_v39, %v3629_v12  ;;  %v2710_v29 = vrot.slane %v2668_v38, %v5850_v55  ;;  %v2407_v35 = vrot.slane %v5118_v2, %v5850_v55 }
 0x6b6   :  { %v5192_v46 = vpop.eup %3046  ;;  %v2307_v28 = vadd.f32 %v5183_v34, %v2227_v61  ;;  %v2412_v19 = vrot.slane %v5102_v42, %v5851_v7  ;;  %3056 = vrcp.f32 %v2296_v10  ;;  %v2369_v30 = vsel %vm693_vm8, %v2368_v40, %v2364_v56  ;;  %v5857_v10 = vld [vmem:[#allocation8_spill] sm:$0xff] }
 0x6b7   :  { %5855 = vst [vmem:[#allocation25_spill] sm:$0xff] %v5192_v46  ;;  %v2678_v49 = vmul.f32 %v5192_v46, %v5082_v47  ;;  %v2403_v27 = vsel %vm686_vm5, %v2402_v37, %v2398_v43  ;;  %v5204_v25 = vpop.eup %3048  ;;  %v2711_v38 = vsel %vm693_vm8, %v2710_v29, %v5085_v53  ;;  %v5209_v61 = vsel %vm700_vm11, %v2373_v14, %v2369_v30  ;;  %v5858_v14 = vld [vmem:[#allocation9_spill] sm:$0xff]  ;;  %v5860_v37 = vld [vmem:[#allocation12_spill] sm:$0xff] }
 0x6b8   :  { %3058 = vrcp.f32 %v2307_v28  ;;  %v2408_v58 = vsel %vm693_vm8, %v2407_v35, %v2403_v27  ;;  %v5214_v47 = vsel %vm700_vm11, %v2715_v57, %v2711_v38  ;;  %v2298_v40 = vadd.f32 %v5204_v25, %v2218_v11  ;;  %v5859_v57 = vld [vmem:[#allocation10_spill] sm:$0xff] }
 0x6b9   :  { %v2759_v36 = vrot.slane %v2678_v49, %v5856_v16  ;;  %v2413_v43 = vsel %vm700_vm11, %v2412_v19, %v2408_v58  ;;  %v2417_v56 = vrot.slane %v5192_v46, %v5856_v16  ;;  %v2422_v53 = vrot.slane %v5160_v62, %v5854_v1  ;;  %v5861_v19 = vld [vmem:[#allocation11_spill] sm:$0xff]  ;;  %v5862_v38 = vld [vmem:[#allocation34_spill] sm:$0xff] }
 0x6ba   :  { %v2438_v30 = vmul.f32 %v5052_v6, %v5857_v10  ;;  %v2439_v35 = vmul.f32 %v5019_v52, %v5858_v14  ;;  %3060 = vrcp.f32 %v2298_v40  ;;  %v2440_v11 = vmul.f32 %v5168_v24, %v5859_v57  ;;  %v5864_v57 = vld [vmem:[#allocation35_spill] sm:$0xff] }
 0x6bb   :  { %v2760_v27 = vsel %vm707_vm13, %v2759_v36, %v2755_v54  ;;  %v2441_v58 = vmul.f32 %v5127_v48, %v5860_v37  ;;  %v2418_v28 = vsel %vm707_vm13, %v2417_v56, %v2413_v43  ;;  %v2446_v49 = vmul.f32 %v5094_v21, %v5861_v19  ;;  %v5863_v54 = vld [vmem:[#allocation36_spill] sm:$0xff] }
 0x6bc   :  { %v2765_v29 = vsel %vm714_vm15, %v2764_v9, %v2760_v27  ;;  %v2447_v10 = vmul.f32 %v5046_v39, %v5862_v38  ;;  %v2423_v36 = vsel %vm714_vm15, %v2422_v53, %v2418_v28  ;;  %v2448_v40 = vmul.f32 %v5118_v2, %v5863_v54  ;;  %v5866_v27 = vld [vmem:[#allocation37_spill] sm:$0xff] }
 0x6bd   :  { %v5237_v14 = vpop.eup %3050  ;;  %v2449_v37 = vmul.f32 %v5102_v42, %v5864_v57  ;;  %v2450_v9 = vmul.f32 %v5192_v46, %v5865_v18  ;;  %v2451_v19 = vmul.f32 %v5160_v62, %v5866_v27  ;;  %v2473_v38 = vrot.slane %v2438_v30, %v5839_v0  ;;  %v5867_v57 = vld [vmem:[#allocation14_spill] sm:$0xff]  ;;  %v5868_v62 = vld [vmem:[#allocation29_spill] sm:$0xff] }
 0x6be   :  { %v5246_v43 = vpop.eup %3052  ;;  %v2299_v56 = vadd.f32 %v5237_v14, %v2219_v20  ;;  %v2477_v53 = vrot.slane %v2439_v35, %v3629_v12  ;;  %v2482_v17 = vrot.slane %v2440_v11, %v5850_v55  ;;  %v2487_v30 = vrot.slane %v2441_v58, %v5851_v7 }
 0x6bf   :  { %v2671_v28 = vmul.f32 %v5246_v43, %v5136_v59  ;;  %v2383_v54 = vrot.slane %v5246_v43, %v5854_v1  ;;  %v2443_v18 = vmul.f32 %v5246_v43, %v5867_v57  ;;  %v5260_v4 = vpop.eup %3054  ;;  %v2512_v35 = vrot.slane %v2446_v49, %v5839_v0  ;;  %v5869_v57 = vld [vmem:[#allocation39_spill] sm:$0xff] }
 0x6c0   :  { %3062 = vrcp.f32 %v2299_v56  ;;  %v2478_v20 = vsel %vm686_vm5, %v2477_v53, %v2473_v38  ;;  %v2680_v59 = vmul.f32 %v5260_v4, %v5149_v26  ;;  %v2427_v33 = vrot.slane %v5260_v4, %v5868_v62 }
 0x6c1   :  { %v2725_v27 = vrot.slane %v2671_v28, %v5854_v1  ;;  %v2452_v11 = vmul.f32 %v5260_v4, %v5869_v57  ;;  %v2483_v46 = vsel %vm693_vm8, %v2482_v17, %v2478_v20  ;;  %v2497_v56 = vrot.slane %v2443_v18, %v5854_v1 }
 0x6c2   :  { %v2516_v38 = vrot.slane %v2447_v10, %v3629_v12  ;;  %v2521_v58 = vrot.slane %v2448_v40, %v5850_v55  ;;  %v2769_v49 = vrot.slane %v2680_v59, %v5868_v62  ;;  %v2428_v53 = vsel %vm721_vm0, %v2427_v33, %v2423_v36 }
 0x6c3   :  { %v2488_v26 = vsel %vm700_vm11, %v2487_v30, %v2483_v46  ;;  %v2526_v28 = vrot.slane %v2449_v37, %v5851_v7  ;;  %v3057_v0 = vpop.eup %3056  ;;  %v2531_v57 = vrot.slane %v2450_v9, %v5856_v16  ;;  %v2536_v17 = vrot.slane %v2451_v19, %v5854_v1  ;;  %v5870_v46 = vld [vmem:[#allocation13_spill] sm:$0xff]  ;;  %v5871_v30 = vld [vmem:[#allocation30_spill] sm:$0xff] }
 0x6c4   :  { %v2517_v22 = vsel %vm686_vm5, %v2516_v38, %v2512_v35  ;;  %v2541_v18 = vrot.slane %v2452_v11, %v5868_v62  ;;  %v2770_v40 = vsel %vm721_vm0, %v2769_v49, %v2765_v29  ;;  %v2670_v20 = vmul.f32 %v3057_v0, %v5175_v45 }
 0x6c5   :  { %v5284_v10 = vpop.eup %3058  ;;  %v2378_v33 = vrot.slane %v3057_v0, %v5856_v16  ;;  %v2442_v36 = vmul.f32 %v3057_v0, %v5870_v46  ;;  %v2522_v35 = vsel %vm693_vm8, %v2521_v58, %v2517_v22 }
 0x6c6   :  { %v2681_v37 = vmul.f32 %v5284_v10, %v5183_v34  ;;  %v2432_v9 = vrot.slane %v5284_v10, %v5871_v30  ;;  %v2453_v19 = vmul.f32 %v5284_v10, %v4863_v63  ;;  %v2720_v59 = vrot.slane %v2670_v20, %v5856_v16 }
 0x6c7   :  { %v2379_v45 = vsel %vm707_vm13, %v2378_v33, %v5209_v61  ;;  %v2492_v29 = vrot.slane %v2442_v36, %v5856_v16  ;;  %v2527_v11 = vsel %vm700_vm11, %v2526_v28, %v2522_v35  ;;  %v3061_v38 = vpop.eup %3060 }
 0x6c8   :  { %v2774_v34 = vrot.slane %v2681_v37, %v5871_v30  ;;  %v2384_v49 = vsel %vm714_vm15, %v2383_v54, %v2379_v45  ;;  %v2433_v46 = vsel %vm728_vm4, %v2432_v9, %v2428_v53  ;;  %v2532_v63 = vsel %vm707_vm13, %v2531_v57, %v2527_v11  ;;  %v5872_v9 = vld [vmem:[#allocation40_spill] sm:$0xff] }
 0x6c9   :  { %v2721_v22 = vsel %vm707_vm13, %v2720_v59, %v5214_v47  ;;  %v2672_v58 = vmul.f32 %v3061_v38, %v5204_v25  ;;  %v2388_v61 = vrot.slane %v3061_v38, %v5868_v62  ;;  %2437 = vst.msk [vmem:[#allocation2 + $0x4] sm:$0x1] %vm769_vm7, %v2433_v46  ;;  %v2444_v28 = vmul.f32 %v3061_v38, %v4876_v3 }
 0x6ca   :  { %v2775_v20 = vsel %vm728_vm4, %v2774_v34, %v2770_v40  ;;  %v2726_v33 = vsel %vm714_vm15, %v2725_v27, %v2721_v22  ;;  %v2493_v54 = vsel %vm707_vm13, %v2492_v29, %v2488_v26  ;;  %v2537_v53 = vsel %vm714_vm15, %v2536_v17, %v2532_v63  ;;  %v5878_v34 = vld [vmem:[#allocation53_spill] sm:$0xff] }
 0x6cb   :  { %2779 = vst.msk [vmem:[#allocation2 + $0x7] sm:$0x1] %vm769_vm7, %v2775_v20  ;;  %v2730_v47 = vrot.slane %v2672_v58, %v5868_v62  ;;  %v2389_v25 = vsel %vm721_vm0, %v2388_v61, %v2384_v49  ;;  %v2498_v57 = vsel %vm714_vm15, %v2497_v56, %v2493_v54  ;;  %v2502_v36 = vrot.slane %v2444_v28, %v5868_v62 }
 0x6cc   :  { %v2542_v3 = vsel %vm721_vm0, %v2541_v18, %v2537_v53  ;;  %v2546_v40 = vrot.slane %v2453_v19, %v5871_v30  ;;  %v2552_v17 = vmul.f32 %v5052_v6, %v4870_v23  ;;  %v2553_v35 = vmul.f32 %v5019_v52, %v5872_v9 }
 0x6cd   :  { %v3063_v37 = vpop.eup %3062  ;;  %v2731_v27 = vsel %vm721_vm0, %v2730_v47, %v2726_v33  ;;  %v2503_v26 = vsel %vm721_vm0, %v2502_v36, %v2498_v57  ;;  %v2554_v19 = vmul.f32 %v5168_v24, %v4941_v8  ;;  %v2555_v29 = vmul.f32 %v5127_v48, %v4911_v5  ;;  %v5873_v24 = vld [vmem:[#allocation50_spill] sm:$0xff] }
 0x6ce   :  { %v2673_v59 = vmul.f32 %v3063_v37, %v5237_v14  ;;  %v2393_v56 = vrot.slane %v3063_v37, %v5871_v30  ;;  %v2445_v45 = vmul.f32 %v3063_v37, %v4881_v32  ;;  %v2547_v18 = vsel %vm728_vm4, %v2546_v40, %v2542_v3 }
 0x6cf   :  { %2551 = vst.msk [vmem:[#allocation2 + $0x5] sm:$0x1] %vm769_vm7, %v2547_v18  ;;  %v2556_v23 = vmul.f32 %v3057_v0, %v5073_v60  ;;  %v2557_v52 = vmul.f32 %v5246_v43, %v4979_v41  ;;  %v2558_v11 = vmul.f32 %v3061_v38, %v5090_v13  ;;  %v2559_v8 = vmul.f32 %v3063_v37, %v5112_v44  ;;  %v5874_v43 = vld [vmem:[#allocation25_spill] sm:$0xff]  ;;  %v5880_v18 = vld [vmem:[#allocation16_spill] sm:$0xff] }
 0x6d0   :  { %v2735_v6 = vrot.slane %v2673_v59, %v5871_v30  ;;  %v2394_v14 = vsel %vm728_vm4, %v2393_v56, %v2389_v25  ;;  %v2507_v32 = vrot.slane %v2445_v45, %v5871_v30  ;;  %v2560_v5 = vmul.f32 %v5094_v21, %v4896_v15  ;;  %v5875_v15 = vld [vmem:[#allocation45_spill] sm:$0xff]  ;;  %v5876_v21 = vld [vmem:[#allocation26_spill] sm:$0xff] }
 0x6d1   :  { %2436 = vst.msk [vmem:[#allocation2] sm:$0x1] %vm769_vm7, %v2394_v14  ;;  %v2561_v60 = vmul.f32 %v5046_v39, %v4834_v51  ;;  %v2562_v41 = vmul.f32 %v5118_v2, %v4908_v31  ;;  %v2563_v13 = vmul.f32 %v5102_v42, %v4887_v50  ;;  %v2564_v38 = vmul.f32 %v5874_v43, %v5873_v24  ;;  %v5877_v39 = vld [vmem:[#allocation24_spill] sm:$0xff]  ;;  %v5879_v50 = vld [vmem:[#allocation58_spill] sm:$0xff]  ;;  %v5886_v43 = vld [vmem:[#allocation43_spill] sm:$0xff] }
 0x6d2   :  { %v2736_v0 = vsel %vm728_vm4, %v2735_v6, %v2731_v27  ;;  %v2508_v48 = vsel %vm728_vm4, %v2507_v32, %v2503_v26  ;;  %v2565_v51 = vmul.f32 %v5876_v21, %v5875_v15  ;;  %v2587_v44 = vrot.slane %v2552_v17, %v5877_v39  ;;  %v5882_v6 = vld [vmem:[#allocation15_spill] sm:$0xff]  ;;  %v5887_v21 = vld [vmem:[#allocation44_spill] sm:$0xff] }
 0x6d3   :  { %2778 = vst.msk [vmem:[#allocation2 + $0x3] sm:$0x1] %vm769_vm7, %v2736_v0  ;;  %2550 = vst.msk [vmem:[#allocation2 + $0x1] sm:$0x1] %vm769_vm7, %v2508_v48  ;;  %v2591_v31 = vrot.slane %v2553_v35, %v3629_v12  ;;  %v2596_v2 = vrot.slane %v2554_v19, %v5850_v55  ;;  %v2566_v49 = vmul.f32 %v5260_v4, %v5878_v34  ;;  %v1764_v19 = vand.u32 65535, %v5880_v18 }
 0x6d4   :  { %v2567_v42 = vmul.f32 %v5284_v10, %v5879_v50  ;;  %v2601_v46 = vrot.slane %v2555_v29, %v5851_v7  ;;  %v2606_v63 = vrot.slane %v2556_v23, %v5856_v16  ;;  %v2611_v58 = vrot.slane %v2557_v52, %v5854_v1  ;;  %v5881_v52 = vld [vmem:[#allocation41_spill] sm:$0xff] }
 0x6d5   :  { %v2592_v22 = vsel %vm686_vm5, %v2591_v31, %v2587_v44  ;;  %v2626_v61 = vrot.slane %v2560_v5, %v5877_v39  ;;  %v2630_v28 = vrot.slane %v2561_v60, %v3629_v12  ;;  %v2616_v33 = vrot.slane %v2558_v11, %v5868_v62  ;;  %v5883_v11 = vld [vmem:[#allocation42_spill] sm:$0xff] }
 0x6d6   :  { %v2597_v20 = vsel %vm693_vm8, %v2596_v2, %v2592_v22  ;;  %v2635_v4 = vrot.slane %v2562_v41, %v5850_v55  ;;  %v2645_v10 = vrot.slane %v2564_v38, %v5856_v16  ;;  %v2621_v53 = vrot.slane %v2559_v8, %v5871_v30  ;;  %v5884_v41 = vld [vmem:[#allocation18_spill] sm:$0xff]  ;;  %v5888_v2 = vld [vmem:[#allocation20_spill] sm:$0xff] }
 0x6d7   :  { %v2602_v54 = vsel %vm700_vm11, %v2601_v46, %v2597_v20  ;;  %v2631_v47 = vsel %vm686_vm5, %v2630_v28, %v2626_v61  ;;  %v2640_v25 = vrot.slane %v2563_v13, %v5851_v7  ;;  %v2655_v3 = vrot.slane %v2566_v49, %v5868_v62  ;;  %v5885_v13 = vld [vmem:[#allocation17_spill] sm:$0xff]  ;;  %v5889_v49 = vld [vmem:[#allocation19_spill] sm:$0xff] }
 0x6d8   :  { %v2607_v57 = vsel %vm707_vm13, %v2606_v63, %v2602_v54  ;;  %v2636_v36 = vsel %vm693_vm8, %v2635_v4, %v2631_v47  ;;  %v2650_v27 = vrot.slane %v2565_v51, %v5854_v1  ;;  %v2660_v26 = vrot.slane %v2567_v42, %v5871_v30  ;;  %v5890_v63 = vld [vmem:[#allocation33_spill] sm:$0xff]  ;;  %v5893_v54 = vld [vmem:[#allocation48_spill] sm:$0xff] }
 0x6d9   :  { %v2612_v40 = vsel %vm714_vm15, %v2611_v58, %v2607_v57  ;;  %v2641_v37 = vsel %vm700_vm11, %v2640_v25, %v2636_v36  ;;  %v1766_v23 = vcvt.s32.f32 %v1764_v19  ;;  %v1884_v14 = vand.u32 65535, %v5882_v6  ;;  %v5891_v58 = vld [vmem:[#allocation46_spill] sm:$0xff]  ;;  %v5894_v25 = vld [vmem:[#allocation51_spill] sm:$0xff]  ;;  %v5895_v36 = vld [vmem:[#allocation21_spill] sm:$0xff] }
 0x6da   :  { %v2617_v17 = vsel %vm721_vm0, %v2616_v33, %v2612_v40  ;;  %v2646_v9 = vsel %vm707_vm13, %v2645_v10, %v2641_v37  ;;  %v1749_v8 = vand.u32 65535, %v5883_v11  ;;  %v1914_v24 = vand.u32 65535, %v5885_v13  ;;  %v5892_v33 = vld [vmem:[#allocation22_spill] sm:$0xff]  ;;  %v5903_v13 = vld [vmem:[#allocation57_spill] sm:$0xff] }
 0x6db   :  { %v2622_v35 = vsel %vm728_vm4, %v2621_v53, %v2617_v17  ;;  %v2651_v59 = vsel %vm714_vm15, %v2650_v27, %v2646_v9  ;;  %v1886_v60 = vcvt.s32.f32 %v1884_v14  ;;  %v1869_v51 = vand.u32 65535, %v5887_v21  ;;  %v5896_v17 = vld [vmem:[#allocation49_spill] sm:$0xff]  ;;  %v5900_v6 = vld [vmem:[#allocation54_spill] sm:$0xff] }
 0x6dc   :  { %v2656_v56 = vsel %vm721_vm0, %v2655_v3, %v2651_v59  ;;  %2664 = vst.msk [vmem:[#allocation2 + $0x2] sm:$0x1] %vm769_vm7, %v2622_v35  ;;  %v1751_v48 = vcvt.s32.f32 %v1749_v8  ;;  %v1916_v31 = vcvt.s32.f32 %v1914_v24  ;;  %v1899_v50 = vand.u32 65535, %v5889_v49  ;;  %v5897_v35 = vld [vmem:[#allocation47_spill] sm:$0xff]  ;;  %v5906_v49 = vld [vmem:[#allocation60_spill] sm:$0xff] }
 0x6dd   :  { %v2661_v45 = vsel %vm728_vm4, %v2660_v26, %v2656_v56  ;;  %v1871_v46 = vcvt.s32.f32 %v1869_v51  ;;  %v1794_v22 = vand.u32 65535, %v5890_v63  ;;  %v1944_v57 = vand.u32 65535, %v5894_v25  ;;  %v5898_v59 = vld [vmem:[#allocation23_spill] sm:$0xff]  ;;  %v5905_v51 = vld [vmem:[#allocation61_spill] sm:$0xff] }
 0x6de   :  { %2665 = vst.msk [vmem:[#allocation2 + $0x6] sm:$0x1] %vm769_vm7, %v2661_v45  ;;  %v1901_v20 = vcvt.s32.f32 %v1899_v50  ;;  %v1779_v3 = vand.u32 65535, %v5895_v36  ;;  %v1929_v9 = vand.u32 65535, %v5896_v17  ;;  %v1824_v14 = vand.u32 65535, %v5900_v6  ;;  %v5901_v8 = vld [vmem:[#allocation55_spill] sm:$0xff] }
 0x6df   :  { %v1796_v10 = vcvt.s32.f32 %v1794_v22  ;;  %v1946_v27 = vcvt.s32.f32 %v1944_v57  ;;  %v1809_v24 = vand.u32 65535, %v5903_v13  ;;  %v1839_v50 = vand.u32 65535, %v5906_v49 }
 0x6e0   :  { %v1781_v26 = vcvt.s32.f32 %v1779_v3  ;;  %v1931_v19 = vcvt.s32.f32 %v1929_v9  ;;  %v1826_v11 = vcvt.s32.f32 %v1824_v14  ;;  %v5911_v3 = vld [vmem:[#allocation32_spill] sm:$0xff] }
 0x708   :  { %v5400_v29 = vpop.xlane.xlu1 %1768 }
 0x709   :  { %vm1770_vm1 = vcmp.eq.f32.partialorder %v5881_v52, %v5400_v29 }
 0x70a   :  { %v1771_v32 = vsel %vm1770_vm1, %v1766_v23, inf  ;;  %v5899_v23 = vld [vmem:[#allocation52_spill] sm:$0xff] }
 0x70b   :  { %1772 = vmin.xlane.f32.xlu1 %v1771_v32 }
 0x70d   :  { %v5406_v5 = vpop.xlane.xlu1 %1888 }
 0x70e   :  { %vm1890_vm6 = vcmp.eq.f32.partialorder %v5884_v41, %v5406_v5  ;;  %v5410_v0 = vpop.xlane.xlu0 %1753  ;;  %v5902_v41 = vld [vmem:[#allocation56_spill] sm:$0xff] }
 0x70f   :  { %vm1755_vm9 = vcmp.eq.f32.partialorder %v5886_v43, %v5410_v0  ;;  %v1891_v38 = vsel %vm1890_vm6, %v1886_v60, inf }
 0x710   :  { %1892 = vmin.xlane.f32.xlu1 %v1891_v38  ;;  %v1756_v15 = vsel %vm1755_vm9, %v1751_v48, inf  ;;  %v1959_v48 = vand.u32 65535, %v5902_v41 }
 0x711   :  { %1757 = vmin.xlane.f32.xlu0 %v1756_v15  ;;  %v5904_v15 = vld [vmem:[#allocation59_spill] sm:$0xff] }
 0x712   :  { %v5416_v44 = vpop.xlane.xlu1 %1918  ;;  %v1961_v38 = vcvt.s32.f32 %v1959_v48  ;;  %v1974_v21 = vand.u32 65535, %v5904_v15 }
 0x713   :  { %vm1920_vm10 = vcmp.eq.f32.partialorder %v5888_v2, %v5416_v44 }
 0x714   :  { %v1921_v34 = vsel %vm1920_vm10, %v1916_v31, inf  ;;  %v1976_v22 = vcvt.s32.f32 %v1974_v21 }
 0x715   :  { %v5421_v42 = vpop.xlane.xlu0 %1873  ;;  %1922 = vmin.xlane.f32.xlu1 %v1921_v34  ;;  %v1811_v34 = vcvt.s32.f32 %v1809_v24 }
 0x716   :  { %vm1875_vm12 = vcmp.eq.f32.partialorder %v5891_v58, %v5421_v42 }
 0x717   :  { %v1876_v61 = vsel %vm1875_vm12, %v1871_v46, inf  ;;  %v5426_v28 = vpop.xlane.xlu1 %1903  ;;  %v5907_v46 = vld [vmem:[#allocation62_spill] sm:$0xff] }
 0x718   :  { %1877 = vmin.xlane.f32.xlu0 %v1876_v61  ;;  %vm1905_vm14 = vcmp.eq.f32.partialorder %v5892_v33, %v5426_v28  ;;  %v5908_v61 = vld [vmem:[#allocation64_spill] sm:$0xff] }
 0x719   :  { %v5430_v4 = vpop.xlane.xlu0 %1798  ;;  %v1906_v53 = vsel %vm1905_vm14, %v1901_v20, inf }
 0x71a   :  { %vm1800_vm2 = vcmp.eq.f32.partialorder %v5893_v54, %v5430_v4  ;;  %1907 = vmin.xlane.f32.xlu1 %v1906_v53  ;;  %v5909_v54 = vld [vmem:[#allocation63_spill] sm:$0xff] }
 0x71b   :  { %v1801_v47 = vsel %vm1800_vm2, %v1796_v10, inf  ;;  %v1841_v10 = vcvt.s32.f32 %v1839_v50  ;;  %v1854_v53 = vand.u32 65535, %v5909_v54 }
 0x71c   :  { %1802 = vmin.xlane.f32.xlu0 %v1801_v47  ;;  %v5910_v47 = vld [vmem:[#allocation31_spill] sm:$0xff] }
 0x71d   :  { %v1856_v36 = vcvt.s32.f32 %v1854_v53 }
 0x71e   :  { %v5436_v40 = vpop.xlane.xlu1 %1948 }
 0x71f   :  { %v5438_v37 = vpop.xlane.xlu0 %1783  ;;  %vm1950_vm3 = vcmp.eq.f32.partialorder %v5897_v35, %v5436_v40 }
 0x720   :  { %vm1785_vm1 = vcmp.eq.f32.partialorder %v5898_v59, %v5438_v37  ;;  %v1951_v56 = vsel %vm1950_vm3, %v1946_v27, inf }
 0x721   :  { %v1786_v45 = vsel %vm1785_vm1, %v1781_v26, inf  ;;  %1952 = vmin.xlane.f32.xlu1 %v1951_v56 }
 0x722   :  { %1787 = vmin.xlane.f32.xlu0 %v1786_v45 }
 0x723   :  { %v5445_v18 = vpop.xlane.xlu1 %1933 }
 0x724   :  { %vm1935_vm6 = vcmp.eq.f32.partialorder %v5899_v23, %v5445_v18 }
 0x725   :  { %v1936_v52 = vsel %vm1935_vm6, %v1931_v19, inf }
 0x726   :  { %1937 = vmin.xlane.f32.xlu1 %v1936_v52 }
 0x72a   :  { %v5450_v32 = vpop.xlane.xlu0 %1828 }
 0x72b   :  { %vm1830_vm9 = vcmp.eq.f32.partialorder %v5901_v8, %v5450_v32 }
 0x72c   :  { %v1831_v60 = vsel %vm1830_vm9, %v1826_v11, inf }
 0x72d   :  { %1832 = vmin.xlane.f32.xlu0 %v1831_v60 }
 0x732   :  { %v5456_v43 = vpop.xlane.xlu1 %1963 }
 0x733   :  { %vm1965_vm10 = vcmp.eq.f32.partialorder %v5905_v51, %v5456_v43 }
 0x734   :  { %v1966_v31 = vsel %vm1965_vm10, %v1961_v38, inf }
 0x735   :  { %v5461_v2 = vpop.xlane.xlu0 %1813  ;;  %1967 = vmin.xlane.f32.xlu1 %v1966_v31 }
 0x736   :  { %vm1815_vm12 = vcmp.eq.f32.partialorder %v5907_v46, %v5461_v2 }
 0x737   :  { %v5466_v63 = vpop.xlane.xlu1 %1978  ;;  %v1816_v58 = vsel %vm1815_vm12, %v1811_v34, inf }
 0x738   :  { %vm1980_vm14 = vcmp.eq.f32.partialorder %v5908_v61, %v5466_v63  ;;  %1817 = vmin.xlane.f32.xlu0 %v1816_v58 }
 0x739   :  { %v1981_v20 = vsel %vm1980_vm14, %v1976_v22, inf  ;;  %v5470_v33 = vpop.xlane.xlu0 %1843 }
 0x73a   :  { %1982 = vmin.xlane.f32.xlu1 %v1981_v20  ;;  %vm1845_vm2 = vcmp.eq.f32.partialorder %v5910_v47, %v5470_v33 }
 0x73b   :  { %v1846_v25 = vsel %vm1845_vm2, %v1841_v10, inf }
 0x73c   :  { %1847 = vmin.xlane.f32.xlu0 %v1846_v25 }
 0x73d   :  { %v5475_v57 = vpop.xlane.xlu0 %1858 }
 0x73e   :  { %vm1860_vm3 = vcmp.eq.f32.partialorder %v5911_v3, %v5475_v57 }
 0x73f   :  { %v1861_v27 = vsel %vm1860_vm3, %v1856_v36, inf }
 0x740   :  { %1862 = vmin.xlane.f32.xlu0 %v1861_v27 }
 0x741   :  { %3075 = shalt.err (!%p3072_p4)
}
 0x742   :  { %s3109_s23 = smov 64   ;;  %s3110_s24 = smov 4   ;;  %v1775_v17 = vcvt.f32.s32 %v5400_v29  ;;  %v1760_v9 = vcvt.f32.s32 %v5410_v0  ;;  %v1895_v6 = vcvt.f32.s32 %v5406_v5  ;;  %v1880_v11 = vcvt.f32.s32 %v5421_v42 }
 0x743   :  { %2791 = dma.vmem_to_hbm [thread:$0]  %s2786_s21, 128, %s5541_s2, [#allocation3], %s3109_s23, %s3109_s23, %s3110_s24   ;;  %v1925_v0 = vcvt.f32.s32 %v5416_v44  ;;  %v1910_v13 = vcvt.f32.s32 %v5426_v28  ;;  %v1805_v28 = vcvt.f32.s32 %v5430_v4  ;;  %v1790_v20 = vcvt.f32.s32 %v5438_v37 }
 0x744   :  { %v1776_v59 = vshll.u32 %v1775_v17, 16  ;;  %v1761_v19 = vshll.u32 %v1760_v9, 16  ;;  %v1896_v48 = vshll.u32 %v1895_v6, 16  ;;  %v1881_v15 = vshll.u32 %v1880_v11, 16  ;;  %s3111_s2 = smov [#allocation4]  }
 0x745   :  { %v1926_v31 = vshll.u32 %v1925_v0, 16  ;;  %v1911_v49 = vshll.u32 %v1910_v13, 16  ;;  %v1806_v25 = vshll.u32 %v1805_v28, 16  ;;  %v1955_v36 = vcvt.f32.s32 %v5436_v40  ;;  %s2797_s26 = sshll.u32 %s3111_s2, 4  ;;  %s2798_s26 = int_to_ptr.vmem [resolvable:$true] %s2797_s26 }
 0x746   :  { %v1940_v4 = vcvt.f32.s32 %v5445_v18  ;;  %v1865_v28 = vcvt.f32.s32 %v5475_v57  ;;  %s3084_s27 = scalar_lea.vmem %s2798_s26, 128  ;;  %p3089_p6 = scmp.lt.s32.totalorder %s2798_s26, %s2798_s26 }
 0x747   :  { %p3085_p5 = scmp.ne.s32.totalorder %s2798_s26, %s3084_s27  ;;  %p3090_p7 = scmp.lt.s32.totalorder %s3084_s27, %s3084_s27 }
 0x749   :  { %p3091_p8 = por %p3090_p7, %p3089_p6 }
 0x74b   :  { %p3092_p9 = pnand %p3091_p8, %p3085_p5 }
 0x794   :  { %v1773_v26 = vpop.xlane.xlu1 %1772 }
 0x795   :  { %v1774_v35 = vcvt.f32.s32 %v1773_v26 }
 0x797   :  { %v1777_v23 = vadd.s32 %v1776_v59, %v1774_v35  ;;  %v1956_v59 = vshll.u32 %v1955_v36, 16 }
 0x799   :  { %v1893_v56 = vpop.xlane.xlu1 %1892  ;;  %v1995_v41 = vrot.slane %v1777_v23, %v3629_v12 }
 0x79a   :  { %v1758_v45 = vpop.xlane.xlu0 %1757  ;;  %v1894_v8 = vcvt.f32.s32 %v1893_v56 }
 0x79b   :  { %v1759_v52 = vcvt.f32.s32 %v1758_v45  ;;  %v1941_v45 = vshll.u32 %v1940_v4, 16 }
 0x79c   :  { %v1897_v21 = vadd.s32 %v1896_v48, %v1894_v8  ;;  %v1835_v48 = vcvt.f32.s32 %v5450_v32 }
 0x79d   :  { %v1762_v14 = vadd.s32 %v1761_v19, %v1759_v52 }
 0x79e   :  { %v1923_v60 = vpop.xlane.xlu1 %1922  ;;  %v2034_v22 = vrot.slane %v1897_v21, %v3629_v12  ;;  %v1836_v21 = vshll.u32 %v1835_v48, 16 }
 0x79f   :  { %v1991_v29 = vrot.slane %v1762_v14, %v5877_v39  ;;  %v1924_v5 = vcvt.f32.s32 %v1923_v60 }
 0x7a1   :  { %v1996_v24 = vsel %vm686_vm5, %v1995_v41, %v1991_v29  ;;  %v1878_v38 = vpop.xlane.xlu0 %1877  ;;  %v1927_v58 = vadd.s32 %v1926_v31, %v1924_v5  ;;  %v1970_v29 = vcvt.f32.s32 %v5456_v43 }
 0x7a2   :  { %v1879_v51 = vcvt.f32.s32 %v1878_v38 }
 0x7a3   :  { %v1908_v34 = vpop.xlane.xlu1 %1907  ;;  %v2044_v47 = vrot.slane %v1927_v58, %v5851_v7  ;;  %v1971_v13 = vshll.u32 %v1970_v29, 16 }
 0x7a4   :  { %v1882_v42 = vadd.s32 %v1881_v15, %v1879_v51  ;;  %v1909_v50 = vcvt.f32.s32 %v1908_v34 }
 0x7a5   :  { %v1803_v46 = vpop.xlane.xlu0 %1802 }
 0x7a6   :  { %v2030_v44 = vrot.slane %v1882_v42, %v5877_v39  ;;  %v1912_v61 = vadd.s32 %v1911_v49, %v1909_v50  ;;  %v1804_v53 = vcvt.f32.s32 %v1803_v46  ;;  %v1791_v39 = vshll.u32 %v1790_v20, 16 }
 0x7a7   :  { %v1850_v42 = vcvt.f32.s32 %v5470_v33 }
 0x7a8   :  { %v2035_v10 = vsel %vm686_vm5, %v2034_v22, %v2030_v44  ;;  %v2039_v54 = vrot.slane %v1912_v61, %v5850_v55  ;;  %v1807_v17 = vadd.s32 %v1806_v25, %v1804_v53 }
 0x7a9   :  { %v1851_v44 = vshll.u32 %v1850_v42, 16 }
 0x7aa   :  { %v2040_v12 = vsel %vm693_vm8, %v2039_v54, %v2035_v10  ;;  %v1953_v3 = vpop.xlane.xlu1 %1952  ;;  %v2005_v40 = vrot.slane %v1807_v17, %v5851_v7  ;;  %v1820_v7 = vcvt.f32.s32 %v5461_v2 }
 0x7ab   :  { %v1788_v27 = vpop.xlane.xlu0 %1787  ;;  %v2045_v37 = vsel %vm700_vm11, %v2044_v47, %v2040_v12  ;;  %v1954_v9 = vcvt.f32.s32 %v1953_v3  ;;  %v1866_v12 = vshll.u32 %v1865_v28, 16 }
 0x7ac   :  { %v1789_v26 = vcvt.f32.s32 %v1788_v27  ;;  %v1821_v31 = vshll.u32 %v1820_v7, 16 }
 0x7ad   :  { %v1957_v52 = vadd.s32 %v1956_v59, %v1954_v9 }
 0x7ae   :  { %v1792_v35 = vadd.s32 %v1791_v39, %v1789_v26 }
 0x7af   :  { %v1938_v56 = vpop.xlane.xlu1 %1937  ;;  %v2054_v8 = vrot.slane %v1957_v52, %v5854_v1 }
 0x7b0   :  { %v2000_v19 = vrot.slane %v1792_v35, %v5850_v55  ;;  %v1939_v23 = vcvt.f32.s32 %v1938_v56 }
 0x7b2   :  { %v2001_v6 = vsel %vm693_vm8, %v2000_v19, %v1996_v24  ;;  %v1942_v14 = vadd.s32 %v1941_v45, %v1939_v23  ;;  %v1985_v24 = vcvt.f32.s32 %v5466_v63 }
 0x7b3   :  { %v2006_v18 = vsel %vm700_vm11, %v2005_v40, %v2001_v6 }
 0x7b4   :  { %v2049_v11 = vrot.slane %v1942_v14, %v5856_v16  ;;  %v1986_v43 = vshll.u32 %v1985_v24, 16 }
 0x7b6   :  { %v2050_v60 = vsel %vm707_vm13, %v2049_v11, %v2045_v37  ;;  %v1833_v55 = vpop.xlane.xlu0 %1832 }
 0x7b7   :  { %v2055_v41 = vsel %vm714_vm15, %v2054_v8, %v2050_v60  ;;  %v1834_v38 = vcvt.f32.s32 %v1833_v55 }
 0x7b9   :  { %v1837_v50 = vadd.s32 %v1836_v21, %v1834_v38 }
 0x7bb   :  { %v2015_v33 = vrot.slane %v1837_v50, %v5854_v1 }
 0x7be   :  { %v1968_v0 = vpop.xlane.xlu1 %1967 }
 0x7bf   :  { %v1969_v15 = vcvt.f32.s32 %v1968_v0 }
 0x7c1   :  { %v1972_v5 = vadd.s32 %v1971_v13, %v1969_v15  ;;  %v1818_v51 = vpop.xlane.xlu0 %1817 }
 0x7c2   :  { %v1819_v34 = vcvt.f32.s32 %v1818_v51 }
 0x7c3   :  { %v1983_v49 = vpop.xlane.xlu1 %1982  ;;  %v2059_v32 = vrot.slane %v1972_v5, %v5868_v62 }
 0x7c4   :  { %v1984_v46 = vcvt.f32.s32 %v1983_v49  ;;  %v1822_v2 = vadd.s32 %v1821_v31, %v1819_v34 }
 0x7c5   :  { %v2060_v22 = vsel %vm721_vm0, %v2059_v32, %v2055_v41  ;;  %v1848_v63 = vpop.xlane.xlu0 %1847 }
 0x7c6   :  { %v1987_v58 = vadd.s32 %v1986_v43, %v1984_v46  ;;  %v2010_v61 = vrot.slane %v1822_v2, %v5856_v16  ;;  %v1849_v20 = vcvt.f32.s32 %v1848_v63 }
 0x7c8   :  { %v2064_v10 = vrot.slane %v1987_v58, %v5871_v30  ;;  %v2011_v54 = vsel %vm707_vm13, %v2010_v61, %v2006_v18  ;;  %v1852_v53 = vadd.s32 %v1851_v44, %v1849_v20 }
 0x7c9   :  { %v2016_v25 = vsel %vm714_vm15, %v2015_v33, %v2011_v54  ;;  %v1863_v36 = vpop.xlane.xlu0 %1862 }
 0x7ca   :  { %v2065_v47 = vsel %vm728_vm4, %v2064_v10, %v2060_v22  ;;  %v2020_v57 = vrot.slane %v1852_v53, %v5868_v62  ;;  %v1864_v3 = vcvt.f32.s32 %v1863_v36 }
 0x7cb   :  { %2067 = vst.msk [vmem:[#allocation4 + $0x7] sm:$0x1] %vm769_vm7, %v2065_v47 }
 0x7cc   :  { %v2021_v16 = vsel %vm721_vm0, %v2020_v57, %v2016_v25  ;;  %v1867_v27 = vadd.s32 %v1866_v12, %v1864_v3 }
 0x7ce   :  { %v2025_v1 = vrot.slane %v1867_v27, %v5871_v30 }
 0x7d0   :  { %v2026_v39 = vsel %vm728_vm4, %v2025_v1, %v2021_v16 }
 0x7d1   :  { %2066 = vst.msk [vmem:[#allocation4 + $0x3] sm:$0x1] %vm769_vm7, %v2026_v39 }
 0x7d2   :  { %3095 = shalt.err (!%p3092_p9)
}
 0x7d3   :  { %2803 = dma.vmem_to_hbm [thread:$0]  %s2798_s26, 128, %s5542_s3, [#allocation5], %s3109_s23, %s3109_s23, %s3110_s24  }
 0x7d4   :  { %3104 = dma.done.wait [#allocation3], 128  }
 0x7d5   :  { %3105 = vsyncadd [#allocation3], 4294967168 }
 0x7d6   :  { %3106 = dma.done.wait [#allocation5], 128  }
 0x7d7   :  { %3107 = vsyncadd [#allocation5], 4294967168 }
 0x7d8   :  { %2810 = vsyncpa [#allocation3], 1 }
 0x7d9   :  { %2811 = vsyncpa [#allocation5], 1 }

</bundles_post_ra>
